<compile_context>
chip_gen: v6e
topology: v6e:2x2x1
jax: 0.10.0
libtpu: 0.0.40
codegen_flags: <defaults>
</compile_context>

<pallas_src>
import jax
import jax.numpy as jnp
import numpy as np
from jax import lax
from jax.experimental import pallas as pl
from jax.experimental.pallas import tpu as pltpu


# ----------------------------------------------------------------------------
# Fused Pallas kernel: conv3x3+BN+ReLU -> convT(3,2,1,1)+BN+ReLU (one batch elem)
# ----------------------------------------------------------------------------
def _decoder_block_kernel(x_ref, w1_ref, shift1_ref, we_ref, wo_ref, shift2_ref,
                          o_ref):
    # x_ref     : (H, W, Cin)
    # w1_ref    : (9*Cin, Cmid)     stage-1 im2col weights, BN1 scale folded in
    # shift1_ref: (1, Cmid)         folded BN1 shift (+ conv bias)
    # we_ref    : (4*Cmid, 2*Cout)  phase weights for even output rows (cols b*Cout+co)
    # wo_ref    : (4*Cmid, 2*Cout)  phase weights for odd output rows
    # shift2_ref: (1, 2*Cout)       folded BN2 shift (+ convT bias), tiled over b
    # o_ref     : (2, H, 2*W*Cout)  o[a, h, (2w+b)*Cout+co] = y[2h+a, 2w+b, co]
    H, W, Cin = x_ref.shape
    Cmid = w1_ref.shape[1]

    # ---- stage 1: 3x3 conv (padding=1) as a single im2col matmul, + shift + ReLU
    x = x_ref[...]
    zr = jnp.zeros((1, W, Cin), jnp.float32)
    zc = jnp.zeros((H + 2, 1, Cin), jnp.float32)
    xpad = jnp.concatenate([zr, x, zr], axis=0)
    xpad = jnp.concatenate([zc, xpad, zc], axis=1)            # (H+2, W+2, Cin)

    cols = [xpad[kh:kh + H, kw:kw + W, :].reshape(H * W, Cin)
            for kh in range(3) for kw in range(3)]
    patch1 = jnp.concatenate(cols, axis=1)                    # (H*W, 9*Cin)
    mid = jnp.dot(patch1, w1_ref[...],
                  preferred_element_type=jnp.float32)         # (H*W, Cmid)
    mid = jnp.maximum(mid + shift1_ref[...], 0.0)

    # ---- stage 2: ConvTranspose2d(k3,s2,p1,op1) via sub-pixel phase decomposition
    mid3 = mid.reshape(H, W, Cmid)
    zr2 = jnp.zeros((1, W, Cmid), jnp.float32)
    zc2 = jnp.zeros((H + 1, 1, Cmid), jnp.float32)
    midp = jnp.concatenate([mid3, zr2], axis=0)               # zero halo bottom
    midp = jnp.concatenate([midp, zc2], axis=1)               # zero halo right -> (H+1, W+1, Cmid)

    taps = [midp[dh:dh + H, dw:dw + W, :].reshape(H * W, Cmid)
            for dh in range(2) for dw in range(2)]            # [m00, m01, m10, m11]
    patch2 = jnp.concatenate(taps, axis=1)                    # (H*W, 4*Cmid)

    even = jnp.dot(patch2, we_ref[...], preferred_element_type=jnp.float32)
    odd = jnp.dot(patch2, wo_ref[...], preferred_element_type=jnp.float32)
    even = jnp.maximum(even + shift2_ref[...], 0.0)           # (H*W, 2*Cout)
    odd = jnp.maximum(odd + shift2_ref[...], 0.0)

    # Repack (H*W, 2*Cout) -> (H, 2*W*Cout): lane-dense output rows.
    even3 = even.reshape(H, W, -1)
    odd3 = odd.reshape(H, W, -1)
    even_d = jnp.concatenate([even3[:, w, :] for w in range(W)], axis=-1)
    odd_d = jnp.concatenate([odd3[:, w, :] for w in range(W)], axis=-1)
    o_ref[0] = even_d.astype(o_ref.dtype)
    o_ref[1] = odd_d.astype(o_ref.dtype)


# ----------------------------------------------------------------------------
# Wrapper: NCHW in / NCHW out, one fused pallas_call over the batch
# ----------------------------------------------------------------------------
def decoder_block(x_nchw, kp):
    N, Cin, H, W = x_nchw.shape
    Cmid = kp["w1"].shape[1]
    Cout = kp["we"].shape[1] // 2
    lanes_out = 2 * W * Cout

    x = jnp.transpose(x_nchw, (0, 2, 3, 1)).astype(jnp.float32)   # -> NHWC

    out = pl.pallas_call(
        _decoder_block_kernel,
        out_shape=jax.ShapeDtypeStruct((N, 2, H, lanes_out), jnp.float32),
        grid=(N,),
        in_specs=[
            pl.BlockSpec((None, H, W, Cin), lambda n: (n, 0, 0, 0)),
            pl.BlockSpec(kp["w1"].shape, lambda n: (0, 0)),
            pl.BlockSpec(kp["shift1"].shape, lambda n: (0, 0)),
            pl.BlockSpec(kp["we"].shape, lambda n: (0, 0)),
            pl.BlockSpec(kp["wo"].shape, lambda n: (0, 0)),
            pl.BlockSpec(kp["shift2"].shape, lambda n: (0, 0)),
        ],
        out_specs=pl.BlockSpec((None, 2, H, lanes_out),
                               lambda n: (n, 0, 0, 0)),
        compiler_params=pltpu.CompilerParams(
            dimension_semantics=("parallel",)),
    )(x, kp["w1"], kp["shift1"], kp["we"], kp["wo"], kp["shift2"])

    # (N, 2, H, 2W*Cout) -> (N, Cout, 2H, 2W); this is the NCHW transpose we need anyway.
    out = out.reshape(N, 2, H, W, 2, Cout)          # (n, a, h, w, b, co)
    out = jnp.transpose(out, (0, 5, 2, 1, 3, 4))    # (n, co, h, a, w, b)
    return out.reshape(N, Cout, 2 * H, 2 * W)


# ----------------------------------------------------------------------------
# Parameters: raw (PyTorch-layout) params + folding into kernel-ready layouts
# ----------------------------------------------------------------------------
def init_raw_params(key, in_ch, mid_ch, out_ch):
    ks = jax.random.split(key, 12)
    return dict(
        # Conv2d(in_ch, mid_ch, 3, padding=1)
        w1=jax.random.normal(ks[0], (mid_ch, in_ch, 3, 3), jnp.float32) * 0.1,
        b1=jax.random.normal(ks[1], (mid_ch,), jnp.float32) * 0.1,
        # BatchNorm2d(mid_ch), eval-mode running stats
        g1=1.0 + 0.1 * jax.random.normal(ks[2], (mid_ch,), jnp.float32),
        be1=0.1 * jax.random.normal(ks[3], (mid_ch,), jnp.float32),
        m1=0.1 * jax.random.normal(ks[4], (mid_ch,), jnp.float32),
        v1=1.0 + 0.1 * jax.random.uniform(ks[5], (mid_ch,), jnp.float32),
        # ConvTranspose2d(mid_ch, out_ch, 3, stride=2, padding=1, output_padding=1)
        wt=jax.random.normal(ks[6], (mid_ch, out_ch, 3, 3), jnp.float32) * 0.1,
        b2=jax.random.normal(ks[7], (out_ch,), jnp.float32) * 0.1,
        # BatchNorm2d(out_ch)
        g2=1.0 + 0.1 * jax.random.normal(ks[8], (out_ch,), jnp.float32),
        be2=0.1 * jax.random.normal(ks[9], (out_ch,), jnp.float32),
        m2=0.1 * jax.random.normal(ks[10], (out_ch,), jnp.float32),
        v2=1.0 + 0.1 * jax.random.uniform(ks[11], (out_ch,), jnp.float32),
    )


def fold_kernel_params(raw, eps=1e-5):
    Cmid, Cin, _, _ = raw["w1"].shape
    Cout = raw["wt"].shape[1]

    # Stage 1: fold BN1 scale into weights, bias+BN1 into shift.
    s1 = raw["g1"] / jnp.sqrt(raw["v1"] + eps)
    shift1 = (raw["b1"] - raw["m1"]) * s1 + raw["be1"]
    w1_hwio = jnp.transpose(raw["w1"], (2, 3, 1, 0)) * s1          # (3,3,Cin,Cmid)
    w1k = w1_hwio.reshape(9 * Cin, Cmid)                            # rows: (kh*3+kw)*Cin+ci

    # Stage 2: conv-transpose == conv (on zero-upsampled input) with flipped/transposed
    # weights w2[kh,kw,ci,co] = wt[ci,co,2-kh,2-kw]; fold BN2 scale in.
    s2 = raw["g2"] / jnp.sqrt(raw["v2"] + eps)
    shift2_c = (raw["b2"] - raw["m2"]) * s2 + raw["be2"]
    w2 = jnp.transpose(raw["wt"][:, :, ::-1, ::-1], (2, 3, 0, 1)) * s2   # (3,3,Cmid,Cout)

    # Phase weights. patch2 taps order: [(0,0),(0,1),(1,0),(1,1)] -> blocks 0..3.
    we = jnp.zeros((4 * Cmid, 2 * Cout), jnp.float32)
    wo = jnp.zeros((4 * Cmid, 2 * Cout), jnp.float32)
    blk = lambda t: slice(t * Cmid, (t + 1) * Cmid)
    cb0, cb1 = slice(0, Cout), slice(Cout, 2 * Cout)
    # even rows (a=0):  b=0 uses w2[1,1];  b=1 uses w2[1,0] (tap 00) + w2[1,2] (tap 01)
    we = we.at[blk(0), cb0].set(w2[1, 1])
    we = we.at[blk(0), cb1].set(w2[1, 0])
    we = we.at[blk(1), cb1].set(w2[1, 2])
    # odd rows (a=1):   b=0 uses w2[0,1] (tap 00) + w2[2,1] (tap 10)
    wo = wo.at[blk(0), cb0].set(w2[0, 1])
    wo = wo.at[blk(2), cb0].set(w2[2, 1])
    #                   b=1 uses w2[0,0],w2[0,2],w2[2,0],w2[2,2] on taps 00,01,10,11
    wo = wo.at[blk(0), cb1].set(w2[0, 0])
    wo = wo.at[blk(1), cb1].set(w2[0, 2])
    wo = wo.at[blk(2), cb1].set(w2[2, 0])
    wo = wo.at[blk(3), cb1].set(w2[2, 2])

    shift2 = jnp.tile(shift2_c, 2).reshape(1, 2 * Cout)
    return dict(w1=w1k, shift1=shift1.reshape(1, Cmid),
                we=we, wo=wo, shift2=shift2)


# ----------------------------------------------------------------------------
# Pure-JAX reference built from the RAW (unfolded) parameters
# ----------------------------------------------------------------------------
def decoder_block_ref(x_nchw, raw, eps=1e-5):
    dn = ("NHWC", "HWIO", "NHWC")
    x = jnp.transpose(x_nchw, (0, 2, 3, 1)).astype(jnp.float32)
    w1 = jnp.transpose(raw["w1"], (2, 3, 1, 0))
    c1 = lax.conv_general_dilated(x, w1, (1, 1), ((1, 1), (1, 1)),
                                  dimension_numbers=dn,
                                  precision=lax.Precision.HIGHEST) + raw["b1"]
    h1 = (c1 - raw["m1"]) / jnp.sqrt(raw["v1"] + eps) * raw["g1"] + raw["be1"]
    h1 = jnp.maximum(h1, 0.0)
    # ConvTranspose2d(k3, s2, p1, op1) == lhs-dilated conv with flipped/transposed kernel.
    w2 = jnp.transpose(raw["wt"][:, :, ::-1, ::-1], (2, 3, 0, 1))
    c2 = lax.conv_general_dilated(h1, w2, (1, 1), ((1, 2), (1, 2)),
                                  lhs_dilation=(2, 2), dimension_numbers=dn,
                                  precision=lax.Precision.HIGHEST) + raw["b2"]
    h2 = (c2 - raw["m2"]) / jnp.sqrt(raw["v2"] + eps) * raw["g2"] + raw["be2"]
    h2 = jnp.maximum(h2, 0.0)
    return jnp.transpose(h2, (0, 3, 1, 2))


if __name__ == "__main__":
    key = jax.random.PRNGKey(0)
    kx, kp = jax.random.split(key)

    N, Cin, H, W = 2, 4, 16, 16
    Cmid, Cout = 8, 4

    x = jax.random.normal(kx, (N, Cin, H, W), jnp.float32)
    raw = init_raw_params(kp, Cin, Cmid, Cout)
    kparams = fold_kernel_params(raw)

    fwd = jax.jit(decoder_block)
    out = jax.block_until_ready(fwd(x, kparams))
    assert out.shape == (N, Cout, 2 * H, 2 * W), out.shape

    ref = jax.block_until_ready(decoder_block_ref(x, raw))
    np.testing.assert_allclose(np.asarray(out), np.asarray(ref),
                               rtol=1e-3, atol=1e-3)

    print("KERNEL_OK")
</pallas_src>

<mosaic_0001>
module attributes {stable_mosaic.version = 11 : i64} {
  func.func @_decoder_block_kernel(%arg0: i32, %arg1: memref<1x16x16x4xf32, #tpu.memory_space<vmem>>, %arg2: memref<36x8xf32, #tpu.memory_space<vmem>>, %arg3: memref<1x8xf32, #tpu.memory_space<vmem>>, %arg4: memref<32x8xf32, #tpu.memory_space<vmem>>, %arg5: memref<32x8xf32, #tpu.memory_space<vmem>>, %arg6: memref<1x8xf32, #tpu.memory_space<vmem>>, %arg7: memref<1x2x16x128xf32, #tpu.memory_space<vmem>>) attributes {dimension_semantics = [#tpu.dimension_semantics<parallel>], iteration_bounds = array<i64: 2>, scalar_prefetch = 0 : i64, scratch_operands = 0 : i64, tpu.core_type = #tpu.core_type<tc>, window_params = [{transform_indices = @transform_0, window_bounds = array<i64: 1, 16, 16, 4>}, {pipeline_mode = #tpu.pipeline_mode<synchronous>, transform_indices = @transform_1, window_bounds = array<i64: 36, 8>}, {pipeline_mode = #tpu.pipeline_mode<synchronous>, transform_indices = @transform_2, window_bounds = array<i64: 1, 8>}, {pipeline_mode = #tpu.pipeline_mode<synchronous>, transform_indices = @transform_3, window_bounds = array<i64: 32, 8>}, {pipeline_mode = #tpu.pipeline_mode<synchronous>, transform_indices = @transform_4, window_bounds = array<i64: 32, 8>}, {pipeline_mode = #tpu.pipeline_mode<synchronous>, transform_indices = @transform_5, window_bounds = array<i64: 1, 8>}, {transform_indices = @transform_6, window_bounds = array<i64: 1, 2, 16, 128>}]} {
    %c0 = arith.constant 0 : index
    %c0_0 = arith.constant 0 : index
    %c0_1 = arith.constant 0 : index
    %c0_2 = arith.constant 0 : index
    %0 = vector.load %arg1[%c0, %c0_0, %c0_1, %c0_2] : memref<1x16x16x4xf32, #tpu.memory_space<vmem>>, vector<1x16x16x4xf32>
    %1 = vector.shape_cast %0 : vector<1x16x16x4xf32> to vector<16x16x4xf32>
    %cst = arith.constant 0.000000e+00 : f32
    %2 = vector.broadcast %cst : f32 to vector<1x16x4xf32>
    %cst_3 = arith.constant 0.000000e+00 : f32
    %3 = vector.broadcast %cst_3 : f32 to vector<18x1x4xf32>
    %4 = tpu.concatenate %2, %1, %2 in 0 : vector<1x16x4xf32>, vector<16x16x4xf32>, vector<1x16x4xf32> -> vector<18x16x4xf32>
    %5 = tpu.concatenate %3, %4, %3 in 1 : vector<18x1x4xf32>, vector<18x16x4xf32>, vector<18x1x4xf32> -> vector<18x18x4xf32>
    %6 = vector.extract_strided_slice %5 {offsets = [0, 0, 0], sizes = [16, 16, 4], strides = [1, 1, 1]} : vector<18x18x4xf32> to vector<16x16x4xf32>
    %7 = vector.shape_cast %6 : vector<16x16x4xf32> to vector<256x4xf32>
    %8 = vector.extract_strided_slice %5 {offsets = [0, 1, 0], sizes = [16, 16, 4], strides = [1, 1, 1]} : vector<18x18x4xf32> to vector<16x16x4xf32>
    %9 = vector.shape_cast %8 : vector<16x16x4xf32> to vector<256x4xf32>
    %10 = vector.extract_strided_slice %5 {offsets = [0, 2, 0], sizes = [16, 16, 4], strides = [1, 1, 1]} : vector<18x18x4xf32> to vector<16x16x4xf32>
    %11 = vector.shape_cast %10 : vector<16x16x4xf32> to vector<256x4xf32>
    %12 = vector.extract_strided_slice %5 {offsets = [1, 0, 0], sizes = [16, 16, 4], strides = [1, 1, 1]} : vector<18x18x4xf32> to vector<16x16x4xf32>
    %13 = vector.shape_cast %12 : vector<16x16x4xf32> to vector<256x4xf32>
    %14 = vector.extract_strided_slice %5 {offsets = [1, 1, 0], sizes = [16, 16, 4], strides = [1, 1, 1]} : vector<18x18x4xf32> to vector<16x16x4xf32>
    %15 = vector.shape_cast %14 : vector<16x16x4xf32> to vector<256x4xf32>
    %16 = vector.extract_strided_slice %5 {offsets = [1, 2, 0], sizes = [16, 16, 4], strides = [1, 1, 1]} : vector<18x18x4xf32> to vector<16x16x4xf32>
    %17 = vector.shape_cast %16 : vector<16x16x4xf32> to vector<256x4xf32>
    %18 = vector.extract_strided_slice %5 {offsets = [2, 0, 0], sizes = [16, 16, 4], strides = [1, 1, 1]} : vector<18x18x4xf32> to vector<16x16x4xf32>
    %19 = vector.shape_cast %18 : vector<16x16x4xf32> to vector<256x4xf32>
    %20 = vector.extract_strided_slice %5 {offsets = [2, 1, 0], sizes = [16, 16, 4], strides = [1, 1, 1]} : vector<18x18x4xf32> to vector<16x16x4xf32>
    %21 = vector.shape_cast %20 : vector<16x16x4xf32> to vector<256x4xf32>
    %22 = vector.extract_strided_slice %5 {offsets = [2, 2, 0], sizes = [16, 16, 4], strides = [1, 1, 1]} : vector<18x18x4xf32> to vector<16x16x4xf32>
    %23 = vector.shape_cast %22 : vector<16x16x4xf32> to vector<256x4xf32>
    %24 = tpu.concatenate %7, %9, %11, %13, %15, %17, %19, %21, %23 in 1 : vector<256x4xf32>, vector<256x4xf32>, vector<256x4xf32>, vector<256x4xf32>, vector<256x4xf32>, vector<256x4xf32>, vector<256x4xf32>, vector<256x4xf32>, vector<256x4xf32> -> vector<256x36xf32>
    %c0_4 = arith.constant 0 : index
    %c0_5 = arith.constant 0 : index
    %25 = vector.load %arg2[%c0_4, %c0_5] : memref<36x8xf32, #tpu.memory_space<vmem>>, vector<36x8xf32>
    %cst_6 = arith.constant dense<0.000000e+00> : vector<256x8xf32>
    %26 = tpu.matmul %24, %25, %cst_6 {dimension_numbers = #tpu.dot_dimension_numbers<[1], [0], [0], [1], [0, 0, 1, 1], [], []>} : vector<256x36xf32>, vector<36x8xf32>, vector<256x8xf32> -> vector<256x8xf32>
    %c0_7 = arith.constant 0 : index
    %c0_8 = arith.constant 0 : index
    %27 = vector.load %arg3[%c0_7, %c0_8] : memref<1x8xf32, #tpu.memory_space<vmem>>, vector<1x8xf32>
    %28 = vector.broadcast %27 : vector<1x8xf32> to vector<256x8xf32>
    %29 = arith.addf %26, %28 : vector<256x8xf32>
    %cst_9 = arith.constant 0.000000e+00 : f32
    %30 = vector.broadcast %cst_9 : f32 to vector<256x8xf32>
    %31 = arith.maximumf %29, %30 : vector<256x8xf32>
    %32 = vector.shape_cast %31 : vector<256x8xf32> to vector<16x16x8xf32>
    %cst_10 = arith.constant 0.000000e+00 : f32
    %33 = vector.broadcast %cst_10 : f32 to vector<1x16x8xf32>
    %cst_11 = arith.constant 0.000000e+00 : f32
    %34 = vector.broadcast %cst_11 : f32 to vector<17x1x8xf32>
    %35 = tpu.concatenate %32, %33 in 0 : vector<16x16x8xf32>, vector<1x16x8xf32> -> vector<17x16x8xf32>
    %36 = tpu.concatenate %35, %34 in 1 : vector<17x16x8xf32>, vector<17x1x8xf32> -> vector<17x17x8xf32>
    %37 = vector.extract_strided_slice %36 {offsets = [0, 0, 0], sizes = [16, 16, 8], strides = [1, 1, 1]} : vector<17x17x8xf32> to vector<16x16x8xf32>
    %38 = vector.shape_cast %37 : vector<16x16x8xf32> to vector<256x8xf32>
    %39 = vector.extract_strided_slice %36 {offsets = [0, 1, 0], sizes = [16, 16, 8], strides = [1, 1, 1]} : vector<17x17x8xf32> to vector<16x16x8xf32>
    %40 = vector.shape_cast %39 : vector<16x16x8xf32> to vector<256x8xf32>
    %41 = vector.extract_strided_slice %36 {offsets = [1, 0, 0], sizes = [16, 16, 8], strides = [1, 1, 1]} : vector<17x17x8xf32> to vector<16x16x8xf32>
    %42 = vector.shape_cast %41 : vector<16x16x8xf32> to vector<256x8xf32>
    %43 = vector.extract_strided_slice %36 {offsets = [1, 1, 0], sizes = [16, 16, 8], strides = [1, 1, 1]} : vector<17x17x8xf32> to vector<16x16x8xf32>
    %44 = vector.shape_cast %43 : vector<16x16x8xf32> to vector<256x8xf32>
    %45 = tpu.concatenate %38, %40, %42, %44 in 1 : vector<256x8xf32>, vector<256x8xf32>, vector<256x8xf32>, vector<256x8xf32> -> vector<256x32xf32>
    %c0_12 = arith.constant 0 : index
    %c0_13 = arith.constant 0 : index
    %46 = vector.load %arg4[%c0_12, %c0_13] : memref<32x8xf32, #tpu.memory_space<vmem>>, vector<32x8xf32>
    %cst_14 = arith.constant dense<0.000000e+00> : vector<256x8xf32>
    %47 = tpu.matmul %45, %46, %cst_14 {dimension_numbers = #tpu.dot_dimension_numbers<[1], [0], [0], [1], [0, 0, 1, 1], [], []>} : vector<256x32xf32>, vector<32x8xf32>, vector<256x8xf32> -> vector<256x8xf32>
    %c0_15 = arith.constant 0 : index
    %c0_16 = arith.constant 0 : index
    %48 = vector.load %arg5[%c0_15, %c0_16] : memref<32x8xf32, #tpu.memory_space<vmem>>, vector<32x8xf32>
    %cst_17 = arith.constant dense<0.000000e+00> : vector<256x8xf32>
    %49 = tpu.matmul %45, %48, %cst_17 {dimension_numbers = #tpu.dot_dimension_numbers<[1], [0], [0], [1], [0, 0, 1, 1], [], []>} : vector<256x32xf32>, vector<32x8xf32>, vector<256x8xf32> -> vector<256x8xf32>
    %c0_18 = arith.constant 0 : index
    %c0_19 = arith.constant 0 : index
    %50 = vector.load %arg6[%c0_18, %c0_19] : memref<1x8xf32, #tpu.memory_space<vmem>>, vector<1x8xf32>
    %51 = vector.broadcast %50 : vector<1x8xf32> to vector<256x8xf32>
    %52 = arith.addf %47, %51 : vector<256x8xf32>
    %cst_20 = arith.constant 0.000000e+00 : f32
    %53 = vector.broadcast %cst_20 : f32 to vector<256x8xf32>
    %54 = arith.maximumf %52, %53 : vector<256x8xf32>
    %c0_21 = arith.constant 0 : index
    %c0_22 = arith.constant 0 : index
    %55 = vector.load %arg6[%c0_21, %c0_22] : memref<1x8xf32, #tpu.memory_space<vmem>>, vector<1x8xf32>
    %56 = vector.broadcast %55 : vector<1x8xf32> to vector<256x8xf32>
    %57 = arith.addf %49, %56 : vector<256x8xf32>
    %cst_23 = arith.constant 0.000000e+00 : f32
    %58 = vector.broadcast %cst_23 : f32 to vector<256x8xf32>
    %59 = arith.maximumf %57, %58 : vector<256x8xf32>
    %60 = vector.shape_cast %54 : vector<256x8xf32> to vector<16x16x8xf32>
    %61 = vector.shape_cast %59 : vector<256x8xf32> to vector<16x16x8xf32>
    %62 = vector.extract_strided_slice %60 {offsets = [0, 0, 0], sizes = [16, 1, 8], strides = [1, 1, 1]} : vector<16x16x8xf32> to vector<16x1x8xf32>
    %63 = vector.shape_cast %62 : vector<16x1x8xf32> to vector<16x8xf32>
    %64 = vector.extract_strided_slice %60 {offsets = [0, 1, 0], sizes = [16, 1, 8], strides = [1, 1, 1]} : vector<16x16x8xf32> to vector<16x1x8xf32>
    %65 = vector.shape_cast %64 : vector<16x1x8xf32> to vector<16x8xf32>
    %66 = vector.extract_strided_slice %60 {offsets = [0, 2, 0], sizes = [16, 1, 8], strides = [1, 1, 1]} : vector<16x16x8xf32> to vector<16x1x8xf32>
    %67 = vector.shape_cast %66 : vector<16x1x8xf32> to vector<16x8xf32>
    %68 = vector.extract_strided_slice %60 {offsets = [0, 3, 0], sizes = [16, 1, 8], strides = [1, 1, 1]} : vector<16x16x8xf32> to vector<16x1x8xf32>
    %69 = vector.shape_cast %68 : vector<16x1x8xf32> to vector<16x8xf32>
    %70 = vector.extract_strided_slice %60 {offsets = [0, 4, 0], sizes = [16, 1, 8], strides = [1, 1, 1]} : vector<16x16x8xf32> to vector<16x1x8xf32>
    %71 = vector.shape_cast %70 : vector<16x1x8xf32> to vector<16x8xf32>
    %72 = vector.extract_strided_slice %60 {offsets = [0, 5, 0], sizes = [16, 1, 8], strides = [1, 1, 1]} : vector<16x16x8xf32> to vector<16x1x8xf32>
    %73 = vector.shape_cast %72 : vector<16x1x8xf32> to vector<16x8xf32>
    %74 = vector.extract_strided_slice %60 {offsets = [0, 6, 0], sizes = [16, 1, 8], strides = [1, 1, 1]} : vector<16x16x8xf32> to vector<16x1x8xf32>
    %75 = vector.shape_cast %74 : vector<16x1x8xf32> to vector<16x8xf32>
    %76 = vector.extract_strided_slice %60 {offsets = [0, 7, 0], sizes = [16, 1, 8], strides = [1, 1, 1]} : vector<16x16x8xf32> to vector<16x1x8xf32>
    %77 = vector.shape_cast %76 : vector<16x1x8xf32> to vector<16x8xf32>
    %78 = vector.extract_strided_slice %60 {offsets = [0, 8, 0], sizes = [16, 1, 8], strides = [1, 1, 1]} : vector<16x16x8xf32> to vector<16x1x8xf32>
    %79 = vector.shape_cast %78 : vector<16x1x8xf32> to vector<16x8xf32>
    %80 = vector.extract_strided_slice %60 {offsets = [0, 9, 0], sizes = [16, 1, 8], strides = [1, 1, 1]} : vector<16x16x8xf32> to vector<16x1x8xf32>
    %81 = vector.shape_cast %80 : vector<16x1x8xf32> to vector<16x8xf32>
    %82 = vector.extract_strided_slice %60 {offsets = [0, 10, 0], sizes = [16, 1, 8], strides = [1, 1, 1]} : vector<16x16x8xf32> to vector<16x1x8xf32>
    %83 = vector.shape_cast %82 : vector<16x1x8xf32> to vector<16x8xf32>
    %84 = vector.extract_strided_slice %60 {offsets = [0, 11, 0], sizes = [16, 1, 8], strides = [1, 1, 1]} : vector<16x16x8xf32> to vector<16x1x8xf32>
    %85 = vector.shape_cast %84 : vector<16x1x8xf32> to vector<16x8xf32>
    %86 = vector.extract_strided_slice %60 {offsets = [0, 12, 0], sizes = [16, 1, 8], strides = [1, 1, 1]} : vector<16x16x8xf32> to vector<16x1x8xf32>
    %87 = vector.shape_cast %86 : vector<16x1x8xf32> to vector<16x8xf32>
    %88 = vector.extract_strided_slice %60 {offsets = [0, 13, 0], sizes = [16, 1, 8], strides = [1, 1, 1]} : vector<16x16x8xf32> to vector<16x1x8xf32>
    %89 = vector.shape_cast %88 : vector<16x1x8xf32> to vector<16x8xf32>
    %90 = vector.extract_strided_slice %60 {offsets = [0, 14, 0], sizes = [16, 1, 8], strides = [1, 1, 1]} : vector<16x16x8xf32> to vector<16x1x8xf32>
    %91 = vector.shape_cast %90 : vector<16x1x8xf32> to vector<16x8xf32>
    %92 = vector.extract_strided_slice %60 {offsets = [0, 15, 0], sizes = [16, 1, 8], strides = [1, 1, 1]} : vector<16x16x8xf32> to vector<16x1x8xf32>
    %93 = vector.shape_cast %92 : vector<16x1x8xf32> to vector<16x8xf32>
    %94 = tpu.concatenate %63, %65, %67, %69, %71, %73, %75, %77, %79, %81, %83, %85, %87, %89, %91, %93 in 1 : vector<16x8xf32>, vector<16x8xf32>, vector<16x8xf32>, vector<16x8xf32>, vector<16x8xf32>, vector<16x8xf32>, vector<16x8xf32>, vector<16x8xf32>, vector<16x8xf32>, vector<16x8xf32>, vector<16x8xf32>, vector<16x8xf32>, vector<16x8xf32>, vector<16x8xf32>, vector<16x8xf32>, vector<16x8xf32> -> vector<16x128xf32>
    %95 = vector.extract_strided_slice %61 {offsets = [0, 0, 0], sizes = [16, 1, 8], strides = [1, 1, 1]} : vector<16x16x8xf32> to vector<16x1x8xf32>
    %96 = vector.shape_cast %95 : vector<16x1x8xf32> to vector<16x8xf32>
    %97 = vector.extract_strided_slice %61 {offsets = [0, 1, 0], sizes = [16, 1, 8], strides = [1, 1, 1]} : vector<16x16x8xf32> to vector<16x1x8xf32>
    %98 = vector.shape_cast %97 : vector<16x1x8xf32> to vector<16x8xf32>
    %99 = vector.extract_strided_slice %61 {offsets = [0, 2, 0], sizes = [16, 1, 8], strides = [1, 1, 1]} : vector<16x16x8xf32> to vector<16x1x8xf32>
    %100 = vector.shape_cast %99 : vector<16x1x8xf32> to vector<16x8xf32>
    %101 = vector.extract_strided_slice %61 {offsets = [0, 3, 0], sizes = [16, 1, 8], strides = [1, 1, 1]} : vector<16x16x8xf32> to vector<16x1x8xf32>
    %102 = vector.shape_cast %101 : vector<16x1x8xf32> to vector<16x8xf32>
    %103 = vector.extract_strided_slice %61 {offsets = [0, 4, 0], sizes = [16, 1, 8], strides = [1, 1, 1]} : vector<16x16x8xf32> to vector<16x1x8xf32>
    %104 = vector.shape_cast %103 : vector<16x1x8xf32> to vector<16x8xf32>
    %105 = vector.extract_strided_slice %61 {offsets = [0, 5, 0], sizes = [16, 1, 8], strides = [1, 1, 1]} : vector<16x16x8xf32> to vector<16x1x8xf32>
    %106 = vector.shape_cast %105 : vector<16x1x8xf32> to vector<16x8xf32>
    %107 = vector.extract_strided_slice %61 {offsets = [0, 6, 0], sizes = [16, 1, 8], strides = [1, 1, 1]} : vector<16x16x8xf32> to vector<16x1x8xf32>
    %108 = vector.shape_cast %107 : vector<16x1x8xf32> to vector<16x8xf32>
    %109 = vector.extract_strided_slice %61 {offsets = [0, 7, 0], sizes = [16, 1, 8], strides = [1, 1, 1]} : vector<16x16x8xf32> to vector<16x1x8xf32>
    %110 = vector.shape_cast %109 : vector<16x1x8xf32> to vector<16x8xf32>
    %111 = vector.extract_strided_slice %61 {offsets = [0, 8, 0], sizes = [16, 1, 8], strides = [1, 1, 1]} : vector<16x16x8xf32> to vector<16x1x8xf32>
    %112 = vector.shape_cast %111 : vector<16x1x8xf32> to vector<16x8xf32>
    %113 = vector.extract_strided_slice %61 {offsets = [0, 9, 0], sizes = [16, 1, 8], strides = [1, 1, 1]} : vector<16x16x8xf32> to vector<16x1x8xf32>
    %114 = vector.shape_cast %113 : vector<16x1x8xf32> to vector<16x8xf32>
    %115 = vector.extract_strided_slice %61 {offsets = [0, 10, 0], sizes = [16, 1, 8], strides = [1, 1, 1]} : vector<16x16x8xf32> to vector<16x1x8xf32>
    %116 = vector.shape_cast %115 : vector<16x1x8xf32> to vector<16x8xf32>
    %117 = vector.extract_strided_slice %61 {offsets = [0, 11, 0], sizes = [16, 1, 8], strides = [1, 1, 1]} : vector<16x16x8xf32> to vector<16x1x8xf32>
    %118 = vector.shape_cast %117 : vector<16x1x8xf32> to vector<16x8xf32>
    %119 = vector.extract_strided_slice %61 {offsets = [0, 12, 0], sizes = [16, 1, 8], strides = [1, 1, 1]} : vector<16x16x8xf32> to vector<16x1x8xf32>
    %120 = vector.shape_cast %119 : vector<16x1x8xf32> to vector<16x8xf32>
    %121 = vector.extract_strided_slice %61 {offsets = [0, 13, 0], sizes = [16, 1, 8], strides = [1, 1, 1]} : vector<16x16x8xf32> to vector<16x1x8xf32>
    %122 = vector.shape_cast %121 : vector<16x1x8xf32> to vector<16x8xf32>
    %123 = vector.extract_strided_slice %61 {offsets = [0, 14, 0], sizes = [16, 1, 8], strides = [1, 1, 1]} : vector<16x16x8xf32> to vector<16x1x8xf32>
    %124 = vector.shape_cast %123 : vector<16x1x8xf32> to vector<16x8xf32>
    %125 = vector.extract_strided_slice %61 {offsets = [0, 15, 0], sizes = [16, 1, 8], strides = [1, 1, 1]} : vector<16x16x8xf32> to vector<16x1x8xf32>
    %126 = vector.shape_cast %125 : vector<16x1x8xf32> to vector<16x8xf32>
    %127 = tpu.concatenate %96, %98, %100, %102, %104, %106, %108, %110, %112, %114, %116, %118, %120, %122, %124, %126 in 1 : vector<16x8xf32>, vector<16x8xf32>, vector<16x8xf32>, vector<16x8xf32>, vector<16x8xf32>, vector<16x8xf32>, vector<16x8xf32>, vector<16x8xf32>, vector<16x8xf32>, vector<16x8xf32>, vector<16x8xf32>, vector<16x8xf32>, vector<16x8xf32>, vector<16x8xf32>, vector<16x8xf32>, vector<16x8xf32> -> vector<16x128xf32>
    %c0_24 = arith.constant 0 : index
    %c0_25 = arith.constant 0 : index
    %c0_26 = arith.constant 0 : index
    %c0_27 = arith.constant 0 : index
    %128 = vector.load %arg7[%c0_24, %c0_25, %c0_26, %c0_27] : memref<1x2x16x128xf32, #tpu.memory_space<vmem>>, vector<1x1x16x128xf32>
    %129 = vector.shape_cast %128 : vector<1x1x16x128xf32> to vector<16x128xf32>
    %130 = vector.shape_cast %94 : vector<16x128xf32> to vector<1x1x16x128xf32>
    tpu.vector_store %arg7[%c0_24, %c0_25, %c0_26, %c0_27], %130 {strides = array<i32>} : memref<1x2x16x128xf32, #tpu.memory_space<vmem>>, vector<1x1x16x128xf32>,
    %c0_28 = arith.constant 0 : index
    %c1 = arith.constant 1 : index
    %c0_29 = arith.constant 0 : index
    %c0_30 = arith.constant 0 : index
    %131 = vector.load %arg7[%c0_28, %c1, %c0_29, %c0_30] : memref<1x2x16x128xf32, #tpu.memory_space<vmem>>, vector<1x1x16x128xf32>
    %132 = vector.shape_cast %131 : vector<1x1x16x128xf32> to vector<16x128xf32>
    %133 = vector.shape_cast %127 : vector<16x128xf32> to vector<1x1x16x128xf32>
    tpu.vector_store %arg7[%c0_28, %c1, %c0_29, %c0_30], %133 {strides = array<i32>} : memref<1x2x16x128xf32, #tpu.memory_space<vmem>>, vector<1x1x16x128xf32>,
    return
  }
  func.func @transform_0(%arg0: i32) -> (i32, i32, i32, i32) {
    %c0_i32 = arith.constant 0 : i32
    %c0_i32_0 = arith.constant 0 : i32
    %c0_i32_1 = arith.constant 0 : i32
    %c0_i32_2 = arith.constant 0 : i32
    return %arg0, %c0_i32, %c0_i32_0, %c0_i32_1 : i32, i32, i32, i32
  }
  func.func @transform_1(%arg0: i32) -> (i32, i32) {
    %c0_i32 = arith.constant 0 : i32
    %c0_i32_0 = arith.constant 0 : i32
    %c0_i32_1 = arith.constant 0 : i32
    return %c0_i32, %c0_i32_0 : i32, i32
  }
  func.func @transform_2(%arg0: i32) -> (i32, i32) {
    %c0_i32 = arith.constant 0 : i32
    %c0_i32_0 = arith.constant 0 : i32
    %c0_i32_1 = arith.constant 0 : i32
    return %c0_i32, %c0_i32_0 : i32, i32
  }
  func.func @transform_3(%arg0: i32) -> (i32, i32) {
    %c0_i32 = arith.constant 0 : i32
    %c0_i32_0 = arith.constant 0 : i32
    %c0_i32_1 = arith.constant 0 : i32
    return %c0_i32, %c0_i32_0 : i32, i32
  }
  func.func @transform_4(%arg0: i32) -> (i32, i32) {
    %c0_i32 = arith.constant 0 : i32
    %c0_i32_0 = arith.constant 0 : i32
    %c0_i32_1 = arith.constant 0 : i32
    return %c0_i32, %c0_i32_0 : i32, i32
  }
  func.func @transform_5(%arg0: i32) -> (i32, i32) {
    %c0_i32 = arith.constant 0 : i32
    %c0_i32_0 = arith.constant 0 : i32
    %c0_i32_1 = arith.constant 0 : i32
    return %c0_i32, %c0_i32_0 : i32, i32
  }
  func.func @transform_6(%arg0: i32) -> (i32, i32, i32, i32) {
    %c0_i32 = arith.constant 0 : i32
    %c0_i32_0 = arith.constant 0 : i32
    %c0_i32_1 = arith.constant 0 : i32
    %c0_i32_2 = arith.constant 0 : i32
    return %arg0, %c0_i32, %c0_i32_0, %c0_i32_1 : i32, i32, i32, i32
  }
}

</mosaic_0001>

<bundles_post_ra>
// kernel: decoder_block.1
= control target key start
LH: loop header
LB: loop body
LE: loop exit
PB: predicated region body
PF: predicated region fallthrough
CT: control target
= control target key end

     0   :  { %s4960_s21 = smov 0   ;;  %s8601_s0 = inlined_call_operand.vmem [shape: f32[2,16,16,4], index: 0, kind: input, shape index: {}]   ;;  %s8602_s1 = inlined_call_operand.vmem [shape: f32[36,8], index: 1, kind: input, shape index: {}]   ;;  %s8603_s2 = inlined_call_operand.vmem [shape: f32[1,8], index: 2, kind: input, shape index: {}]   ;;  %s8604_s3 = inlined_call_operand.vmem [shape: f32[32,8], index: 3, kind: input, shape index: {}]   ;;  %s8605_s4 = inlined_call_operand.vmem [shape: f32[32,8], index: 4, kind: input, shape index: {}]   ;;  %s8606_s5 = inlined_call_operand.vmem [shape: f32[1,8], index: 5, kind: input, shape index: {}]   ;;  %s8607_s6 = inlined_call_operand.vmem [shape: f32[2,2,16,128], index: 6, kind: output, shape index: {}]  }
   0x1 LB: > { %s4442_s22 = sadd.s32 4294967295, %s4903_s21   ;;  %p4446_p0 = scmp.ge.s32.totalorder %s4903_s21, 1  ;;  %s4903_s21 = sphi %s4960_s21, %s16_s21  }
   0x2   : > { %p212_p1 = scmp.lt.s32.totalorder %s4903_s21, 3 }
   0x4   : > { %p213_p2 = pnand %p4446_p0, %p212_p1 }
   0x6   : > { %216 = sbr.rel (%p213_p2) target bundleno = 1494 (0x5d6), region = 44 }
   0xb   : > { %vm317_vm0 = vcmask 1040384   ;;  %p242_p3 = scmp.lt.s32.totalorder %s4442_s22, 1  ;;  %v8608_v0 = vmov 0.0   ;;  %vm483_vm1 = vcmask 1046528   ;;  %s4906_s27 = smov 4   ;;  %vm564_vm2 = vcmask 1045504  }
   0xc   : > { %v4969_v1 = vrot.slane %v8608_v0, 7  ;;  %s4907_s28 = smov 8   ;;  %s4908_s29 = smov 12   ;;  %vm1798_vm3 = vcmask 1043456   ;;  %vm1425_vm4 = vcmask 31744   ;;  %vm1491_vm5 = vcmask 97280  }
   0xd   : > { %s8924_s22 = smov (!%p242_p3, %s4442_s22), 1  ;;  %s4909_s30 = smov 16   ;;  %vm8712_vm6 = vcmask 64512   ;;  %vm1524_vm7 = vcmask 130048   ;;  %vm1557_vm8 = vcmask 162816   ;;  %vm1590_vm9 = vcmask 195584  }
   0xe   : > { %v4975_v2 = vsel %vm317_vm0, 0.0, %v4969_v1  ;;  %v4979_v3 = vsel %vm317_vm0, %v4969_v1, 0.0  ;;  %v485_v4 = vrot.slane %v4969_v1, 1  ;;  %s4554_s23 = sshll.u32 %s8924_s22, 8  ;;  %s4910_s7 = smov 20   ;;  %vm1623_vm10 = vcmask 228352  }
   0xf   : > { %8714 = vst [vmem:[#allocation2_spill] sm:$0xff] %v4975_v2  ;;  %v484_v5 = vrot.slane %v4975_v2, 1  ;;  %v487_v6 = vrot.slane %v4979_v3, 1  ;;  %s4988_s26 = scalar_lea.vmem %s8601_s0, %s4554_s23  ;;  %s4911_s12 = smov 24   ;;  %vm1656_vm11 = vcmask 261120   ;;  %vm1701_vm12 = vcmask 293888  }
  0x10   : > { %v252_v9 = vld [vmem:[%s4988_s26] sm:$0xff]  ;;  %v253_v10 = vld [vmem:[%s4988_s26 + $0x8] sm:$0xff]  ;;  %v254_v11 = vld [vmem:[%s4988_s26 + $0x10] sm:$0xff]  ;;  %s4912_s17 = smov 28   ;;  %s4913_s20 = smov 32   ;;  %vm3177_vm13 = vcmask 1041409  }
  0x11   : > { %v486_v7 = vsel %vm483_vm1, %v484_v5, %v485_v4  ;;  %v488_v8 = vsel %vm483_vm1, %v485_v4, %v487_v6  ;;  %v320_v13 = vrot.slane %v252_v9, 7  ;;  %v321_v14 = vrot.slane %v253_v10, 7  ;;  %v255_v15 = vld [vmem:[%s4988_s26 + $0x18] sm:$0xff]  ;;  %v256_v16 = vld [vmem:[%s4988_s26 + $0x20] sm:$0xff]  ;;  %v257_v17 = vld [vmem:[%s4988_s26 + $0x28] sm:$0xff]  ;;  %s4914_s25 = smov 56  }
  0x12   : > { %v4995_v12 = vpack.i.bf16 %v488_v8, %v486_v7  ;;  %v323_v18 = vrot.slane %v254_v11, 7  ;;  %v324_v19 = vrot.slane %v255_v15, 7  ;;  %v326_v20 = vrot.slane %v256_v16, 7  ;;  %v258_v22 = vld [vmem:[%s4988_s26 + $0x30] sm:$0xff]  ;;  %v259_v31 = vld [vmem:[%s4988_s26 + $0x38] sm:$0xff]  ;;  %v260_v40 = vld [vmem:[%s4988_s26 + $0x40] sm:$0xff] }
  0x13   : > { %v327_v21 = vrot.slane %v257_v17, 7  ;;  %v5004_v23 = vsel %vm317_vm0, %v320_v13, %v321_v14  ;;  %v5007_v24 = vsel %vm317_vm0, %v321_v14, 0.0  ;;  %v5010_v25 = vsel %vm317_vm0, 0.0, %v320_v13  ;;  %v261_v49 = vld [vmem:[%s4988_s26 + $0x48] sm:$0xff]  ;;  %v262_v50 = vld [vmem:[%s4988_s26 + $0x50] sm:$0xff]  ;;  %v263_v55 = vld [vmem:[%s4988_s26 + $0x58] sm:$0xff] }
  0x14   : > { %8715 = vst [vmem:[#allocation3_spill] sm:$0xff] %v4995_v12  ;;  %4872 = vrot.lane.b32.xlu0 %v4995_v12, %s4906_s27  ;;  %v329_v26 = vrot.slane %v258_v22, 7  ;;  %v490_v27 = vrot.slane %v5004_v23, 1  ;;  %v492_v28 = vrot.slane %v5007_v24, 1  ;;  %v489_v29 = vrot.slane %v5010_v25, 1  ;;  %v264_v5 = vld [vmem:[%s4988_s26 + $0x60] sm:$0xff] }
  0x15   : > { %v5016_v30 = vsel %vm317_vm0, %v323_v18, %v324_v19  ;;  %v5020_v32 = vsel %vm317_vm0, 0.0, %v323_v18  ;;  %v5024_v34 = vsel %vm317_vm0, %v324_v19, 0.0  ;;  %v5027_v35 = vsel %vm317_vm0, %v326_v20, %v327_v21  ;;  %v265_v6 = vld [vmem:[%s4988_s26 + $0x68] sm:$0xff]  ;;  %v274_v12 = vld [vmem:[%s4988_s26 + $0xb0] sm:$0xff]  ;;  %s4919_s8 = smov 80   ;;  %s4920_s9 = smov 88  }
  0x16   : > { %v495_v33 = vrot.slane %v5016_v30, 1  ;;  %v5030_v36 = vsel %vm483_vm1, %v490_v27, %v492_v28  ;;  %v5033_v37 = vsel %vm483_vm1, %v489_v29, %v490_v27  ;;  %v494_v38 = vrot.slane %v5020_v32, 1  ;;  %s4921_s10 = smov 96  }
  0x17   : > { %v497_v39 = vrot.slane %v5024_v34, 1  ;;  %663 = vrot.lane.b32.xlu1 %v5030_v36, %s4906_s27  ;;  %v5043_v41 = vsel %vm317_vm0, 0.0, %v326_v20  ;;  %v500_v42 = vrot.slane %v5027_v35, 1  ;;  %v5047_v43 = vsel %vm317_vm0, %v327_v21, 0.0  ;;  %v266_v20 = vld [vmem:[%s4988_s26 + $0x70] sm:$0xff]  ;;  %v267_v21 = vld [vmem:[%s4988_s26 + $0x78] sm:$0xff] }
  0x18   : > { %661 = vrot.lane.b32.xlu0 %v5033_v37, %s4906_s27  ;;  %v330_v44 = vrot.slane %v259_v31, 7  ;;  %v5050_v45 = vsel %vm483_vm1, %v494_v38, %v495_v33  ;;  %v499_v47 = vrot.slane %v5043_v41, 1  ;;  %v502_v48 = vrot.slane %v5047_v43, 1 }
  0x19   : > { %v5053_v46 = vsel %vm483_vm1, %v495_v33, %v497_v39  ;;  %v5063_v52 = vsel %vm317_vm0, 0.0, %v329_v26  ;;  %v332_v54 = vrot.slane %v260_v40, 7  ;;  %v333_v58 = vrot.slane %v261_v49, 7  ;;  %v268_v40 = vld [vmem:[%s4988_s26 + $0x80] sm:$0xff] }
  0x1a   : > { %v5060_v51 = vsel %vm317_vm0, %v329_v26, %v330_v44  ;;  %v5066_v53 = vsel %vm317_vm0, %v330_v44, 0.0  ;;  %v5070_v56 = vsel %vm483_vm1, %v499_v47, %v500_v42  ;;  %v5077_v57 = vsel %vm483_vm1, %v500_v42, %v502_v48  ;;  %v269_v42 = vld [vmem:[%s4988_s26 + $0x88] sm:$0xff] }
  0x1b   : > { %665 = vrot.lane.b32.xlu1 %v5050_v45, %s4906_s27  ;;  %v5080_v59 = vsel %vm317_vm0, 0.0, %v332_v54  ;;  %v335_v60 = vrot.slane %v262_v50, 7  ;;  %v504_v61 = vrot.slane %v5063_v52, 1  ;;  %v505_v62 = vrot.slane %v5060_v51, 1 }
  0x1c   : > { %667 = vrot.lane.b32.xlu0 %v5053_v46, %s4906_s27  ;;  %v507_v63 = vrot.slane %v5066_v53, 1  ;;  %v336_v4 = vrot.slane %v263_v55, 7  ;;  %v5088_v7 = vsel %vm317_vm0, %v332_v54, %v333_v58  ;;  %v5091_v8 = vsel %vm317_vm0, %v333_v58, 0.0  ;;  %v270_v55 = vld [vmem:[%s4988_s26 + $0x90] sm:$0xff] }
  0x1d   : > { %v509_v9 = vrot.slane %v5080_v59, 1  ;;  %v510_v10 = vrot.slane %v5088_v7, 1  ;;  %v5100_v11 = vsel %vm317_vm0, 0.0, %v335_v60  ;;  %v338_v13 = vrot.slane %v264_v5, 7 }
  0x1e   : > { %8716 = vst [vmem:[#allocation4_spill] sm:$0xff] %v5100_v11  ;;  %v339_v14 = vrot.slane %v265_v6, 7  ;;  %v5103_v15 = vsel %vm483_vm1, %v504_v61, %v505_v62  ;;  %v5106_v16 = vsel %vm483_vm1, %v505_v62, %v507_v63  ;;  %v512_v17 = vrot.slane %v5091_v8, 1 }
  0x1f   : > { %669 = vrot.lane.b32.xlu1 %v5070_v56, %s4906_s27  ;;  %v5110_v18 = vsel %vm317_vm0, %v335_v60, %v336_v4  ;;  %v5113_v19 = vsel %vm317_vm0, %v336_v4, 0.0  ;;  %v514_v22 = vrot.slane %v5100_v11, 1  ;;  %v5123_v26 = vsel %vm483_vm1, %v509_v9, %v510_v10  ;;  %v271_v4 = vld [vmem:[%s4988_s26 + $0x98] sm:$0xff] }
  0x20   : > { %671 = vrot.lane.b32.xlu0 %v5077_v57, %s4906_s27  ;;  %8717 = vst [vmem:[#allocation5_spill] sm:$0xff] %v5110_v18  ;;  %v515_v27 = vrot.slane %v5110_v18, 1  ;;  %v5127_v28 = vsel %vm317_vm0, %v338_v13, %v339_v14  ;;  %v5130_v29 = vsel %vm317_vm0, 0.0, %v338_v13  ;;  %v5133_v31 = vsel %vm483_vm1, %v510_v10, %v512_v17 }
  0x21   : > { %v517_v33 = vrot.slane %v5113_v19, 1  ;;  %v341_v38 = vrot.slane %v266_v20, 7  ;;  %v342_v39 = vrot.slane %v267_v21, 7  ;;  %v5139_v44 = vsel %vm317_vm0, %v339_v14, 0.0 }
  0x22   : > { %v519_v47 = vrot.slane %v5130_v29, 1  ;;  %v520_v48 = vrot.slane %v5127_v28, 1  ;;  %v5148_v49 = vsel %vm483_vm1, %v514_v22, %v515_v27  ;;  %v344_v50 = vrot.slane %v268_v40, 7 }
  0x23   : > { %673 = vrot.lane.b32.xlu1 %v5103_v15, %s4906_s27  ;;  %v345_v54 = vrot.slane %v269_v42, 7  ;;  %v5152_v58 = vsel %vm483_vm1, %v515_v27, %v517_v33  ;;  %v522_v60 = vrot.slane %v5139_v44, 1  ;;  %v5156_v61 = vsel %vm317_vm0, %v341_v38, %v342_v39  ;;  %v272_v27 = vld [vmem:[%s4988_s26 + $0xa0] sm:$0xff]  ;;  %v273_v33 = vld [vmem:[%s4988_s26 + $0xa8] sm:$0xff] }
  0x24   : > { %675 = vrot.lane.b32.xlu0 %v5106_v16, %s4906_s27  ;;  %v5159_v62 = vsel %vm317_vm0, 0.0, %v341_v38  ;;  %v5162_v63 = vsel %vm317_vm0, %v342_v39, 0.0  ;;  %v5166_v5 = vsel %vm483_vm1, %v519_v47, %v520_v48  ;;  %v347_v6 = vrot.slane %v270_v55, 7 }
  0x25   : > { %v524_v9 = vrot.slane %v5159_v62, 1  ;;  %v525_v10 = vrot.slane %v5156_v61, 1  ;;  %v5175_v13 = vsel %vm317_vm0, %v344_v50, %v345_v54  ;;  %v5178_v14 = vsel %vm317_vm0, 0.0, %v344_v50 }
  0x26   : > { %8718 = vst [vmem:[#allocation6_spill] sm:$0xff] %v5175_v13  ;;  %v5181_v17 = vsel %vm483_vm1, %v520_v48, %v522_v60  ;;  %v527_v20 = vrot.slane %v5162_v63, 1  ;;  %v5185_v21 = vsel %vm317_vm0, %v345_v54, 0.0  ;;  %v348_v22 = vrot.slane %v271_v4, 7 }
  0x27   : > { %677 = vrot.lane.b32.xlu1 %v5123_v26, %s4906_s27  ;;  %8719 = vst [vmem:[#allocation7_spill] sm:$0xff] %v5185_v21  ;;  %v566_v38 = vrot.slane %v4969_v1, 2  ;;  %v568_v39 = vrot.slane %v4979_v3, 2  ;;  %v529_v40 = vrot.slane %v5178_v14, 1  ;;  %v530_v42 = vrot.slane %v5175_v13, 1 }
  0x28   : > { %679 = vrot.lane.b32.xlu0 %v5133_v31, %s4906_s27  ;;  %v565_v47 = vrot.slane %v4975_v2, 2  ;;  %v5199_v48 = vsel %vm483_vm1, %v524_v9, %v525_v10  ;;  %v532_v50 = vrot.slane %v5185_v21, 1  ;;  %v5203_v54 = vsel %vm317_vm0, 0.0, %v347_v6  ;;  %v275_v9 = vld [vmem:[%s4988_s26 + $0xb8] sm:$0xff] }
  0x29   : > { %8720 = vst [vmem:[#allocation8_spill] sm:$0xff] %v5203_v54  ;;  %v350_v3 = vrot.slane %v272_v27, 7  ;;  %v5206_v55 = vsel %vm483_vm1, %v525_v10, %v527_v20  ;;  %v5209_v60 = vsel %vm317_vm0, %v347_v6, %v348_v22  ;;  %v5212_v4 = vsel %vm317_vm0, %v348_v22, 0.0 }
  0x2a   : > { %8721 = vst [vmem:[#allocation9_spill] sm:$0xff] %v5209_v60  ;;  %8722 = vst [vmem:[#allocation10_spill] sm:$0xff] %v5212_v4  ;;  %v351_v0 = vrot.slane %v273_v33, 7  ;;  %v5217_v13 = vsel %vm483_vm1, %v529_v40, %v530_v42  ;;  %v534_v21 = vrot.slane %v5203_v54, 1  ;;  %v567_v27 = vsel %vm564_vm2, %v565_v47, %v566_v38  ;;  %v276_v54 = vld [vmem:[%s4988_s26 + $0xc0] sm:$0xff] }
  0x2b   : > { %681 = vrot.lane.b32.xlu1 %v5148_v49, %s4906_s27  ;;  %8723 = vst [vmem:[#allocation11_spill] sm:$0xff] %v5217_v13  ;;  %v569_v10 = vsel %vm564_vm2, %v566_v38, %v568_v39  ;;  %v5227_v6 = vsel %vm483_vm1, %v530_v42, %v532_v50  ;;  %v535_v20 = vrot.slane %v5209_v60, 1  ;;  %v537_v22 = vrot.slane %v5212_v4, 1  ;;  %v277_v60 = vld [vmem:[%s4988_s26 + $0xc8] sm:$0xff] }
  0x2c   : > { %683 = vrot.lane.b32.xlu0 %v5152_v58, %s4906_s27  ;;  %8724 = vst [vmem:[#allocation12_spill] sm:$0xff] %v5227_v6  ;;  %v5232_v33 = vsel %vm317_vm0, 0.0, %v350_v3  ;;  %v5235_v40 = vsel %vm317_vm0, %v350_v3, %v351_v0  ;;  %v5238_v38 = vsel %vm317_vm0, %v351_v0, 0.0  ;;  %v353_v39 = vrot.slane %v274_v12, 7 }
  0x2d   : > { %8725 = vst [vmem:[#allocation13_spill] sm:$0xff] %v5232_v33  ;;  %8726 = vst [vmem:[#allocation14_spill] sm:$0xff] %v5235_v40  ;;  %v354_v47 = vrot.slane %v275_v9, 7  ;;  %v5241_v42 = vpack.i.bf16 %v569_v10, %v567_v27  ;;  %v539_v50 = vrot.slane %v5232_v33, 1  ;;  %v5250_v3 = vsel %vm483_vm1, %v534_v21, %v535_v20 }
  0x2e   : > { %8727 = vst [vmem:[#allocation15_spill] sm:$0xff] %v5238_v38  ;;  %8729 = vst [vmem:[#allocation17_spill] sm:$0xff] %v5250_v3  ;;  %v5253_v0 = vsel %vm483_vm1, %v535_v20, %v537_v22  ;;  %v540_v12 = vrot.slane %v5235_v40, 1  ;;  %v542_v9 = vrot.slane %v5238_v38, 1  ;;  %v5261_v10 = vsel %vm317_vm0, 0.0, %v353_v39  ;;  %v279_v20 = vld [vmem:[%s4988_s26 + $0xd8] sm:$0xff] }
  0x2f   : > { %685 = vrot.lane.b32.xlu1 %v5166_v5, %s4906_s27  ;;  %8728 = vst [vmem:[#allocation16_spill] sm:$0xff] %v5241_v42  ;;  %8730 = vst [vmem:[#allocation18_spill] sm:$0xff] %v5253_v0  ;;  %v5258_v27 = vsel %vm317_vm0, %v353_v39, %v354_v47  ;;  %v5264_v33 = vsel %vm317_vm0, %v354_v47, 0.0  ;;  %v356_v4 = vrot.slane %v276_v54, 7  ;;  %v357_v21 = vrot.slane %v277_v60, 7 }
  0x30   : > { %687 = vrot.lane.b32.xlu0 %v5181_v17, %s4906_s27  ;;  %8731 = vst [vmem:[#allocation19_spill] sm:$0xff] %v5258_v27  ;;  %8732 = vst [vmem:[#allocation20_spill] sm:$0xff] %v5261_v10  ;;  %v5273_v22 = vsel %vm483_vm1, %v539_v50, %v540_v12  ;;  %v544_v39 = vrot.slane %v5261_v10, 1  ;;  %v545_v38 = vrot.slane %v5258_v27, 1  ;;  %v547_v47 = vrot.slane %v5264_v33, 1  ;;  %v281_v10 = vld [vmem:[%s4988_s26 + $0xe8] sm:$0xff] }
  0x31   : > { %8733 = vst [vmem:[#allocation21_spill] sm:$0xff] %v5264_v33  ;;  %v5279_v54 = vsel %vm483_vm1, %v540_v12, %v542_v9  ;;  %v5282_v60 = vsel %vm317_vm0, 0.0, %v356_v4  ;;  %v5289_v50 = vsel %vm317_vm0, %v357_v21, 0.0  ;;  %vm3180_vm14 = vcmask 1042434  }
  0x32   : > { %8734 = vst [vmem:[#allocation22_spill] sm:$0xff] %v5279_v54  ;;  %8735 = vst [vmem:[#allocation23_spill] sm:$0xff] %v5282_v60  ;;  %v5297_v12 = vsel %vm483_vm1, %v544_v39, %v545_v38  ;;  %v549_v9 = vrot.slane %v5282_v60, 1  ;;  %v363_v39 = vrot.slane %v281_v10, 7  ;;  %vm3183_vm15 = vcmask 1043459  }
  0x33   : > { %689 = vrot.lane.b32.xlu1 %v5199_v48, %s4906_s27  ;;  %8737 = vst [vmem:[#allocation25_spill] sm:$0xff] %v5289_v50  ;;  %8738 = vst [vmem:[#allocation26_spill] sm:$0xff] %v5297_v12 }
  0x34   : > { %691 = vrot.lane.b32.xlu0 %v5206_v55, %s4906_s27 }
  0x37   : > { %693 = vrot.lane.b32.xlu1 %v5217_v13, %s4906_s27  ;;  %v280_v13 = vld [vmem:[%s4988_s26 + $0xe0] sm:$0xff] }
  0x38   : > { %695 = vrot.lane.b32.xlu0 %v5227_v6, %s4906_s27  ;;  %v278_v6 = vld [vmem:[%s4988_s26 + $0xd0] sm:$0xff] }
  0x39   : > { %v359_v40 = vrot.slane %v278_v6, 7  ;;  %v5300_v6 = vsel %vm483_vm1, %v545_v38, %v547_v47 }
  0x3a   : > { %8739 = vst [vmem:[#allocation27_spill] sm:$0xff] %v5300_v6 }
  0x3b   : > { %697 = vrot.lane.b32.xlu1 %v5250_v3, %s4906_s27  ;;  %v360_v3 = vrot.slane %v279_v20, 7  ;;  %v5309_v27 = vsel %vm317_vm0, 0.0, %v359_v40 }
  0x3c   : > { %699 = vrot.lane.b32.xlu0 %v5253_v0, %s4906_s27  ;;  %v5286_v0 = vsel %vm317_vm0, %v356_v4, %v357_v21  ;;  %v362_v4 = vrot.slane %v280_v13, 7  ;;  %v552_v21 = vrot.slane %v5289_v50, 1  ;;  %8741 = vst [vmem:[#allocation29_spill] sm:$0xff] %v5309_v27  ;;  %v554_v13 = vrot.slane %v5309_v27, 1 }
  0x3d   : > { %8736 = vst [vmem:[#allocation24_spill] sm:$0xff] %v5286_v0  ;;  %v550_v20 = vrot.slane %v5286_v0, 1  ;;  %v5306_v33 = vsel %vm317_vm0, %v359_v40, %v360_v3  ;;  %v5334_v0 = vsel %vm317_vm0, %v363_v39, 0.0 }
  0x3e   : > { %8740 = vst [vmem:[#allocation28_spill] sm:$0xff] %v5306_v33  ;;  %v555_v38 = vrot.slane %v5306_v33, 1  ;;  %v5328_v10 = vsel %vm317_vm0, 0.0, %v362_v4  ;;  %v5331_v50 = vsel %vm317_vm0, %v362_v4, %v363_v39  ;;  %8747 = vst [vmem:[#allocation35_spill] sm:$0xff] %v5334_v0 }
  0x3f   : > { %701 = vrot.lane.b32.xlu1 %v5273_v22, %s4906_s27  ;;  %v5321_v47 = vsel %vm483_vm1, %v549_v9, %v550_v20  ;;  %v5324_v40 = vsel %vm483_vm1, %v550_v20, %v552_v21  ;;  %8745 = vst [vmem:[#allocation33_spill] sm:$0xff] %v5328_v10  ;;  %8746 = vst [vmem:[#allocation34_spill] sm:$0xff] %v5331_v50  ;;  %v559_v9 = vrot.slane %v5328_v10, 1  ;;  %v560_v4 = vrot.slane %v5331_v50, 1 }
  0x40   : > { %703 = vrot.lane.b32.xlu0 %v5279_v54, %s4906_s27  ;;  %v5312_v54 = vsel %vm317_vm0, %v360_v3, 0.0  ;;  %8743 = vst [vmem:[#allocation31_spill] sm:$0xff] %v5321_v47  ;;  %8744 = vst [vmem:[#allocation32_spill] sm:$0xff] %v5324_v40  ;;  %v5342_v20 = vsel %vm483_vm1, %v554_v13, %v555_v38  ;;  %v570_v13 = vrot.slane %v5010_v25, 2  ;;  %v576_v50 = vrot.slane %v5016_v30, 2 }
  0x41   : > { %8742 = vst [vmem:[#allocation30_spill] sm:$0xff] %v5312_v54  ;;  %v557_v3 = vrot.slane %v5312_v54, 1  ;;  %8748 = vst [vmem:[#allocation36_spill] sm:$0xff] %v5342_v20  ;;  %v562_v54 = vrot.slane %v5334_v0, 1  ;;  %v5354_v39 = vsel %vm483_vm1, %v559_v9, %v560_v4  ;;  %v573_v0 = vrot.slane %v5007_v24, 2 }
  0x42   : > { %8750 = vst [vmem:[#allocation38_spill] sm:$0xff] %v5354_v39  ;;  %v575_v9 = vrot.slane %v5020_v32, 2  ;;  %v581_v24 = vrot.slane %v5027_v35, 2 }
  0x43   : > { %705 = vrot.lane.b32.xlu1 %v5297_v12, %s4906_s27  ;;  %v5345_v21 = vsel %vm483_vm1, %v555_v38, %v557_v3  ;;  %v5357_v10 = vsel %vm483_vm1, %v560_v4, %v562_v54  ;;  %v571_v38 = vrot.slane %v5004_v23, 2  ;;  %v578_v54 = vrot.slane %v5024_v34, 2 }
  0x44   : > { %707 = vrot.lane.b32.xlu0 %v5300_v6, %s4906_s27  ;;  %8749 = vst [vmem:[#allocation37_spill] sm:$0xff] %v5345_v21  ;;  %8751 = vst [vmem:[#allocation39_spill] sm:$0xff] %v5357_v10  ;;  %v583_v34 = vrot.slane %v5047_v43, 2  ;;  %v590_v43 = vrot.slane %v5080_v59, 2 }
  0x45   : > { %v572_v3 = vsel %vm564_vm2, %v570_v13, %v571_v38  ;;  %v574_v4 = vsel %vm564_vm2, %v571_v38, %v573_v0  ;;  %v580_v13 = vrot.slane %v5043_v41, 2  ;;  %v585_v0 = vrot.slane %v5063_v52, 2 }
  0x46   : > { %v586_v38 = vrot.slane %v5060_v51, 2 }
  0x47   : > { %709 = vrot.lane.b32.xlu1 %v5321_v47, %s4906_s27 }
  0x48   : > { %711 = vrot.lane.b32.xlu0 %v5324_v40, %s4906_s27 }
  0x4b   : > { %713 = vrot.lane.b32.xlu1 %v5342_v20, %s4906_s27 }
  0x4c   : > { %715 = vrot.lane.b32.xlu0 %v5345_v21, %s4906_s27  ;;  %v593_v21 = vrot.slane %v5091_v8, 2 }
  0x4f   : > { %717 = vrot.lane.b32.xlu1 %v5354_v39, %s4906_s27  ;;  %v5386_v39 = vsel %vm564_vm2, %v580_v13, %v581_v24  ;;  %v591_v13 = vrot.slane %v5088_v7, 2 }
  0x50   : > { %719 = vrot.lane.b32.xlu0 %v5357_v10, %s4906_s27  ;;  %v5375_v10 = vsel %vm564_vm2, %v575_v9, %v576_v50  ;;  %v588_v9 = vrot.slane %v5066_v53, 2  ;;  %s4916_s27 = smov 48  }
  0x51   : > { %v5422_v20 = vsel %vm564_vm2, %v591_v13, %v593_v21  ;;  %v1693_v21 = vld [vmem:[%s8602_s1 + $0x20] sm:$0xf] }
  0x52   : > { %v5410_v53 = vsel %vm564_vm2, %v586_v38, %v588_v9  ;;  %4665 = vmatprep.subr.msk.mxu0 %vm1798_vm3, %v1693_v21 }
  0x53   : > { %4877 = vrot.lane.b32.xlu1 %v5241_v42, %s4907_s28  ;;  %v5383_v42 = vsel %vm564_vm2, %v576_v50, %v578_v54  ;;  %v5397_v50 = vsel %vm564_vm2, %v581_v24, %v583_v34  ;;  %v5400_v54 = vsel %vm564_vm2, %v585_v0, %v586_v38  ;;  %v5413_v24 = vsel %vm564_vm2, %v590_v43, %v591_v13  ;;  %v1692_v38 = vld [vmem:[%s8602_s1 + $0x18] sm:$0xff] }
  0x54   : > { %757 = vrot.lane.b32.xlu0 %v572_v3, %s4907_s28  ;;  %v595_v34 = vrot.slane %v5100_v11, 2  ;;  %v8657_v0 = vrot.slane %v5110_v18, 2  ;;  %4666 = vmatpush3.msk.msra.mxu0 %vm1798_vm3, %v1693_v21  ;;  %vm3195_vm3 = vcmask 1047559  }
  0x55   : > { %4667 = vmatprep.subr.mxu0 %v1692_v38 }
  0x56   : > { %v5427_v8 = vsel %vm564_vm2, %v595_v34, %v8657_v0  ;;  %4668 = vmatpush3.msra.mxu0 %v1692_v38 }
  0x57   : > { %759 = vrot.lane.b32.xlu1 %v574_v4, %s4907_s28 }
  0x58   : > { %761 = vrot.lane.b32.xlu0 %v5375_v10, %s4907_s28 }
  0x5b   : > { %763 = vrot.lane.b32.xlu1 %v5383_v42, %s4907_s28 }
  0x5c   : > { %765 = vrot.lane.b32.xlu0 %v5386_v39, %s4907_s28 }
  0x5f   : > { %767 = vrot.lane.b32.xlu1 %v5397_v50, %s4907_s28 }
  0x60   : > { %769 = vrot.lane.b32.xlu0 %v5400_v54, %s4907_s28 }
  0x63   : > { %771 = vrot.lane.b32.xlu1 %v5410_v53, %s4907_s28 }
  0x64   : > { %773 = vrot.lane.b32.xlu0 %v5413_v24, %s4907_s28 }
  0x67   : > { %775 = vrot.lane.b32.xlu1 %v5422_v20, %s4907_s28 }
  0x68   : > { %777 = vrot.lane.b32.xlu0 %v5427_v8, %s4907_s28 }
  0x6b   : > { %849 = vrot.lane.b32.xlu1 %v5010_v25, %s4908_s29 }
  0x6c   : > { %851 = vrot.lane.b32.xlu0 %v5004_v23, %s4908_s29 }
  0x6f   : > { %945 = vrot.lane.b32.xlu1 %v5033_v37, %s4909_s30  ;;  %v1690_v37 = vld [vmem:[%s8602_s1 + $0x8] sm:$0xff] }
  0x70   : > { %947 = vrot.lane.b32.xlu0 %v5030_v36, %s4909_s30  ;;  %v1691_v36 = vld [vmem:[%s8602_s1 + $0x10] sm:$0xff] }
  0x71   : > { %4669 = vmatprep.subr.mxu0 %v1691_v36 }
  0x72   : > { %4670 = vmatpush3.msra.mxu0 %v1691_v36 }
  0x73   : > { %1041 = vrot.lane.b32.xlu1 %v572_v3, %s4910_s7  ;;  %4671 = vmatprep.subr.mxu0 %v1690_v37  ;;  %v1689_v3 = vld [vmem:[%s8602_s1] sm:$0xff] }
  0x74   : > { %1043 = vrot.lane.b32.xlu0 %v574_v4, %s4910_s7  ;;  %4672 = vmatpush3.msra.mxu0 %v1690_v37 }
  0x75   : > { %4673 = vmatprep.subr.mxu0 %v1689_v3 }
  0x76   : > { %4674 = vmatpush3.msra.mxu0 %v1689_v3 }
  0x77   : > { %1137 = vrot.lane.b32.xlu1 %v5020_v32, %s4911_s12 }
  0x78   : > { %853 = vrot.lane.b32.xlu0 %v5020_v32, %s4908_s29 }
  0x7b   : > { %1139 = vrot.lane.b32.xlu1 %v5016_v30, %s4911_s12 }
  0x7c   : > { %1233 = vrot.lane.b32.xlu0 %v5050_v45, %s4912_s17 }
  0x7f   : > { %855 = vrot.lane.b32.xlu1 %v5016_v30, %s4908_s29 }
  0x80   : > { %949 = vrot.lane.b32.xlu0 %v5050_v45, %s4909_s30 }
  0x83   : > { %1235 = vrot.lane.b32.xlu1 %v5053_v46, %s4912_s17 }
  0x84   : > { %1329 = vrot.lane.b32.xlu0 %v5375_v10, %s4913_s20 }
  0x86   : > { %v5474_v4 = vpop.permute.xlu0 %4872 }
  0x87   : > { %951 = vrot.lane.b32.xlu1 %v5053_v46, %s4909_s30 }
  0x88   : > { %1045 = vrot.lane.b32.xlu0 %v5375_v10, %s4910_s7 }
  0x89   : > { %v5480_v9 = vpop.permute.xlu1 %663 }
  0x8a   : > { %v5482_v45 = vpop.permute.xlu0 %661 }
  0x8b   : > { %1331 = vrot.lane.b32.xlu1 %v5383_v42, %s4913_s20 }
  0x8c   : > { %1047 = vrot.lane.b32.xlu0 %v5383_v42, %s4910_s7 }
  0x8d   : > { %v5488_v43 = vpop.permute.xlu1 %665 }
  0x8e   : > { %v5490_v13 = vpop.permute.xlu0 %667 }
  0x8f   : > { %1141 = vrot.lane.b32.xlu1 %v5043_v41, %s4911_s12 }
  0x90   : > { %857 = vrot.lane.b32.xlu0 %v5043_v41, %s4908_s29 }
  0x91   : > { %v5496_v46 = vpop.permute.xlu1 %669 }
  0x92   : > { %v5498_v10 = vpop.permute.xlu0 %671 }
  0x93   : > { %1143 = vrot.lane.b32.xlu1 %v5027_v35, %s4911_s12 }
  0x94   : > { %1237 = vrot.lane.b32.xlu0 %v5070_v56, %s4912_s17 }
  0x95   : > { %v5504_v42 = vpop.permute.xlu1 %673 }
  0x96   : > { %v5506_v34 = vpop.permute.xlu0 %675 }
  0x97   : > { %859 = vrot.lane.b32.xlu1 %v5027_v35, %s4908_s29 }
  0x98   : > { %953 = vrot.lane.b32.xlu0 %v5070_v56, %s4909_s30 }
  0x99   : > { %v5512_v21 = vpop.permute.xlu1 %677 }
  0x9a   : > { %v5514_v38 = vpop.permute.xlu0 %679 }
  0x9b   : > { %1239 = vrot.lane.b32.xlu1 %v5077_v57, %s4912_s17 }
  0x9c   : > { %1333 = vrot.lane.b32.xlu0 %v5386_v39, %s4913_s20 }
  0x9d   : > { %v5520_v36 = vpop.permute.xlu1 %681 }
  0x9e   : > { %8752 = vst [vmem:[#allocation40_spill] sm:$0xff] %v5520_v36  ;;  %v5522_v37 = vpop.permute.xlu0 %683 }
  0x9f   : > { %8753 = vst [vmem:[#allocation41_spill] sm:$0xff] %v5522_v37  ;;  %955 = vrot.lane.b32.xlu1 %v5077_v57, %s4909_s30 }
  0xa0   : > { %1049 = vrot.lane.b32.xlu0 %v5386_v39, %s4910_s7 }
  0xa1   : > { %v5528_v56 = vpop.permute.xlu1 %685 }
  0xa2   : > { %8754 = vst [vmem:[#allocation42_spill] sm:$0xff] %v5528_v56  ;;  %v5530_v3 = vpop.permute.xlu0 %687  ;;  %v598_v56 = vrot.slane %v5113_v19, 2 }
  0xa3   : > { %8755 = vst [vmem:[#allocation43_spill] sm:$0xff] %v5530_v3  ;;  %1335 = vrot.lane.b32.xlu1 %v5397_v50, %s4913_s20 }
  0xa4   : > { %1051 = vrot.lane.b32.xlu0 %v5397_v50, %s4910_s7 }
  0xa5   : > { %v5536_v0 = vpop.permute.xlu1 %689 }
  0xa6   : > { %8756 = vst [vmem:[#allocation44_spill] sm:$0xff] %v5536_v0  ;;  %v5538_v33 = vpop.permute.xlu0 %691 }
  0xa7   : > { %8757 = vst [vmem:[#allocation45_spill] sm:$0xff] %v5538_v33  ;;  %1145 = vrot.lane.b32.xlu1 %v5063_v52, %s4911_s12 }
  0xa8   : > { %861 = vrot.lane.b32.xlu0 %v5063_v52, %s4908_s29 }
  0xa9   : > { %v5544_v57 = vpop.permute.xlu1 %693 }
  0xaa   : > { %8758 = vst [vmem:[#allocation46_spill] sm:$0xff] %v5544_v57  ;;  %v5546_v39 = vpop.permute.xlu0 %695 }
  0xab   : > { %8759 = vst [vmem:[#allocation47_spill] sm:$0xff] %v5546_v39  ;;  %1147 = vrot.lane.b32.xlu1 %v5060_v51, %s4911_s12 }
  0xac   : > { %1241 = vrot.lane.b32.xlu0 %v5103_v15, %s4912_s17 }
  0xad   : > { %v5552_v50 = vpop.permute.xlu1 %697 }
  0xae   : > { %8760 = vst [vmem:[#allocation48_spill] sm:$0xff] %v5552_v50  ;;  %v5554_v0 = vpop.permute.xlu0 %699 }
  0xaf   : > { %8761 = vst [vmem:[#allocation49_spill] sm:$0xff] %v5554_v0  ;;  %863 = vrot.lane.b32.xlu1 %v5060_v51, %s4908_s29 }
  0xb0   : > { %957 = vrot.lane.b32.xlu0 %v5103_v15, %s4909_s30 }
  0xb1   : > { %v5560_v33 = vpop.permute.xlu1 %701 }
  0xb2   : > { %8762 = vst [vmem:[#allocation50_spill] sm:$0xff] %v5560_v33  ;;  %v5562_v57 = vpop.permute.xlu0 %703 }
  0xb3   : > { %8763 = vst [vmem:[#allocation51_spill] sm:$0xff] %v5562_v57  ;;  %1243 = vrot.lane.b32.xlu1 %v5106_v16, %s4912_s17 }
  0xb4   : > { %1337 = vrot.lane.b32.xlu0 %v5400_v54, %s4913_s20 }
  0xb5   : > { %v5568_v39 = vpop.permute.xlu1 %705 }
  0xb6   : > { %8764 = vst [vmem:[#allocation52_spill] sm:$0xff] %v5568_v39  ;;  %v5570_v50 = vpop.permute.xlu0 %707 }
  0xb7   : > { %8765 = vst [vmem:[#allocation53_spill] sm:$0xff] %v5570_v50  ;;  %959 = vrot.lane.b32.xlu1 %v5106_v16, %s4909_s30 }
  0xb8   : > { %1053 = vrot.lane.b32.xlu0 %v5400_v54, %s4910_s7 }
  0xb9   : > { %v5576_v15 = vpop.permute.xlu1 %709 }
  0xba   : > { %8766 = vst [vmem:[#allocation54_spill] sm:$0xff] %v5576_v15  ;;  %v5578_v33 = vpop.permute.xlu0 %711 }
  0xbb   : > { %8767 = vst [vmem:[#allocation55_spill] sm:$0xff] %v5578_v33  ;;  %1339 = vrot.lane.b32.xlu1 %v5410_v53, %s4913_s20 }
  0xbc   : > { %1055 = vrot.lane.b32.xlu0 %v5410_v53, %s4910_s7 }
  0xbd   : > { %v5584_v57 = vpop.permute.xlu1 %713 }
  0xbe   : > { %8768 = vst [vmem:[#allocation56_spill] sm:$0xff] %v5584_v57  ;;  %v5586_v39 = vpop.permute.xlu0 %715 }
  0xbf   : > { %8769 = vst [vmem:[#allocation57_spill] sm:$0xff] %v5586_v39  ;;  %1149 = vrot.lane.b32.xlu1 %v5080_v59, %s4911_s12 }
  0xc0   : > { %865 = vrot.lane.b32.xlu0 %v5080_v59, %s4908_s29 }
  0xc1   : > { %v5592_v16 = vpop.permute.xlu1 %717 }
  0xc2   : > { %8770 = vst [vmem:[#allocation58_spill] sm:$0xff] %v5592_v16  ;;  %v5594_v54 = vpop.permute.xlu0 %719 }
  0xc3   : > { %8771 = vst [vmem:[#allocation59_spill] sm:$0xff] %v5594_v54  ;;  %1151 = vrot.lane.b32.xlu1 %v5088_v7, %s4911_s12 }
  0xc4   : > { %1245 = vrot.lane.b32.xlu0 %v5123_v26, %s4912_s17 }
  0xc5   : > { %v5600_v53 = vpop.permute.xlu1 %4877 }
  0xc6   : > { %v5602_v57 = vpop.permute.xlu0 %757  ;;  %v4879_v19 = vunpack.i.l.bf16 %v5600_v53 }
  0xc7   : > { %867 = vrot.lane.b32.xlu1 %v5088_v7, %s4908_s29 }
  0xc8   : > { %961 = vrot.lane.b32.xlu0 %v5123_v26, %s4909_s30 }
  0xc9   : > { %v5608_v39 = vpop.permute.xlu1 %759 }
  0xca   : > { %v5610_v16 = vpop.permute.xlu0 %761 }
  0xcb   : > { %1247 = vrot.lane.b32.xlu1 %v5133_v31, %s4912_s17 }
  0xcc   : > { %1341 = vrot.lane.b32.xlu0 %v5413_v24, %s4913_s20 }
  0xcd   : > { %v5616_v54 = vpop.permute.xlu1 %763 }
  0xce   : > { %v5618_v33 = vpop.permute.xlu0 %765 }
  0xcf   : > { %963 = vrot.lane.b32.xlu1 %v5133_v31, %s4909_s30 }
  0xd0   : > { %1057 = vrot.lane.b32.xlu0 %v5413_v24, %s4910_s7 }
  0xd1   : > { %v5624_v26 = vpop.permute.xlu1 %767 }
  0xd2   : > { %v5626_v15 = vpop.permute.xlu0 %769 }
  0xd3   : > { %1343 = vrot.lane.b32.xlu1 %v5422_v20, %s4913_s20 }
  0xd4   : > { %1059 = vrot.lane.b32.xlu0 %v5422_v20, %s4910_s7 }
  0xd5   : > { %v5632_v50 = vpop.permute.xlu1 %771 }
  0xd6   : > { %v5634_v0 = vpop.permute.xlu0 %773 }
  0xd7   : > { %1153 = vrot.lane.b32.xlu1 %v5100_v11, %s4911_s12 }
  0xd8   : > { %869 = vrot.lane.b32.xlu0 %v5100_v11, %s4908_s29  ;;  %v4874_v11 = vunpack.i.l.bf16 %v5474_v4 }
  0xd9   : > { %v5640_v31 = vpop.permute.xlu1 %775 }
  0xda   : > { %8772 = vst [vmem:[#allocation60_spill] sm:$0xff] %v5640_v31  ;;  %v5642_v24 = vpop.permute.xlu0 %777 }
  0xdb   : > { %8773 = vst [vmem:[#allocation61_spill] sm:$0xff] %v5642_v24  ;;  %1155 = vrot.lane.b32.xlu1 %v5110_v18, %s4911_s12 }
  0xdc   : > { %1249 = vrot.lane.b32.xlu0 %v5148_v49, %s4912_s17 }
  0xdd   : > { %v850_v20 = vpop.permute.xlu1 %849 }
  0xde   : > { %v852_v27 = vpop.permute.xlu0 %851 }
  0xdf   : > { %871 = vrot.lane.b32.xlu1 %v5110_v18, %s4908_s29 }
  0xe0   : > { %965 = vrot.lane.b32.xlu0 %v5148_v49, %s4909_s30  ;;  %v8774_v49 = vrot.slane %v5110_v18, 2 }
  0xe1   : > { %v946_v3 = vpop.permute.xlu1 %945 }
  0xe2   : > { %v948_v40 = vpop.permute.xlu0 %947  ;;  %v599_v37 = vsel %vm564_vm2, %v8774_v49, %v598_v56 }
  0xe3   : > { %1251 = vrot.lane.b32.xlu1 %v5152_v58, %s4912_s17 }
  0xe4   : > { %1345 = vrot.lane.b32.xlu0 %v5427_v8, %s4913_s20 }
  0xe5   : > { %v1042_v47 = vpop.permute.xlu1 %1041 }
  0xe6   : > { %v1044_v60 = vpop.permute.xlu0 %1043 }
  0xe7   : > { %967 = vrot.lane.b32.xlu1 %v5152_v58, %s4909_s30 }
  0xe8   : > { %1061 = vrot.lane.b32.xlu0 %v5427_v8, %s4910_s7  ;;  %v1426_v8 = vsel %vm1425_vm4, %v4975_v2, %v4874_v11  ;;  %v4875_v11 = vunpack.i.h.bf16 %v5474_v4 }
  0xe9   : > { %v1138_v24 = vpop.permute.xlu1 %1137  ;;  %v1459_v56 = vsel %vm8712_vm6, %v1426_v8, %v4879_v19 }
  0xea   : > { %v5664_v6 = vpop.permute.xlu0 %853  ;;  %v1492_v49 = vsel %vm1491_vm5, %v1459_v56, %v850_v20 }
  0xeb   : > { %1347 = vrot.lane.b32.xlu1 %v599_v37, %s4913_s20  ;;  %v1525_v31 = vsel %vm1524_vm7, %v1492_v49, %v946_v3 }
  0xec   : > { %1063 = vrot.lane.b32.xlu0 %v599_v37, %s4910_s7  ;;  %v1558_v2 = vsel %vm1557_vm8, %v1525_v31, %v1042_v47  ;;  %v1427_v47 = vsel %vm1425_vm4, %v4969_v1, %v4875_v11 }
  0xed   : > { %v1140_v58 = vpop.permute.xlu1 %1139  ;;  %v1591_v20 = vsel %vm1590_vm9, %v1558_v2, %v1138_v24  ;;  %v600_v2 = vrot.slane %v5130_v29, 2 }
  0xee   : > { %v1234_v36 = vpop.permute.xlu0 %1233 }
  0xef   : > { %1157 = vrot.lane.b32.xlu1 %v5130_v29, %s4911_s12  ;;  %v1624_v19 = vsel %vm1623_vm10, %v1591_v20, %v1234_v36  ;;  %v601_v36 = vrot.slane %v5127_v28, 2 }
  0xf0   : > { %779 = vrot.lane.b32.xlu0 %v599_v37, %s4907_s28  ;;  %v4880_v37 = vunpack.i.h.bf16 %v5600_v53 }
  0xf1   : > { %v5677_v18 = vpop.permute.xlu1 %855  ;;  %v602_v20 = vsel %vm564_vm2, %v600_v2, %v601_v36 }
  0xf2   : > { %v950_v12 = vpop.permute.xlu0 %949  ;;  %v1460_v53 = vsel %vm8712_vm6, %v1427_v47, %v4880_v37  ;;  %v1428_v47 = vsel %vm1425_vm4, %v5010_v25, %v5482_v45 }
  0xf3   : > { %873 = vrot.lane.b32.xlu1 %v5130_v29, %s4908_s29  ;;  %v1493_v31 = vsel %vm1491_vm5, %v1460_v53, %v852_v27 }
  0xf4   : > { %1159 = vrot.lane.b32.xlu0 %v5127_v28, %s4911_s12  ;;  %v1526_v49 = vsel %vm1524_vm7, %v1493_v31, %v948_v40 }
  0xf5   : > { %v1236_v8 = vpop.permute.xlu1 %1235  ;;  %v1559_v11 = vsel %vm1557_vm8, %v1526_v49, %v1044_v60 }
  0xf6   : > { %v1330_v3 = vpop.permute.xlu0 %1329  ;;  %v1592_v37 = vsel %vm1590_vm9, %v1559_v11, %v1140_v58 }
  0xf7   : > { %v1657_v4 = vsel %vm1656_vm11, %v1624_v19, %v1330_v3  ;;  %1253 = vrot.lane.b32.xlu1 %v5166_v5, %s4912_s17  ;;  %v603_v19 = vrot.slane %v5139_v44, 2  ;;  %v1625_v27 = vsel %vm1623_vm10, %v1592_v37, %v1236_v8  ;;  %v1429_v37 = vsel %vm1425_vm4, %v5004_v23, %v5480_v9 }
  0xf8   : > { %875 = vrot.lane.b32.xlu0 %v5127_v28, %s4908_s29  ;;  %4675 = vmatprep.mubr.msk.f32.mxu0 %vm1701_vm12, %v1657_v4 }
  0xf9   : > { %v952_v24 = vpop.permute.xlu1 %951 }
  0xfa   : > { %v1046_v56 = vpop.permute.xlu0 %1045 }
  0xfb   : > { %969 = vrot.lane.b32.xlu1 %v5166_v5, %s4909_s30  ;;  %v604_v5 = vsel %vm564_vm2, %v601_v36, %v603_v19 }
  0xfc   : > { %1255 = vrot.lane.b32.xlu0 %v5181_v17, %s4912_s17 }
  0xfd   : > { %v1332_v3 = vpop.permute.xlu1 %1331 }
  0xfe   : > { %v1048_v4 = vpop.permute.xlu0 %1047  ;;  %v1658_v40 = vsel %vm1656_vm11, %v1625_v27, %v1332_v3  ;;  %v606_v3 = vrot.slane %v5156_v61, 2 }
  0xff   : > { %1349 = vrot.lane.b32.xlu1 %v602_v20, %s4913_s20  ;;  %4676 = vmatmul.mubr.msk.f32.vlgmr.msra.gmra.mxu0 %vm1701_vm12, %v1658_v40 }
 0x100   : > { %971 = vrot.lane.b32.xlu0 %v5181_v17, %s4909_s30  ;;  %v1461_v17 = vsel %vm8712_vm6, %v1428_v47, %v5602_v57 }
 0x101   : > { %v1142_v60 = vpop.permute.xlu1 %1141  ;;  %v1494_v53 = vsel %vm1491_vm5, %v1461_v17, %v5664_v6 }
 0x102   : > { %v858_v58 = vpop.permute.xlu0 %857  ;;  %v1527_v31 = vsel %vm1524_vm7, %v1494_v53, %v950_v12  ;;  %v1462_v12 = vsel %vm8712_vm6, %v1429_v37, %v5608_v39  ;;  %v605_v39 = vrot.slane %v5159_v62, 2  ;;  %v1430_v53 = vsel %vm1425_vm4, %v5020_v32, %v5488_v43 }
 0x103   : > { %1065 = vrot.lane.b32.xlu1 %v602_v20, %s4910_s7  ;;  %v1560_v49 = vsel %vm1557_vm8, %v1527_v31, %v1046_v56  ;;  %v1495_v56 = vsel %vm1491_vm5, %v1462_v12, %v5677_v18 }
 0x104   : > { %1351 = vrot.lane.b32.xlu0 %v604_v5, %s4913_s20  ;;  %v1593_v25 = vsel %vm1590_vm9, %v1560_v49, %v1142_v60  ;;  %v1528_v27 = vsel %vm1524_vm7, %v1495_v56, %v952_v24  ;;  %v608_v60 = vrot.slane %v5162_v63, 2  ;;  %v1463_v63 = vsel %vm8712_vm6, %v1430_v53, %v5610_v16 }
 0x105   : > { %v1144_v44 = vpop.permute.xlu1 %1143  ;;  %v1561_v23 = vsel %vm1557_vm8, %v1528_v27, %v1048_v4  ;;  %v607_v4 = vsel %vm564_vm2, %v605_v39, %v606_v3  ;;  %v1496_v31 = vsel %vm1491_vm5, %v1463_v63, %v858_v58  ;;  %v1431_v58 = vsel %vm1425_vm4, %v5016_v30, %v5490_v13  ;;  %v8775_v30 = vld [vmem:[#allocation6_spill] sm:$0xff] }
 0x106   : > { %v1238_v8 = vpop.permute.xlu0 %1237  ;;  %v1594_v9 = vsel %vm1590_vm9, %v1561_v23, %v1144_v44  ;;  %v609_v47 = vsel %vm564_vm2, %v606_v3, %v608_v60  ;;  %v611_v39 = vrot.slane %v8775_v30, 2 }
 0x107   : > { %781 = vrot.lane.b32.xlu1 %v602_v20, %s4907_s28  ;;  %v1626_v45 = vsel %vm1623_vm10, %v1593_v25, %v1238_v8 }
 0x108   : > { %1067 = vrot.lane.b32.xlu0 %v604_v5, %s4910_s7 }
 0x109   : > { %v5728_v2 = vpop.permute.xlu1 %859 }
 0x10a   : > { %v954_v36 = vpop.permute.xlu0 %953 }
 0x10b   : > { %1161 = vrot.lane.b32.xlu1 %v5159_v62, %s4911_s12  ;;  %v1529_v25 = vsel %vm1524_vm7, %v1496_v31, %v954_v36  ;;  %v1464_v36 = vsel %vm8712_vm6, %v1431_v58, %v5616_v54 }
 0x10c   : > { %783 = vrot.lane.b32.xlu0 %v604_v5, %s4907_s28 }
 0x10d   : > { %v1240_v57 = vpop.permute.xlu1 %1239 }
 0x10e   : > { %v1334_v11 = vpop.permute.xlu0 %1333  ;;  %v1627_v18 = vsel %vm1623_vm10, %v1594_v9, %v1240_v57  ;;  %v8776_v9 = vld [vmem:[#allocation11_spill] sm:$0xff] }
 0x10f   : > { %v1659_v6 = vsel %vm1656_vm11, %v1626_v45, %v1334_v11  ;;  %877 = vrot.lane.b32.xlu1 %v5159_v62, %s4908_s29 }
 0x110   : > { %1163 = vrot.lane.b32.xlu0 %v5156_v61, %s4911_s12  ;;  %4678 = vmatprep.mubr.msk.f32.mxu0 %vm1701_vm12, %v1659_v6  ;;  %v1497_v6 = vsel %vm1491_vm5, %v1464_v36, %v5728_v2 }
 0x111   : > { %v956_v20 = vpop.permute.xlu1 %955 }
 0x112   : > { %v1050_v19 = vpop.permute.xlu0 %1049  ;;  %v1530_v56 = vsel %vm1524_vm7, %v1497_v6, %v956_v20  ;;  %v610_v20 = vrot.slane %v5178_v14, 2 }
 0x113   : > { %1257 = vrot.lane.b32.xlu1 %v5199_v48, %s4912_s17  ;;  %v1562_v45 = vsel %vm1557_vm8, %v1529_v25, %v1050_v19 }
 0x114   : > { %879 = vrot.lane.b32.xlu0 %v5156_v61, %s4908_s29 }
 0x115   : > { %v1336_v40 = vpop.permute.xlu1 %1335 }
 0x116   : > { %v1052_v5 = vpop.permute.xlu0 %1051  ;;  %v1660_v24 = vsel %vm1656_vm11, %v1627_v18, %v1336_v40  ;;  %v8777_v40 = vld [vmem:[#allocation12_spill] sm:$0xff] }
 0x117   : > { %973 = vrot.lane.b32.xlu1 %v5199_v48, %s4909_s30  ;;  %4679 = vmatmul.mubr.msk.f32.gmra.mxu0 %vm1701_vm12, %v1660_v24  ;;  %v1563_v19 = vsel %vm1557_vm8, %v1530_v56, %v1052_v5  ;;  %v612_v5 = vsel %vm564_vm2, %v610_v20, %v611_v39  ;;  %v8778_v24 = vld [vmem:[#allocation7_spill] sm:$0xff]  ;;  %v8782_v20 = vld [vmem:[#allocation18_spill] sm:$0xff] }
 0x118   : > { %1259 = vrot.lane.b32.xlu0 %v5206_v55, %s4912_s17 }
 0x119   : > { %v1146_v44 = vpop.permute.xlu1 %1145 }
 0x11a   : > { %v862_v8 = vpop.permute.xlu0 %861  ;;  %v1595_v32 = vsel %vm1590_vm9, %v1562_v45, %v1146_v44 }
 0x11b   : > { %1353 = vrot.lane.b32.xlu1 %v607_v4, %s4913_s20 }
 0x11c   : > { %975 = vrot.lane.b32.xlu0 %v5206_v55, %s4909_s30 }
 0x11d   : > { %v1148_v17 = vpop.permute.xlu1 %1147 }
 0x11e   : > { %v1242_v48 = vpop.permute.xlu0 %1241  ;;  %v1596_v13 = vsel %vm1590_vm9, %v1563_v19, %v1148_v17 }
 0x11f   : > { %1069 = vrot.lane.b32.xlu1 %v607_v4, %s4910_s7  ;;  %v1628_v43 = vsel %vm1623_vm10, %v1595_v32, %v1242_v48 }
 0x120   : > { %1355 = vrot.lane.b32.xlu0 %v609_v47, %s4913_s20 }
 0x121   : > { %v5780_v49 = vpop.permute.xlu1 %863 }
 0x122   : > { %v958_v55 = vpop.permute.xlu0 %957 }
 0x123   : > { %785 = vrot.lane.b32.xlu1 %v607_v4, %s4907_s28  ;;  %v613_v4 = vrot.slane %v8778_v24, 2 }
 0x124   : > { %1071 = vrot.lane.b32.xlu0 %v609_v47, %s4910_s7 }
 0x125   : > { %v1244_v57 = vpop.permute.xlu1 %1243  ;;  %v614_v48 = vsel %vm564_vm2, %v611_v39, %v613_v4 }
 0x126   : > { %v1338_v11 = vpop.permute.xlu0 %1337  ;;  %v1629_v54 = vsel %vm1623_vm10, %v1596_v13, %v1244_v57  ;;  %v8781_v13 = vld [vmem:[#allocation17_spill] sm:$0xff] }
 0x127   : > { %v1661_v16 = vsel %vm1656_vm11, %v1628_v43, %v1338_v11  ;;  %1165 = vrot.lane.b32.xlu1 %v5178_v14, %s4911_s12 }
 0x128   : > { %787 = vrot.lane.b32.xlu0 %v609_v47, %s4907_s28  ;;  %4681 = vmatprep.mubr.msk.f32.mxu0 %vm1701_vm12, %v1661_v16  ;;  %v1432_v47 = vsel %vm1425_vm4, %v5043_v41, %v5496_v46 }
 0x129   : > { %v960_v37 = vpop.permute.xlu1 %959  ;;  %v1465_v17 = vsel %vm8712_vm6, %v1432_v47, %v5618_v33 }
 0x12a   : > { %v1054_v12 = vpop.permute.xlu0 %1053  ;;  %v1498_v53 = vsel %vm1491_vm5, %v1465_v17, %v862_v8  ;;  %v1433_v8 = vsel %vm1425_vm4, %v5027_v35, %v5498_v10  ;;  %v8779_v35 = vld [vmem:[#allocation8_spill] sm:$0xff] }
 0x12b   : > { %881 = vrot.lane.b32.xlu1 %v5178_v14, %s4908_s29  ;;  %v1531_v25 = vsel %vm1524_vm7, %v1498_v53, %v958_v55  ;;  %v1466_v55 = vsel %vm8712_vm6, %v1433_v8, %v5624_v26  ;;  %v1435_v53 = vsel %vm1425_vm4, %v5060_v51, %v5506_v34 }
 0x12c   : > { %1167 = vrot.lane.b32.xlu0 %v8775_v30, %s4911_s12  ;;  %v1564_v45 = vsel %vm1557_vm8, %v1531_v25, %v1054_v12  ;;  %v1499_v57 = vsel %vm1491_vm5, %v1466_v55, %v5780_v49  ;;  %v8780_v49 = vld [vmem:[#allocation9_spill] sm:$0xff] }
 0x12d   : > { %v1340_v27 = vpop.permute.xlu1 %1339  ;;  %v1532_v58 = vsel %vm1524_vm7, %v1499_v57, %v960_v37  ;;  %v8785_v57 = vld [vmem:[#allocation14_spill] sm:$0xff] }
 0x12e   : > { %v1056_v23 = vpop.permute.xlu0 %1055  ;;  %v1662_v2 = vsel %vm1656_vm11, %v1629_v54, %v1340_v27  ;;  %v615_v54 = vrot.slane %v8779_v35, 2  ;;  %v616_v27 = vrot.slane %v8780_v49, 2 }
 0x12f   : > { %1261 = vrot.lane.b32.xlu1 %v8776_v9, %s4912_s17  ;;  %4682 = vmatmul.mubr.msk.f32.gmra.mxu0 %vm1701_vm12, %v1662_v2  ;;  %v1565_v36 = vsel %vm1557_vm8, %v1532_v58, %v1056_v23 }
 0x130   : > { %883 = vrot.lane.b32.xlu0 %v8775_v30, %s4908_s29 }
 0x131   : > { %v1150_v3 = vpop.permute.xlu1 %1149 }
 0x132   : > { %v866_v18 = vpop.permute.xlu0 %865  ;;  %v1597_v41 = vsel %vm1590_vm9, %v1564_v45, %v1150_v3  ;;  %v617_v3 = vsel %vm564_vm2, %v615_v54, %v616_v27 }
 0x133   : > { %977 = vrot.lane.b32.xlu1 %v8776_v9, %s4909_s30  ;;  %v1434_v9 = vsel %vm1425_vm4, %v5063_v52, %v5504_v42 }
 0x134   : > { %1263 = vrot.lane.b32.xlu0 %v8777_v40, %s4912_s17  ;;  %v1467_v39 = vsel %vm8712_vm6, %v1434_v9, %v5626_v15 }
 0x135   : > { %v1152_v60 = vpop.permute.xlu1 %1151  ;;  %v1500_v24 = vsel %vm1491_vm5, %v1467_v39, %v866_v18 }
 0x136   : > { %v1246_v44 = vpop.permute.xlu0 %1245  ;;  %v1598_v10 = vsel %vm1590_vm9, %v1565_v36, %v1152_v60  ;;  %v621_v36 = vrot.slane %v8785_v57, 2 }
 0x137   : > { %1357 = vrot.lane.b32.xlu1 %v612_v5, %s4913_s20  ;;  %v1630_v46 = vsel %vm1623_vm10, %v1597_v41, %v1246_v44 }
 0x138   : > { %979 = vrot.lane.b32.xlu0 %v8777_v40, %s4909_s30  ;;  %v8783_v40 = vld [vmem:[#allocation10_spill] sm:$0xff] }
 0x139   : > { %v5832_v63 = vpop.permute.xlu1 %867 }
 0x13a   : > { %v962_v31 = vpop.permute.xlu0 %961 }
 0x13b   : > { %1073 = vrot.lane.b32.xlu1 %v612_v5, %s4910_s7  ;;  %v1533_v44 = vsel %vm1524_vm7, %v1500_v24, %v962_v31  ;;  %v1468_v31 = vsel %vm8712_vm6, %v1435_v53, %v5632_v50  ;;  %v8790_v53 = vld [vmem:[#allocation19_spill] sm:$0xff] }
 0x13c   : > { %1359 = vrot.lane.b32.xlu0 %v614_v48, %s4913_s20  ;;  %v1501_v25 = vsel %vm1491_vm5, %v1468_v31, %v5832_v63  ;;  %v8784_v63 = vld [vmem:[#allocation13_spill] sm:$0xff] }
 0x13d   : > { %v1248_v33 = vpop.permute.xlu1 %1247  ;;  %v620_v58 = vrot.slane %v8784_v63, 2 }
 0x13e   : > { %v1342_v32 = vpop.permute.xlu0 %1341  ;;  %v1631_v26 = vsel %vm1623_vm10, %v1598_v10, %v1248_v33 }
 0x13f   : > { %v1663_v43 = vsel %vm1656_vm11, %v1630_v46, %v1342_v32  ;;  %789 = vrot.lane.b32.xlu1 %v612_v5, %s4907_s28  ;;  %v618_v5 = vrot.slane %v8783_v40, 2 }
 0x140   : > { %1075 = vrot.lane.b32.xlu0 %v614_v48, %s4910_s7  ;;  %4684 = vmatprep.mubr.msk.f32.mxu0 %vm1701_vm12, %v1663_v43 }
 0x141   : > { %v964_v11 = vpop.permute.xlu1 %963  ;;  %v619_v15 = vsel %vm564_vm2, %v616_v27, %v618_v5 }
 0x142   : > { %v1058_v16 = vpop.permute.xlu0 %1057  ;;  %v1534_v46 = vsel %vm1524_vm7, %v1501_v25, %v964_v11 }
 0x143   : > { %1169 = vrot.lane.b32.xlu1 %v8779_v35, %s4911_s12  ;;  %v1566_v52 = vsel %vm1557_vm8, %v1533_v44, %v1058_v16 }
 0x144   : > { %791 = vrot.lane.b32.xlu0 %v614_v48, %s4907_s28 }
 0x145   : > { %v1344_v6 = vpop.permute.xlu1 %1343 }
 0x146   : > { %v1060_v12 = vpop.permute.xlu0 %1059  ;;  %v1664_v56 = vsel %vm1656_vm11, %v1631_v26, %v1344_v6  ;;  %v1436_v6 = vsel %vm1425_vm4, %v5080_v59, %v5512_v21 }
 0x147   : > { %885 = vrot.lane.b32.xlu1 %v8779_v35, %s4908_s29  ;;  %4685 = vmatmul.mubr.msk.f32.gmra.mxu0 %vm1701_vm12, %v1664_v56  ;;  %v1567_v33 = vsel %vm1557_vm8, %v1534_v46, %v1060_v12  ;;  %v8786_v12 = vld [vmem:[#allocation22_spill] sm:$0xff]  ;;  %v1469_v56 = vsel %vm8712_vm6, %v1436_v6, %v5634_v0  ;;  %v8788_v0 = vld [vmem:[#allocation60_spill] sm:$0xff]  ;;  %v626_v46 = vrot.slane %v8790_v53, 2 }
 0x148   : > { %1171 = vrot.lane.b32.xlu0 %v8780_v49, %s4911_s12 }
 0x149   : > { %v1154_v37 = vpop.permute.xlu1 %1153 }
 0x14a   : > { %v5864_v19 = vpop.permute.xlu0 %869  ;;  %v1599_v42 = vsel %vm1590_vm9, %v1566_v52, %v1154_v37  ;;  %v622_v37 = vsel %vm564_vm2, %v620_v58, %v621_v36 }
 0x14b   : > { %1265 = vrot.lane.b32.xlu1 %v8781_v13, %s4912_s17  ;;  %v1502_v27 = vsel %vm1491_vm5, %v1469_v56, %v5864_v19 }
 0x14c   : > { %887 = vrot.lane.b32.xlu0 %v8780_v49, %s4908_s29 }
 0x14d   : > { %v1156_v23 = vpop.permute.xlu1 %1155 }
 0x14e   : > { %v1250_v2 = vpop.permute.xlu0 %1249  ;;  %v1600_v51 = vsel %vm1590_vm9, %v1567_v33, %v1156_v23 }
 0x14f   : > { %981 = vrot.lane.b32.xlu1 %v8781_v13, %s4909_s30  ;;  %v1632_v47 = vsel %vm1623_vm10, %v1599_v42, %v1250_v2  ;;  %v8787_v13 = vld [vmem:[#allocation15_spill] sm:$0xff] }
 0x150   : > { %1267 = vrot.lane.b32.xlu0 %v8782_v20, %s4912_s17  ;;  %v623_v54 = vrot.slane %v8787_v13, 2  ;;  %v8797_v13 = vld [vmem:[#allocation41_spill] sm:$0xff] }
 0x151   : > { %v872_v4 = vpop.permute.xlu1 %871 }
 0x152   : > { %v966_v60 = vpop.permute.xlu0 %965 }
 0x153   : > { %1361 = vrot.lane.b32.xlu1 %v617_v3, %s4913_s20  ;;  %v1535_v59 = vsel %vm1524_vm7, %v1502_v27, %v966_v60 }
 0x154   : > { %983 = vrot.lane.b32.xlu0 %v8782_v20, %s4909_s30  ;;  %v624_v20 = vsel %vm564_vm2, %v621_v36, %v623_v54  ;;  %v8796_v36 = vld [vmem:[#allocation21_spill] sm:$0xff] }
 0x155   : > { %v1252_v17 = vpop.permute.xlu1 %1251  ;;  %v8798_v54 = vld [vmem:[#allocation5_spill] sm:$0xff] }
 0x156   : > { %v1346_v48 = vpop.permute.xlu0 %1345  ;;  %v1633_v34 = vsel %vm1623_vm10, %v1600_v51, %v1252_v17  ;;  %v8789_v17 = vld [vmem:[#allocation20_spill] sm:$0xff]  ;;  %v1439_v27 = vsel %vm1425_vm4, %v8798_v54, %v8797_v13 }
 0x157   : > { %v1665_v18 = vsel %vm1656_vm11, %v1632_v47, %v1346_v48  ;;  %1077 = vrot.lane.b32.xlu1 %v617_v3, %s4910_s7 }
 0x158   : > { %1363 = vrot.lane.b32.xlu0 %v619_v15, %s4913_s20  ;;  %4687 = vmatprep.mubr.msk.f32.mxu0 %vm1701_vm12, %v1665_v18 }
 0x159   : > { %v968_v45 = vpop.permute.xlu1 %967 }
 0x15a   : > { %v1062_v41 = vpop.permute.xlu0 %1061 }
 0x15b   : > { %793 = vrot.lane.b32.xlu1 %v617_v3, %s4907_s28  ;;  %v1568_v21 = vsel %vm1557_vm8, %v1535_v59, %v1062_v41  ;;  %v625_v41 = vrot.slane %v8789_v17, 2 }
 0x15c   : > { %1079 = vrot.lane.b32.xlu0 %v619_v15, %s4910_s7 }
 0x15d   : > { %v1348_v50 = vpop.permute.xlu1 %1347  ;;  %v627_v58 = vsel %vm564_vm2, %v625_v41, %v626_v46 }
 0x15e   : > { %v1064_v32 = vpop.permute.xlu0 %1063  ;;  %v1666_v43 = vsel %vm1656_vm11, %v1633_v34, %v1348_v50  ;;  %v8792_v34 = vld [vmem:[#allocation40_spill] sm:$0xff] }
 0x15f   : > { %1173 = vrot.lane.b32.xlu1 %v8784_v63, %s4911_s12  ;;  %4688 = vmatmul.mubr.msk.f32.gmra.mxu0 %vm1701_vm12, %v1666_v43  ;;  %v8793_v50 = vld [vmem:[#allocation4_spill] sm:$0xff]  ;;  %v8794_v43 = vld [vmem:[#allocation27_spill] sm:$0xff] }
 0x160   : > { %795 = vrot.lane.b32.xlu0 %v619_v15, %s4907_s28 }
 0x161   : > { %v1158_v8 = vpop.permute.xlu1 %1157 }
 0x162   : > { %v5914_v55 = vpop.permute.xlu0 %779  ;;  %v1601_v19 = vsel %vm1590_vm9, %v1568_v21, %v1158_v8  ;;  %v8795_v8 = vld [vmem:[#allocation61_spill] sm:$0xff] }
 0x163   : > { %889 = vrot.lane.b32.xlu1 %v8784_v63, %s4908_s29  ;;  %v1472_v59 = vsel %vm8712_vm6, %v1439_v27, %v5914_v55 }
 0x164   : > { %1175 = vrot.lane.b32.xlu0 %v8785_v57, %s4911_s12 }
 0x165   : > { %v5920_v11 = vpop.permute.xlu1 %873 }
 0x166   : > { %v1160_v16 = vpop.permute.xlu0 %1159 }
 0x167   : > { %1269 = vrot.lane.b32.xlu1 %v5273_v22, %s4912_s17 }
 0x168   : > { %891 = vrot.lane.b32.xlu0 %v8785_v57, %s4908_s29 }
 0x169   : > { %v1254_v10 = vpop.permute.xlu1 %1253 }
 0x16a   : > { %v5928_v26 = vpop.permute.xlu0 %875  ;;  %v1634_v3 = vsel %vm1623_vm10, %v1601_v19, %v1254_v10  ;;  %v628_v10 = vrot.slane %v8796_v36, 2 }
 0x16b   : > { %985 = vrot.lane.b32.xlu1 %v5273_v22, %s4909_s30  ;;  %v1437_v22 = vsel %vm1425_vm4, %v5088_v7, %v5514_v38 }
 0x16c   : > { %1271 = vrot.lane.b32.xlu0 %v8786_v12, %s4912_s17  ;;  %v1470_v9 = vsel %vm8712_vm6, %v1437_v22, %v8788_v0  ;;  %v629_v22 = vsel %vm564_vm2, %v626_v46, %v628_v10  ;;  %v8802_v46 = vld [vmem:[#allocation42_spill] sm:$0xff]  ;;  %v8805_v10 = vld [vmem:[#allocation43_spill] sm:$0xff] }
 0x16d   : > { %v970_v23 = vpop.permute.xlu1 %969  ;;  %v1503_v39 = vsel %vm1491_vm5, %v1470_v9, %v872_v4 }
 0x16e   : > { %v1256_v2 = vpop.permute.xlu0 %1255  ;;  %v1536_v38 = vsel %vm1524_vm7, %v1503_v39, %v968_v45  ;;  %v8791_v45 = vld [vmem:[#allocation26_spill] sm:$0xff] }
 0x16f   : > { %1365 = vrot.lane.b32.xlu1 %v622_v37, %s4913_s20  ;;  %v1569_v24 = vsel %vm1557_vm8, %v1536_v38, %v1064_v32  ;;  %v1438_v32 = vsel %vm1425_vm4, %v8793_v50, %v8792_v34  ;;  %v8803_v34 = vld [vmem:[#allocation32_spill] sm:$0xff] }
 0x170   : > { %987 = vrot.lane.b32.xlu0 %v8786_v12, %s4909_s30  ;;  %v1602_v60 = vsel %vm1590_vm9, %v1569_v24, %v1160_v16  ;;  %v1471_v16 = vsel %vm8712_vm6, %v1438_v32, %v8795_v8  ;;  %v8799_v24 = vld [vmem:[#allocation23_spill] sm:$0xff] }
 0x171   : > { %v1350_v40 = vpop.permute.xlu1 %1349  ;;  %v1635_v4 = vsel %vm1623_vm10, %v1602_v60, %v1256_v2  ;;  %v1504_v6 = vsel %vm1491_vm5, %v1471_v16, %v5920_v11 }
 0x172   : > { %v972_v7 = vpop.permute.xlu0 %971  ;;  %v1667_v5 = vsel %vm1656_vm11, %v1634_v3, %v1350_v40 }
 0x173   : > { %1081 = vrot.lane.b32.xlu1 %v622_v37, %s4910_s7  ;;  %4690 = vmatprep.mubr.msk.f32.mxu0 %vm1701_vm12, %v1667_v5 }
 0x174   : > { %1367 = vrot.lane.b32.xlu0 %v624_v20, %s4913_s20 }
 0x175   : > { %v1066_v44 = vpop.permute.xlu1 %1065 }
 0x176   : > { %v1352_v52 = vpop.permute.xlu0 %1351 }
 0x177   : > { %v1668_v42 = vsel %vm1656_vm11, %v1635_v4, %v1352_v52  ;;  %797 = vrot.lane.b32.xlu1 %v622_v37, %s4907_s28  ;;  %v1537_v37 = vsel %vm1524_vm7, %v1504_v6, %v970_v23  ;;  %v1505_v23 = vsel %vm1491_vm5, %v1472_v59, %v5928_v26  ;;  %v1441_v6 = vsel %vm1425_vm4, %v5127_v28, %v8805_v10 }
 0x178   : > { %1083 = vrot.lane.b32.xlu0 %v624_v20, %s4910_s7  ;;  %4691 = vmatmul.mubr.msk.f32.gmra.mxu0 %vm1701_vm12, %v1668_v42  ;;  %v1570_v2 = vsel %vm1557_vm8, %v1537_v37, %v1066_v44  ;;  %v1538_v19 = vsel %vm1524_vm7, %v1505_v23, %v972_v7  ;;  %v8800_v44 = vld [vmem:[#allocation24_spill] sm:$0xff] }
 0x179   : > { %v5969_v15 = vpop.permute.xlu1 %781 }
 0x17a   : > { %v1068_v47 = vpop.permute.xlu0 %1067 }
 0x17b   : > { %1177 = vrot.lane.b32.xlu1 %v8789_v17, %s4911_s12  ;;  %v1571_v39 = vsel %vm1557_vm8, %v1538_v19, %v1068_v47  ;;  %v8801_v47 = vld [vmem:[#allocation31_spill] sm:$0xff] }
 0x17c   : > { %799 = vrot.lane.b32.xlu0 %v624_v20, %s4907_s28 }
 0x17d   : > { %v1162_v48 = vpop.permute.xlu1 %1161 }
 0x17e   : > { %v5974_v18 = vpop.permute.xlu0 %783  ;;  %v1603_v11 = vsel %vm1590_vm9, %v1570_v2, %v1162_v48  ;;  %v630_v48 = vrot.slane %v8799_v24, 2 }
 0x17f   : > { %893 = vrot.lane.b32.xlu1 %v8789_v17, %s4908_s29 }
 0x180   : > { %1179 = vrot.lane.b32.xlu0 %v8790_v53, %s4911_s12 }
 0x181   : > { %v5980_v31 = vpop.permute.xlu1 %877 }
 0x182   : > { %v1164_v25 = vpop.permute.xlu0 %1163 }
 0x183   : > { %1273 = vrot.lane.b32.xlu1 %v8791_v45, %s4912_s17  ;;  %v1604_v55 = vsel %vm1590_vm9, %v1571_v39, %v1164_v25  ;;  %v631_v25 = vrot.slane %v8800_v44, 2  ;;  %v8807_v39 = vld [vmem:[#allocation28_spill] sm:$0xff] }
 0x184   : > { %895 = vrot.lane.b32.xlu0 %v8790_v53, %s4908_s29 }
 0x185   : > { %v1258_v33 = vpop.permute.xlu1 %1257  ;;  %v632_v32 = vsel %vm564_vm2, %v630_v48, %v631_v25  ;;  %v8810_v48 = vld [vmem:[#allocation37_spill] sm:$0xff] }
 0x186   : > { %v5988_v51 = vpop.permute.xlu0 %879  ;;  %v1636_v21 = vsel %vm1623_vm10, %v1603_v11, %v1258_v33  ;;  %v1440_v33 = vsel %vm1425_vm4, %v5130_v29, %v8802_v46  ;;  %v8811_v46 = vld [vmem:[#allocation30_spill] sm:$0xff] }
 0x187   : > { %989 = vrot.lane.b32.xlu1 %v8791_v45, %s4909_s30  ;;  %v1473_v50 = vsel %vm8712_vm6, %v1440_v33, %v5969_v15  ;;  %v1474_v15 = vsel %vm8712_vm6, %v1441_v6, %v5974_v18  ;;  %v638_v33 = vrot.slane %v8811_v46, 2  ;;  %v8819_v46 = vld [vmem:[#allocation47_spill] sm:$0xff] }
 0x188   : > { %1275 = vrot.lane.b32.xlu0 %v8794_v43, %s4912_s17  ;;  %v1506_v16 = vsel %vm1491_vm5, %v1473_v50, %v5980_v31 }
 0x189   : > { %v974_v12 = vpop.permute.xlu1 %973 }
 0x18a   : > { %v1260_v56 = vpop.permute.xlu0 %1259  ;;  %v1539_v29 = vsel %vm1524_vm7, %v1506_v16, %v974_v12  ;;  %v1507_v12 = vsel %vm1491_vm5, %v1474_v15, %v5988_v51 }
 0x18b   : > { %1369 = vrot.lane.b32.xlu1 %v627_v58, %s4913_s20  ;;  %v1637_v26 = vsel %vm1623_vm10, %v1604_v55, %v1260_v56 }
 0x18c   : > { %991 = vrot.lane.b32.xlu0 %v8794_v43, %s4909_s30  ;;  %v8804_v43 = vld [vmem:[#allocation25_spill] sm:$0xff] }
 0x18d   : > { %v1354_v0 = vpop.permute.xlu1 %1353  ;;  %v633_v8 = vrot.slane %v8804_v43, 2  ;;  %v8812_v43 = vld [vmem:[#allocation45_spill] sm:$0xff] }
 0x18e   : > { %v976_v9 = vpop.permute.xlu0 %975  ;;  %v1669_v20 = vsel %vm1656_vm11, %v1636_v21, %v1354_v0 }
 0x18f   : > { %1085 = vrot.lane.b32.xlu1 %v627_v58, %s4910_s7  ;;  %4693 = vmatprep.mubr.msk.f32.mxu0 %vm1701_vm12, %v1669_v20  ;;  %v634_v37 = vsel %vm564_vm2, %v631_v25, %v633_v8  ;;  %v1540_v27 = vsel %vm1524_vm7, %v1507_v12, %v976_v9  ;;  %v8806_v9 = vld [vmem:[#allocation29_spill] sm:$0xff]  ;;  %v1443_v8 = vsel %vm1425_vm4, %v5156_v61, %v8812_v43 }
 0x190   : > { %1371 = vrot.lane.b32.xlu0 %v629_v22, %s4913_s20 }
 0x191   : > { %v1070_v3 = vpop.permute.xlu1 %1069 }
 0x192   : > { %v1356_v40 = vpop.permute.xlu0 %1355  ;;  %v1572_v56 = vsel %vm1557_vm8, %v1539_v29, %v1070_v3  ;;  %v8808_v3 = vld [vmem:[#allocation36_spill] sm:$0xff] }
 0x193   : > { %v1670_v38 = vsel %vm1656_vm11, %v1637_v26, %v1356_v40  ;;  %801 = vrot.lane.b32.xlu1 %v627_v58, %s4907_s28  ;;  %v635_v40 = vrot.slane %v8806_v9, 2 }
 0x194   : > { %1087 = vrot.lane.b32.xlu0 %v629_v22, %s4910_s7  ;;  %4694 = vmatmul.mubr.msk.f32.gmra.mxu0 %vm1701_vm12, %v1670_v38  ;;  %v636_v38 = vrot.slane %v8807_v39, 2 }
 0x195   : > { %v6030_v7 = vpop.permute.xlu1 %785 }
 0x196   : > { %v1072_v5 = vpop.permute.xlu0 %1071 }
 0x197   : > { %1181 = vrot.lane.b32.xlu1 %v8799_v24, %s4911_s12  ;;  %v1573_v59 = vsel %vm1557_vm8, %v1540_v27, %v1072_v5 }
 0x198   : > { %803 = vrot.lane.b32.xlu0 %v629_v22, %s4907_s28 }
 0x199   : > { %v1166_v60 = vpop.permute.xlu1 %1165 }
 0x19a   : > { %v6035_v4 = vpop.permute.xlu0 %787  ;;  %v1605_v31 = vsel %vm1590_vm9, %v1572_v56, %v1166_v60 }
 0x19b   : > { %897 = vrot.lane.b32.xlu1 %v8799_v24, %s4908_s29 }
 0x19c   : > { %1183 = vrot.lane.b32.xlu0 %v8800_v44, %s4911_s12 }
 0x19d   : > { %v6041_v52 = vpop.permute.xlu1 %881 }
 0x19e   : > { %v1168_v42 = vpop.permute.xlu0 %1167 }
 0x19f   : > { %1277 = vrot.lane.b32.xlu1 %v8801_v47, %s4912_s17  ;;  %v1606_v18 = vsel %vm1590_vm9, %v1573_v59, %v1168_v42  ;;  %v8809_v42 = vld [vmem:[#allocation44_spill] sm:$0xff]  ;;  %v8814_v59 = vld [vmem:[#allocation34_spill] sm:$0xff] }
 0x1a0   : > { %899 = vrot.lane.b32.xlu0 %v8800_v44, %s4908_s29 }
 0x1a1   : > { %v1262_v45 = vpop.permute.xlu1 %1261 }
 0x1a2   : > { %v6049_v41 = vpop.permute.xlu0 %883  ;;  %v1638_v13 = vsel %vm1623_vm10, %v1605_v31, %v1262_v45  ;;  %v637_v45 = vsel %vm564_vm2, %v635_v40, %v636_v38  ;;  %v8817_v40 = vld [vmem:[#allocation39_spill] sm:$0xff] }
 0x1a3   : > { %993 = vrot.lane.b32.xlu1 %v8801_v47, %s4909_s30  ;;  %v1442_v47 = vsel %vm1425_vm4, %v5159_v62, %v8809_v42  ;;  %v8818_v42 = vld [vmem:[#allocation35_spill] sm:$0xff] }
 0x1a4   : > { %1279 = vrot.lane.b32.xlu0 %v8803_v34, %s4912_s17  ;;  %v1475_v25 = vsel %vm8712_vm6, %v1442_v47, %v6030_v7  ;;  %v1476_v7 = vsel %vm8712_vm6, %v1443_v8, %v6035_v4  ;;  %v643_v47 = vrot.slane %v8818_v42, 2  ;;  %v282_v8 = vld [vmem:[%s4988_s26 + $0xf0] sm:$0xff] }
 0x1a5   : > { %v978_v58 = vpop.permute.xlu1 %977 }
 0x1a6   : > { %v1264_v36 = vpop.permute.xlu0 %1263 }
 0x1a7   : > { %1373 = vrot.lane.b32.xlu1 %v632_v32, %s4913_s20  ;;  %v1639_v51 = vsel %vm1623_vm10, %v1606_v18, %v1264_v36  ;;  %v639_v36 = vsel %vm564_vm2, %v636_v38, %v638_v33  ;;  %v1445_v33 = vsel %vm1425_vm4, %v8775_v30, %v8819_v46 }
 0x1a8   : > { %995 = vrot.lane.b32.xlu0 %v8803_v34, %s4909_s30  ;;  %v1508_v34 = vsel %vm1491_vm5, %v1475_v25, %v6041_v52 }
 0x1a9   : > { %v1358_v28 = vpop.permute.xlu1 %1357  ;;  %v1541_v62 = vsel %vm1524_vm7, %v1508_v34, %v978_v58  ;;  %v1509_v58 = vsel %vm1491_vm5, %v1476_v7, %v6049_v41 }
 0x1aa   : > { %v980_v54 = vpop.permute.xlu0 %979  ;;  %v1671_v2 = vsel %vm1656_vm11, %v1638_v13, %v1358_v28 }
 0x1ab   : > { %1089 = vrot.lane.b32.xlu1 %v632_v32, %s4910_s7  ;;  %4696 = vmatprep.mubr.msk.f32.mxu0 %vm1701_vm12, %v1671_v2  ;;  %v1542_v6 = vsel %vm1524_vm7, %v1509_v58, %v980_v54  ;;  %v8813_v54 = vld [vmem:[#allocation33_spill] sm:$0xff] }
 0x1ac   : > { %1375 = vrot.lane.b32.xlu0 %v634_v37, %s4913_s20 }
 0x1ad   : > { %v1074_v11 = vpop.permute.xlu1 %1073 }
 0x1ae   : > { %v1360_v22 = vpop.permute.xlu0 %1359  ;;  %v1574_v16 = vsel %vm1557_vm8, %v1541_v62, %v1074_v11  ;;  %v8815_v11 = vld [vmem:[#allocation38_spill] sm:$0xff] }
 0x1af   : > { %v1672_v23 = vsel %vm1656_vm11, %v1639_v51, %v1360_v22  ;;  %805 = vrot.lane.b32.xlu1 %v632_v32, %s4907_s28  ;;  %v640_v22 = vrot.slane %v8813_v54, 2 }
 0x1b0   : > { %1091 = vrot.lane.b32.xlu0 %v634_v37, %s4910_s7  ;;  %4697 = vmatmul.mubr.msk.f32.gmra.mxu0 %vm1701_vm12, %v1672_v23  ;;  %v641_v23 = vrot.slane %v8814_v59, 2 }
 0x1b1   : > { %v6091_v21 = vpop.permute.xlu1 %789 }
 0x1b2   : > { %v1076_v0 = vpop.permute.xlu0 %1075 }
 0x1b3   : > { %1185 = vrot.lane.b32.xlu1 %v8806_v9, %s4911_s12  ;;  %v1575_v15 = vsel %vm1557_vm8, %v1542_v6, %v1076_v0 }
 0x1b4   : > { %807 = vrot.lane.b32.xlu0 %v634_v37, %s4907_s28 }
 0x1b5   : > { %v1170_v19 = vpop.permute.xlu1 %1169 }
 0x1b6   : > { %v6096_v20 = vpop.permute.xlu0 %791  ;;  %v1607_v52 = vsel %vm1590_vm9, %v1574_v16, %v1170_v19 }
 0x1b7   : > { %901 = vrot.lane.b32.xlu1 %v8806_v9, %s4908_s29 }
 0x1b8   : > { %1187 = vrot.lane.b32.xlu0 %v8807_v39, %s4911_s12 }
 0x1b9   : > { %v6102_v55 = vpop.permute.xlu1 %885 }
 0x1ba   : > { %v1172_v26 = vpop.permute.xlu0 %1171 }
 0x1bb   : > { %1281 = vrot.lane.b32.xlu1 %v8808_v3, %s4912_s17  ;;  %v1608_v4 = vsel %vm1590_vm9, %v1575_v15, %v1172_v26  ;;  %v8816_v26 = vld [vmem:[#allocation46_spill] sm:$0xff] }
 0x1bc   : > { %903 = vrot.lane.b32.xlu0 %v8807_v39, %s4908_s29 }
 0x1bd   : > { %v1266_v5 = vpop.permute.xlu1 %1265 }
 0x1be   : > { %v6110_v60 = vpop.permute.xlu0 %887  ;;  %v1640_v29 = vsel %vm1623_vm10, %v1607_v52, %v1266_v5  ;;  %v642_v5 = vsel %vm564_vm2, %v640_v22, %v641_v23  ;;  %v283_v52 = vld [vmem:[%s4988_s26 + $0xf8] sm:$0xff]  ;;  %s4915_s26 = smov 40  }
 0x1bf   : > { %997 = vrot.lane.b32.xlu1 %v8808_v3, %s4909_s30  ;;  %v1444_v3 = vsel %vm1425_vm4, %v5178_v14, %v8816_v26  ;;  %v366_v6 = vrot.slane %v283_v52, 7 }
 0x1c0   : > { %1283 = vrot.lane.b32.xlu0 %v8810_v48, %s4912_s17  ;;  %v1477_v38 = vsel %vm8712_vm6, %v1444_v3, %v6091_v21 }
 0x1c1   : > { %v982_v50 = vpop.permute.xlu1 %981 }
 0x1c2   : > { %v1268_v32 = vpop.permute.xlu0 %1267 }
 0x1c3   : > { %1377 = vrot.lane.b32.xlu1 %v637_v45, %s4913_s20  ;;  %v1641_v41 = vsel %vm1623_vm10, %v1608_v4, %v1268_v32  ;;  %v644_v32 = vsel %vm564_vm2, %v641_v23, %v643_v47 }
 0x1c4   : > { %999 = vrot.lane.b32.xlu0 %v8810_v48, %s4909_s30  ;;  %v1510_v48 = vsel %vm1491_vm5, %v1477_v38, %v6102_v55  ;;  %v1478_v55 = vsel %vm8712_vm6, %v1445_v33, %v6096_v20 }
 0x1c5   : > { %v1362_v61 = vpop.permute.xlu1 %1361 }
 0x1c6   : > { %v984_v10 = vpop.permute.xlu0 %983  ;;  %v1673_v56 = vsel %vm1656_vm11, %v1640_v29, %v1362_v61 }
 0x1c7   : > { %1093 = vrot.lane.b32.xlu1 %v637_v45, %s4910_s7  ;;  %4699 = vmatprep.mubr.msk.f32.mxu0 %vm1701_vm12, %v1673_v56 }
 0x1c8   : > { %1379 = vrot.lane.b32.xlu0 %v639_v36, %s4913_s20 }
 0x1c9   : > { %v1078_v31 = vpop.permute.xlu1 %1077 }
 0x1ca   : > { %v1364_v37 = vpop.permute.xlu0 %1363 }
 0x1cb   : > { %v1674_v12 = vsel %vm1656_vm11, %v1641_v41, %v1364_v37  ;;  %809 = vrot.lane.b32.xlu1 %v637_v45, %s4907_s28  ;;  %v1543_v45 = vsel %vm1524_vm7, %v1510_v48, %v982_v50  ;;  %v1511_v50 = vsel %vm1491_vm5, %v1478_v55, %v6110_v60  ;;  %v365_v60 = vrot.slane %v282_v8, 7  ;;  %v8821_v55 = vld [vmem:[#allocation49_spill] sm:$0xff] }
 0x1cc   : > { %1095 = vrot.lane.b32.xlu0 %v639_v36, %s4910_s7  ;;  %4700 = vmatmul.mubr.msk.f32.gmra.mxu0 %vm1701_vm12, %v1674_v12  ;;  %v1576_v21 = vsel %vm1557_vm8, %v1543_v45, %v1078_v31  ;;  %v1544_v16 = vsel %vm1524_vm7, %v1511_v50, %v984_v10 }
 0x1cd   : > { %v6152_v13 = vpop.permute.xlu1 %793  ;;  %v433_v56 = vsel %vm317_vm0, 0.0, %v365_v60  ;;  %v367_v41 = vsel %vm317_vm0, %v365_v60, %v366_v6 }
 0x1ce   : > { %v1080_v28 = vpop.permute.xlu0 %1079  ;;  %v647_v31 = vrot.slane %v433_v56, 1  ;;  %v648_v37 = vrot.slane %v367_v41, 1  ;;  %v653_v26 = vrot.slane %v367_v41, 2 }
 0x1cf   : > { %1189 = vrot.lane.b32.xlu1 %v8813_v54, %s4911_s12  ;;  %v1577_v20 = vsel %vm1557_vm8, %v1544_v16, %v1080_v28 }
 0x1d0   : > { %811 = vrot.lane.b32.xlu0 %v639_v36, %s4907_s28 }
 0x1d1   : > { %v1174_v27 = vpop.permute.xlu1 %1173 }
 0x1d2   : > { %v6157_v2 = vpop.permute.xlu0 %795  ;;  %v1609_v34 = vsel %vm1590_vm9, %v1576_v21, %v1174_v27  ;;  %v450_v27 = vsel %vm317_vm0, %v366_v6, 0.0  ;;  %vm3186_vm0 = vcmask 1044484  }
 0x1d3   : > { %905 = vrot.lane.b32.xlu1 %v8813_v54, %s4908_s29 }
 0x1d4   : > { %1191 = vrot.lane.b32.xlu0 %v8814_v59, %s4911_s12 }
 0x1d5   : > { %v6163_v18 = vpop.permute.xlu1 %889 }
 0x1d6   : > { %v1176_v51 = vpop.permute.xlu0 %1175 }
 0x1d7   : > { %1285 = vrot.lane.b32.xlu1 %v8815_v11, %s4912_s17  ;;  %v1610_v36 = vsel %vm1590_vm9, %v1577_v20, %v1176_v51  ;;  %v649_v51 = vsel %vm483_vm1, %v647_v31, %v648_v37  ;;  %v8825_v31 = vld [vmem:[#allocation50_spill] sm:$0xff] }
 0x1d8   : > { %907 = vrot.lane.b32.xlu0 %v8814_v59, %s4908_s29 }
 0x1d9   : > { %v1270_v0 = vpop.permute.xlu1 %1269 }
 0x1da   : > { %v6171_v19 = vpop.permute.xlu0 %891  ;;  %v1642_v62 = vsel %vm1623_vm10, %v1609_v34, %v1270_v0  ;;  %v652_v0 = vrot.slane %v433_v56, 2 }
 0x1db   : > { %1001 = vrot.lane.b32.xlu1 %v8815_v11, %s4909_s30  ;;  %v650_v11 = vrot.slane %v450_v27, 1 }
 0x1dc   : > { %1287 = vrot.lane.b32.xlu0 %v8817_v40, %s4912_s17  ;;  %v654_v48 = vsel %vm564_vm2, %v652_v0, %v653_v26  ;;  %v8826_v0 = vld [vmem:[#allocation51_spill] sm:$0xff] }
 0x1dd   : > { %v6186_v25 = vpop.permute.xlu1 %985  ;;  %v651_v3 = vsel %vm483_vm1, %v648_v37, %v650_v11  ;;  %v1448_v37 = vsel %vm1425_vm4, %v8784_v63, %v8825_v31 }
 0x1de   : > { %v1272_v14 = vpop.permute.xlu0 %1271 }
 0x1df   : > { %1381 = vrot.lane.b32.xlu1 %v642_v5, %s4913_s20  ;;  %v1643_v58 = vsel %vm1623_vm10, %v1610_v36, %v1272_v14  ;;  %v655_v14 = vrot.slane %v450_v27, 2 }
 0x1e0   : > { %1003 = vrot.lane.b32.xlu0 %v8817_v40, %s4909_s30 }
 0x1e1   : > { %v1366_v30 = vpop.permute.xlu1 %1365 }
 0x1e2   : > { %v6203_v43 = vpop.permute.xlu0 %987  ;;  %v1675_v7 = vsel %vm1656_vm11, %v1642_v62, %v1366_v30 }
 0x1e3   : > { %1097 = vrot.lane.b32.xlu1 %v642_v5, %s4910_s7  ;;  %4702 = vmatprep.mubr.msk.f32.mxu0 %vm1701_vm12, %v1675_v7 }
 0x1e4   : > { %1383 = vrot.lane.b32.xlu0 %v644_v32, %s4913_s20 }
 0x1e5   : > { %v1082_v29 = vpop.permute.xlu1 %1081 }
 0x1e6   : > { %v1368_v61 = vpop.permute.xlu0 %1367 }
 0x1e7   : > { %v1676_v10 = vsel %vm1656_vm11, %v1643_v58, %v1368_v61  ;;  %813 = vrot.lane.b32.xlu1 %v642_v5, %s4907_s28  ;;  %v8820_v5 = vld [vmem:[#allocation48_spill] sm:$0xff] }
 0x1e8   : > { %1099 = vrot.lane.b32.xlu0 %v644_v32, %s4910_s7  ;;  %4703 = vmatmul.mubr.msk.f32.gmra.mxu0 %vm1701_vm12, %v1676_v10  ;;  %v1446_v42 = vsel %vm1425_vm4, %v8779_v35, %v8820_v5  ;;  %v1447_v35 = vsel %vm1425_vm4, %v8780_v49, %v8821_v55 }
 0x1e9   : > { %v6220_v15 = vpop.permute.xlu1 %797  ;;  %v1479_v47 = vsel %vm8712_vm6, %v1446_v42, %v6152_v13  ;;  %v1480_v13 = vsel %vm8712_vm6, %v1447_v35, %v6157_v2  ;;  %v8822_v2 = vld [vmem:[#allocation2_spill] sm:$0xff] }
 0x1ea   : > { %v1084_v4 = vpop.permute.xlu0 %1083  ;;  %v1512_v45 = vsel %vm1491_vm5, %v1479_v47, %v6163_v18  ;;  %v4881_v7 = vpack.i.bf16 %v4969_v1, %v8822_v2  ;;  %v8823_v1 = vld [vmem:[#allocation3_spill] sm:$0xff]  ;;  %v8828_v2 = vld [vmem:[#allocation53_spill] sm:$0xff] }
 0x1eb   : > { %1193 = vrot.lane.b32.xlu1 %v433_v56, %s4911_s12  ;;  %v1545_v21 = vsel %vm1524_vm7, %v1512_v45, %v6186_v25  ;;  %v1513_v25 = vsel %vm1491_vm5, %v1480_v13, %v6171_v19 }
 0x1ec   : > { %815 = vrot.lane.b32.xlu0 %v644_v32, %s4907_s28  ;;  %v1578_v34 = vsel %vm1557_vm8, %v1545_v21, %v1082_v29  ;;  %v656_v32 = vsel %vm564_vm2, %v653_v26, %v655_v14  ;;  %v1546_v30 = vsel %vm1524_vm7, %v1513_v25, %v6203_v43  ;;  %v8824_v29 = vld [vmem:[#allocation16_spill] sm:$0xff]  ;;  %v1449_v26 = vsel %vm1425_vm4, %v8785_v57, %v8826_v0 }
 0x1ed   : > { %v1178_v12 = vpop.permute.xlu1 %1177  ;;  %v1579_v16 = vsel %vm1557_vm8, %v1546_v30, %v1084_v4  ;;  %v8827_v25 = vld [vmem:[#allocation52_spill] sm:$0xff]  ;;  %vm8711_vm2 = vcmask 1046534  }
 0x1ee   : > { %v6225_v28 = vpop.permute.xlu0 %799  ;;  %v1611_v18 = vsel %vm1590_vm9, %v1578_v34, %v1178_v12  ;;  %v1481_v12 = vsel %vm8712_vm6, %v1448_v37, %v6220_v15 }
 0x1ef   : > { %909 = vrot.lane.b32.xlu1 %v433_v56, %s4908_s29 }
 0x1f0   : > { %1195 = vrot.lane.b32.xlu0 %v367_v41, %s4911_s12 }
 0x1f1   : > { %v894_v22 = vpop.permute.xlu1 %893 }
 0x1f2   : > { %v1180_v23 = vpop.permute.xlu0 %1179  ;;  %v1514_v27 = vsel %vm1491_vm5, %v1481_v12, %v894_v22 }
 0x1f3   : > { %1289 = vrot.lane.b32.xlu1 %v649_v51, %s4912_s17  ;;  %v1612_v19 = vsel %vm1590_vm9, %v1579_v16, %v1180_v23 }
 0x1f4   : > { %911 = vrot.lane.b32.xlu0 %v367_v41, %s4908_s29  ;;  %s4917_s29 = smov 64  }
 0x1f5   : > { %v1274_v40 = vpop.permute.xlu1 %1273 }
 0x1f6   : > { %v896_v38 = vpop.permute.xlu0 %895  ;;  %v1644_v50 = vsel %vm1623_vm10, %v1611_v18, %v1274_v40  ;;  %v1482_v40 = vsel %vm8712_vm6, %v1449_v26, %v6225_v28  ;;  %v8829_v26 = vld [vmem:[#allocation54_spill] sm:$0xff] }
 0x1f7   : > { %1005 = vrot.lane.b32.xlu1 %v649_v51, %s4909_s30  ;;  %v1515_v5 = vsel %vm1491_vm5, %v1482_v40, %v896_v38 }
 0x1f8   : > { %1291 = vrot.lane.b32.xlu0 %v651_v3, %s4912_s17 }
 0x1f9   : > { %v990_v46 = vpop.permute.xlu1 %989 }
 0x1fa   : > { %v1276_v33 = vpop.permute.xlu0 %1275  ;;  %v1547_v23 = vsel %vm1524_vm7, %v1514_v27, %v990_v46 }
 0x1fb   : > { %1385 = vrot.lane.b32.xlu1 %v654_v48, %s4913_s20  ;;  %v1645_v52 = vsel %vm1623_vm10, %v1612_v19, %v1276_v33 }
 0x1fc   : > { %1007 = vrot.lane.b32.xlu0 %v651_v3, %s4909_s30 }
 0x1fd   : > { %v1370_v62 = vpop.permute.xlu1 %1369 }
 0x1fe   : > { %v992_v49 = vpop.permute.xlu0 %991  ;;  %v1677_v8 = vsel %vm1656_vm11, %v1644_v50, %v1370_v62  ;;  %v1450_v50 = vsel %vm1425_vm4, %v8789_v17, %v8827_v25 }
 0x1ff   : > { %1101 = vrot.lane.b32.xlu1 %v654_v48, %s4910_s7  ;;  %4705 = vmatprep.mubr.msk.f32.mxu0 %vm1701_vm12, %v1677_v8  ;;  %v1548_v47 = vsel %vm1524_vm7, %v1515_v5, %v992_v49 }
 0x200   : > { %1387 = vrot.lane.b32.xlu0 %v656_v32, %s4913_s20 }
 0x201   : > { %v1086_v20 = vpop.permute.xlu1 %1085 }
 0x202   : > { %v1372_v36 = vpop.permute.xlu0 %1371  ;;  %v1580_v3 = vsel %vm1557_vm8, %v1547_v23, %v1086_v20 }
 0x203   : > { %v1678_v43 = vsel %vm1656_vm11, %v1645_v52, %v1372_v36  ;;  %1103 = vrot.lane.b32.xlu1 %v656_v32, %s4910_s7  ;;  %s4918_s7 = smov 72  }
 0x204   : > { %4882 = vrot.lane.b32.xlu0 %v4881_v7, %s4911_s12  ;;  %4706 = vmatmul.mubr.msk.f32.gmra.mxu0 %vm1701_vm12, %v1678_v43  ;;  %v1451_v7 = vsel %vm1425_vm4, %v8790_v53, %v8828_v2 }
 0x205   : > { %v802_v60 = vpop.permute.xlu1 %801 }
 0x206   : > { %v1088_v58 = vpop.permute.xlu0 %1087  ;;  %v1483_v62 = vsel %vm8712_vm6, %v1450_v50, %v802_v60 }
 0x207   : > { %4887 = vrot.lane.b32.xlu1 %v8823_v1, %s4912_s17  ;;  %v1581_v14 = vsel %vm1557_vm8, %v1548_v47, %v1088_v58  ;;  %v8830_v47 = vld [vmem:[#allocation55_spill] sm:$0xff] }
 0x208   : > { %4892 = vrot.lane.b32.xlu0 %v8824_v29, %s4913_s20 }
 0x209   : > { %v1182_v61 = vpop.permute.xlu1 %1181 }
 0x20a   : > { %v804_v6 = vpop.permute.xlu0 %803  ;;  %v1613_v63 = vsel %vm1590_vm9, %v1580_v3, %v1182_v61  ;;  %v1452_v3 = vsel %vm1425_vm4, %v8799_v24, %v8829_v26 }
 0x20b   : > { %v1484_v52 = vsel %vm8712_vm6, %v1451_v7, %v804_v6 }
 0x20d   : > { %v898_v10 = vpop.permute.xlu1 %897 }
 0x20e   : > { %v1184_v56 = vpop.permute.xlu0 %1183  ;;  %v1516_v49 = vsel %vm1491_vm5, %v1483_v62, %v898_v10 }
 0x20f   : > { %v1614_v57 = vsel %vm1590_vm9, %v1581_v14, %v1184_v56 }
 0x211   : > { %v1278_v4 = vpop.permute.xlu1 %1277 }
 0x212   : > { %v900_v41 = vpop.permute.xlu0 %899  ;;  %v1646_v15 = vsel %vm1623_vm10, %v1613_v63, %v1278_v4 }
 0x213   : > { %v1517_v17 = vsel %vm1491_vm5, %v1484_v52, %v900_v41 }
 0x215   : > { %v994_v51 = vpop.permute.xlu1 %993 }
 0x216   : > { %v1280_v11 = vpop.permute.xlu0 %1279  ;;  %v1549_v16 = vsel %vm1524_vm7, %v1516_v49, %v994_v51  ;;  %v6324_v51 = vpop.f32.mrf.mxu0 }
 0x217   : > { %v1647_v28 = vsel %vm1623_vm10, %v1614_v57, %v1280_v11 }
 0x218   : > { %v6326_v0 = vpop.f32.mrf.mxu0 }
 0x219   : > { %v1374_v22 = vpop.permute.xlu1 %1373 }
 0x21a   : > { %v996_v42 = vpop.permute.xlu0 %995  ;;  %v1679_v48 = vsel %vm1656_vm11, %v1646_v15, %v1374_v22  ;;  %v6331_v40 = vpop.f32.mrf.mxu0 }
 0x21b   : > { %4708 = vmatprep.mubr.msk.f32.mxu0 %vm1701_vm12, %v1679_v48  ;;  %v1550_v58 = vsel %vm1524_vm7, %v1517_v17, %v996_v42  ;;  %v1453_v48 = vsel %vm1425_vm4, %v8800_v44, %v8830_v47 }
 0x21c   : > { %v6340_v57 = vpop.f32.mrf.mxu0 }
 0x21d   : > { %v1090_v45 = vpop.permute.xlu1 %1089 }
 0x21e   : > { %v1376_v46 = vpop.permute.xlu0 %1375  ;;  %v1582_v19 = vsel %vm1557_vm8, %v1549_v16, %v1090_v45 }
 0x21f   : > { %v1680_v38 = vsel %vm1656_vm11, %v1647_v28, %v1376_v46 }
 0x220   : > { %4709 = vmatmul.mubr.msk.f32.gmra.mxu0 %vm1701_vm12, %v1680_v38 }
 0x221   : > { %v806_v33 = vpop.permute.xlu1 %805 }
 0x222   : > { %v1092_v21 = vpop.permute.xlu0 %1091  ;;  %v1485_v63 = vsel %vm8712_vm6, %v1452_v3, %v806_v33 }
 0x223   : > { %v1583_v29 = vsel %vm1557_vm8, %v1550_v58, %v1092_v21  ;;  %v6346_v21 = vpop.f32.mrf.mxu0 }
 0x225   : > { %v1186_v55 = vpop.permute.xlu1 %1185  ;;  %v6354_v25 = vpop.f32.mrf.mxu0 }
 0x226   : > { %v808_v35 = vpop.permute.xlu0 %807  ;;  %v1615_v20 = vsel %vm1590_vm9, %v1582_v19, %v1186_v55 }
 0x227   : > { %v1486_v24 = vsel %vm8712_vm6, %v1453_v48, %v808_v35  ;;  %v6358_v62 = vpop.f32.mrf.mxu0 }
 0x229   : > { %v902_v34 = vpop.permute.xlu1 %901 }
 0x22a   : > { %v1188_v13 = vpop.permute.xlu0 %1187  ;;  %v1518_v5 = vsel %vm1491_vm5, %v1485_v63, %v902_v34 }
 0x22b   : > { %v1616_v53 = vsel %vm1590_vm9, %v1583_v29, %v1188_v13 }
 0x22d   : > { %v1282_v18 = vpop.permute.xlu1 %1281 }
 0x22e   : > { %v904_v32 = vpop.permute.xlu0 %903  ;;  %v1648_v36 = vsel %vm1623_vm10, %v1615_v20, %v1282_v18 }
 0x22f   : > { %v1519_v45 = vsel %vm1491_vm5, %v1486_v24, %v904_v32 }
 0x231   : > { %v998_v30 = vpop.permute.xlu1 %997 }
 0x232   : > { %v1284_v8 = vpop.permute.xlu0 %1283  ;;  %v1551_v42 = vsel %vm1524_vm7, %v1518_v5, %v998_v30 }
 0x233   : > { %v1649_v61 = vsel %vm1623_vm10, %v1616_v53, %v1284_v8  ;;  %v6360_v8 = vpop.f32.mrf.mxu0 }
 0x235   : > { %v1378_v43 = vpop.permute.xlu1 %1377  ;;  %v6362_v7 = vpop.f32.mrf.mxu0 }
 0x236   : > { %v1000_v60 = vpop.permute.xlu0 %999  ;;  %v1681_v1 = vsel %vm1656_vm11, %v1648_v36, %v1378_v43 }
 0x237   : > { %4711 = vmatprep.mubr.msk.f32.mxu0 %vm1701_vm12, %v1681_v1  ;;  %v1552_v55 = vsel %vm1524_vm7, %v1519_v45, %v1000_v60  ;;  %v6364_v20 = vpop.f32.mrf.mxu0  ;;  %v8831_v60 = vld [vmem:[#allocation56_spill] sm:$0xff]  ;;  %v8833_v45 = vld [vmem:[#allocation59_spill] sm:$0xff] }
 0x238   : > { %v1454_v58 = vsel %vm1425_vm4, %v8806_v9, %v8831_v60 }
 0x239   : > { %v1094_v6 = vpop.permute.xlu1 %1093  ;;  %v6366_v17 = vpop.f32.mrf.mxu0 }
 0x23a   : > { %v1380_v10 = vpop.permute.xlu0 %1379  ;;  %v1584_v14 = vsel %vm1557_vm8, %v1551_v42, %v1094_v6 }
 0x23b   : > { %v1682_v56 = vsel %vm1656_vm11, %v1649_v61, %v1380_v10  ;;  %v6371_v1 = vpop.f32.mrf.mxu0 }
 0x23c   : > { %4712 = vmatmul.mubr.msk.f32.gmra.mxu0 %vm1701_vm12, %v1682_v56 }
 0x23d   : > { %v810_v4 = vpop.permute.xlu1 %809 }
 0x23e   : > { %v1096_v41 = vpop.permute.xlu0 %1095  ;;  %v1487_v29 = vsel %vm8712_vm6, %v1454_v58, %v810_v4 }
 0x23f   : > { %v1585_v34 = vsel %vm1557_vm8, %v1552_v55, %v1096_v41  ;;  %v8832_v41 = vld [vmem:[#allocation57_spill] sm:$0xff]  ;;  %v8834_v55 = vmov 0.0  }
 0x241   : > { %v1190_v31 = vpop.permute.xlu1 %1189 }
 0x242   : > { %v812_v37 = vpop.permute.xlu0 %811  ;;  %v1617_v28 = vsel %vm1590_vm9, %v1584_v14, %v1190_v31  ;;  %v1455_v31 = vsel %vm1425_vm4, %v8807_v39, %v8832_v41 }
 0x243   : > { %v1488_v9 = vsel %vm8712_vm6, %v1455_v31, %v812_v37  ;;  %v6395_v37 = vld [vmem:[%s8603_s2] ss:$0 sm:$0xff] }
 0x245   : > { %v906_v12 = vpop.permute.xlu1 %905 }
 0x246   : > { %v1192_v27 = vpop.permute.xlu0 %1191  ;;  %v1520_v53 = vsel %vm1491_vm5, %v1487_v29, %v906_v12 }
 0x247   : > { %v1618_v35 = vsel %vm1590_vm9, %v1585_v34, %v1192_v27  ;;  %v8835_v34 = vld [vmem:[#allocation58_spill] sm:$0xff] }
 0x249   : > { %v1286_v11 = vpop.permute.xlu1 %1285 }
 0x24a   : > { %v908_v23 = vpop.permute.xlu0 %907  ;;  %v1650_v46 = vsel %vm1623_vm10, %v1617_v28, %v1286_v11 }
 0x24b   : > { %v1521_v4 = vsel %vm1491_vm5, %v1488_v9, %v908_v23 }
 0x24d   : > { %v1002_v15 = vpop.permute.xlu1 %1001 }
 0x24e   : > { %v1288_v22 = vpop.permute.xlu0 %1287  ;;  %v1553_v10 = vsel %vm1524_vm7, %v1520_v53, %v1002_v15 }
 0x24f   : > { %v1651_v13 = vsel %vm1623_vm10, %v1618_v35, %v1288_v22  ;;  %v1456_v35 = vsel %vm1425_vm4, %v8813_v54, %v8835_v34 }
 0x251   : > { %v1382_v38 = vpop.permute.xlu1 %1381 }
 0x252   : > { %v1004_v33 = vpop.permute.xlu0 %1003  ;;  %v1683_v44 = vsel %vm1656_vm11, %v1650_v46, %v1382_v38  ;;  %v1457_v46 = vsel %vm1425_vm4, %v8814_v59, %v8833_v45  ;;  %vm8707_vm4 = vcmask 326656  }
 0x253   : > { %4714 = vmatprep.mubr.msk.f32.mxu0 %vm1701_vm12, %v1683_v44  ;;  %v1554_v63 = vsel %vm1524_vm7, %v1521_v4, %v1004_v33  ;;  %v6409_v44 = vrot.slane %v8834_v55, 1 }
 0x254   : > { %v6376_v56 = vpop.f32.mrf.mxu0 }
 0x255   : > { %v1098_v18 = vpop.permute.xlu1 %1097 }
 0x256   : > { %v1384_v32 = vpop.permute.xlu0 %1383  ;;  %v1586_v27 = vsel %vm1557_vm8, %v1553_v10, %v1098_v18  ;;  %v6387_v5 = vpop.f32.mrf.mxu0 }
 0x257   : > { %v1684_v50 = vsel %vm1656_vm11, %v1651_v13, %v1384_v32 }
 0x258   : > { %4715 = vmatmul.mubr.msk.f32.gmra.mxu0 %vm1701_vm12, %v1684_v50 }
 0x259   : > { %v814_v49 = vpop.permute.xlu1 %813 }
 0x25a   : > { %v1100_v30 = vpop.permute.xlu0 %1099  ;;  %v1489_v18 = vsel %vm8712_vm6, %v1456_v35, %v814_v49 }
 0x25b   : > { %v1587_v39 = vsel %vm1557_vm8, %v1554_v63, %v1100_v30  ;;  %v2537_v63 = vld [vmem:[%s8604_s3 + $0x10] sm:$0xff] }
 0x25d   : > { %v1194_v16 = vpop.permute.xlu1 %1193 }
 0x25e   : > { %v816_v2 = vpop.permute.xlu0 %815  ;;  %v1619_v11 = vsel %vm1590_vm9, %v1586_v27, %v1194_v16 }
 0x25f   : > { %v1490_v13 = vsel %vm8712_vm6, %v1457_v46, %v816_v2 }
 0x261   : > { %v910_v19 = vpop.permute.xlu1 %909 }
 0x262   : > { %v1196_v52 = vpop.permute.xlu0 %1195 }
 0x263   : > { %v1620_v23 = vsel %vm1590_vm9, %v1587_v39, %v1196_v52  ;;  %v1522_v52 = vsel %vm1491_vm5, %v1489_v18, %v910_v19  ;;  %v2535_v39 = vld [vmem:[%s8604_s3] sm:$0xff] }
 0x265   : > { %v1290_v36 = vpop.permute.xlu1 %1289 }
 0x266   : > { %v912_v43 = vpop.permute.xlu0 %911  ;;  %v1652_v12 = vsel %vm1623_vm10, %v1619_v11, %v1290_v36 }
 0x267   : > { %v1523_v32 = vsel %vm1491_vm5, %v1490_v13, %v912_v43  ;;  %vm3750_vm5 = vcmask 392192  }
 0x269   : > { %v1006_v61 = vpop.permute.xlu1 %1005 }
 0x26a   : > { %v1292_v6 = vpop.permute.xlu0 %1291  ;;  %v1555_v49 = vsel %vm1524_vm7, %v1522_v52, %v1006_v61 }
 0x26b   : > { %v1653_v42 = vsel %vm1623_vm10, %v1620_v23, %v1292_v6 }
 0x26d   : > { %v1386_v26 = vpop.permute.xlu1 %1385 }
 0x26e   : > { %v1008_v3 = vpop.permute.xlu0 %1007  ;;  %v1685_v15 = vsel %vm1656_vm11, %v1652_v12, %v1386_v26 }
 0x26f   : > { %4717 = vmatprep.mubr.msk.f32.mxu0 %vm1701_vm12, %v1685_v15  ;;  %v1556_v36 = vsel %vm1524_vm7, %v1523_v32, %v1008_v3  ;;  %v2538_v3 = vld [vmem:[%s8604_s3 + $0x18] sm:$0xff]  ;;  %v2536_v15 = vld [vmem:[%s8604_s3 + $0x8] sm:$0xff] }
 0x270   : > { %v4698_v22 = vpop.f32.mrf.mxu0  ;;  %4835 = vmatprep.subr.mxu1 %v2538_v3  ;;  %4723 = vmatprep.subr.mxu0 %v2538_v3 }
 0x271   : > { %v1944_v47 = vadd.f32 %v4698_v22, %v6395_v37  ;;  %v1102_v48 = vpop.permute.xlu1 %1101  ;;  %4839 = vmatpush3.msra.mxu1 %v2538_v3  ;;  %4724 = vmatpush3.msra.mxu0 %v2538_v3 }
 0x272   : > { %v1388_v14 = vpop.permute.xlu0 %1387  ;;  %v1938_v24 = vpop.f32.mrf.mxu0  ;;  %v1588_v29 = vsel %vm1557_vm8, %v1555_v49, %v1102_v48  ;;  %4836 = vmatprep.subr.mxu1 %v2537_v63  ;;  %4725 = vmatprep.subr.mxu0 %v2537_v63 }
 0x273   : > { %v1686_v28 = vsel %vm1656_vm11, %v1653_v42, %v1388_v14  ;;  %v6404_v38 = vmax.f32 %v1944_v47, 0.0  ;;  %v1939_v33 = vadd.f32 %v6395_v37, %v1938_v24  ;;  %4840 = vmatpush3.msra.mxu1 %v2537_v63  ;;  %4726 = vmatpush3.msra.mxu0 %v2537_v63 }
 0x274   : > { %4718 = vmatmul.mubr.msk.f32.gmra.mxu0 %vm1701_vm12, %v1686_v28  ;;  %4837 = vmatprep.subr.mxu1 %v2536_v15 }
 0x275   : > { %v2121_v59 = vrot.slane %v6404_v38, 1  ;;  %v6418_v50 = vmax.f32 %v1939_v33, 0.0  ;;  %v1104_v30 = vpop.permute.xlu1 %1103  ;;  %4727 = vmatprep.subr.mxu0 %v2536_v15  ;;  %4841 = vmatpush3.msra.mxu1 %v2536_v15 }
 0x276   : > { %v4883_v16 = vpop.permute.xlu0 %4882  ;;  %v1589_v43 = vsel %vm1557_vm8, %v1556_v36, %v1104_v30  ;;  %4728 = vmatpush3.msra.mxu0 %v2536_v15  ;;  %4838 = vmatprep.subr.mxu1 %v2535_v39  ;;  %vm8708_vm8 = vcmask 457728  }
 0x277   : > { %v2120_v60 = vrot.slane %v6418_v50, 1  ;;  %v4885_v58 = vunpack.i.h.bf16 %v4883_v16  ;;  %v4884_v54 = vunpack.i.l.bf16 %v4883_v16  ;;  %v6425_v2 = vsel %vm483_vm1, %v2121_v59, %v6409_v44  ;;  %4729 = vmatprep.subr.mxu0 %v2535_v39  ;;  %4842 = vmatpush3.msra.mxu1 %v2535_v39 }
 0x278   : > { %2187 = vrot.lane.b32.xlu0 %v6425_v2, %s4907_s28  ;;  %4730 = vmatpush3.msra.mxu0 %v2535_v39 }
 0x279   : > { %v4888_v19 = vpop.permute.xlu1 %4887  ;;  %v6433_v53 = vsel %vm483_vm1, %v2120_v60, %v2121_v59  ;;  %v1621_v61 = vsel %vm1590_vm9, %v1588_v29, %v4884_v54  ;;  %v1622_v9 = vsel %vm1590_vm9, %v1589_v43, %v4885_v58 }
 0x27a   : > { %v4893_v6 = vpop.permute.xlu0 %4892  ;;  %v4890_v10 = vunpack.i.h.bf16 %v4888_v19  ;;  %v4889_v41 = vunpack.i.l.bf16 %v4888_v19  ;;  %2185 = vrot.lane.b32.xlu1 %v6433_v53, %s4907_s28 }
 0x27b   : > { %v4895_v31 = vunpack.i.h.bf16 %v4893_v6  ;;  %v4894_v27 = vunpack.i.l.bf16 %v4893_v6 }
 0x27c   : > { %v1654_v11 = vsel %vm1623_vm10, %v1621_v61, %v4889_v41  ;;  %v1655_v4 = vsel %vm1623_vm10, %v1622_v9, %v4890_v10  ;;  %vm8709_vm10 = vcmask 523264  }
 0x27d   : > { %v1687_v12 = vsel %vm1656_vm11, %v1654_v11, %v4894_v27  ;;  %v1688_v26 = vsel %vm1656_vm11, %v1655_v4, %v4895_v31 }
 0x27e   : > { %4720 = vmatprep.mubr.msk.f32.mxu0 %vm1701_vm12, %v1687_v12 }
 0x27f   : > { %4721 = vmatmul.mubr.msk.f32.gmra.mxu0 %vm1701_vm12, %v1688_v26  ;;  %vm3759_vm12 = vcmask 588800  }
 0x28c   : > { %v4701_v23 = vpop.f32.mrf.mxu0 }
 0x28d   : > { %v1954_v22 = vadd.f32 %v4701_v23, %v6395_v37 }
 0x28e   : > { %v1948_v42 = vpop.f32.mrf.mxu0 }
 0x28f   : > { %v6458_v47 = vmax.f32 %v1954_v22, 0.0  ;;  %v1949_v48 = vadd.f32 %v6395_v37, %v1948_v42 }
 0x291   : > { %v2125_v14 = vrot.slane %v6458_v47, 1  ;;  %v6462_v24 = vmax.f32 %v1949_v48, 0.0  ;;  %2283 = vrot.lane.b32.xlu0 %v6458_v47, %s4909_s30 }
 0x293   : > { %v2124_v28 = vrot.slane %v6462_v24, 1  ;;  %2281 = vrot.lane.b32.xlu1 %v6462_v24, %s4909_s30  ;;  %v2127_v45 = vsel %vm483_vm1, %v2125_v14, %v6409_v44 }
 0x295   : > { %2376 = vrot.lane.b32.xlu0 %v2127_v45, %s4911_s12  ;;  %v2126_v46 = vsel %vm483_vm1, %v2124_v28, %v2125_v14 }
 0x297   : > { %2374 = vrot.lane.b32.xlu1 %v2126_v46, %s4911_s12 }
 0x299   : > { %2191 = vrot.lane.b32.xlu0 %v2127_v45, %s4907_s28 }
 0x29b   : > { %2189 = vrot.lane.b32.xlu1 %v2126_v46, %s4907_s28 }
 0x2a8   : > { %v4704_v33 = vpop.f32.mrf.mxu0 }
 0x2a9   : > { %v1964_v34 = vadd.f32 %v4704_v33, %v6395_v37 }
 0x2aa   : > { %v1958_v35 = vpop.f32.mrf.mxu0 }
 0x2ab   : > { %v6477_v13 = vmax.f32 %v1964_v34, 0.0  ;;  %v1959_v18 = vadd.f32 %v6395_v37, %v1958_v35 }
 0x2ad   : > { %v2129_v32 = vrot.slane %v6477_v13, 1  ;;  %v6481_v59 = vmax.f32 %v1959_v18, 0.0  ;;  %2287 = vrot.lane.b32.xlu0 %v6477_v13, %s4909_s30 }
 0x2af   : > { %v2128_v30 = vrot.slane %v6481_v59, 1  ;;  %2285 = vrot.lane.b32.xlu1 %v6481_v59, %s4909_s30  ;;  %v2131_v16 = vsel %vm483_vm1, %v2129_v32, %v6409_v44 }
 0x2b1   : > { %2380 = vrot.lane.b32.xlu0 %v2131_v16, %s4911_s12  ;;  %v2130_v52 = vsel %vm483_vm1, %v2128_v30, %v2129_v32 }
 0x2b3   : > { %2378 = vrot.lane.b32.xlu1 %v2130_v52, %s4911_s12 }
 0x2b5   : > { %2195 = vrot.lane.b32.xlu0 %v2131_v16, %s4907_s28 }
 0x2b7   : > { %2193 = vrot.lane.b32.xlu1 %v2130_v52, %s4907_s28 }
 0x2c4   : > { %v4707_v36 = vpop.f32.mrf.mxu0 }
 0x2c5   : > { %v1974_v60 = vadd.f32 %v4707_v36, %v6395_v37 }
 0x2c6   : > { %v1968_v58 = vpop.f32.mrf.mxu0 }
 0x2c7   : > { %v6496_v54 = vmax.f32 %v1974_v60, 0.0  ;;  %v1969_v49 = vadd.f32 %v6395_v37, %v1968_v58 }
 0x2c9   : > { %v2133_v43 = vrot.slane %v6496_v54, 1  ;;  %v6500_v29 = vmax.f32 %v1969_v49, 0.0  ;;  %2291 = vrot.lane.b32.xlu0 %v6496_v54, %s4909_s30 }
 0x2cb   : > { %v2132_v19 = vrot.slane %v6500_v29, 1  ;;  %2289 = vrot.lane.b32.xlu1 %v6500_v29, %s4909_s30  ;;  %v2135_v6 = vsel %vm483_vm1, %v2133_v43, %v6409_v44 }
 0x2cd   : > { %2384 = vrot.lane.b32.xlu0 %v2135_v6, %s4911_s12  ;;  %v2134_v10 = vsel %vm483_vm1, %v2132_v19, %v2133_v43 }
 0x2cf   : > { %2382 = vrot.lane.b32.xlu1 %v2134_v10, %s4911_s12 }
 0x2d1   : > { %2199 = vrot.lane.b32.xlu0 %v2135_v6, %s4907_s28 }
 0x2d3   : > { %2197 = vrot.lane.b32.xlu1 %v2134_v10, %s4907_s28 }
 0x2e0   : > { %v4710_v41 = vpop.f32.mrf.mxu0 }
 0x2e1   : > { %v1984_v31 = vadd.f32 %v4710_v41, %v6395_v37 }
 0x2e2   : > { %v1978_v27 = vpop.f32.mrf.mxu0 }
 0x2e3   : > { %v6515_v61 = vmax.f32 %v1984_v31, 0.0  ;;  %v1979_v9 = vadd.f32 %v6395_v37, %v1978_v27 }
 0x2e5   : > { %v2137_v11 = vrot.slane %v6515_v61, 1  ;;  %v6519_v4 = vmax.f32 %v1979_v9, 0.0  ;;  %2295 = vrot.lane.b32.xlu0 %v6515_v61, %s4909_s30 }
 0x2e7   : > { %v2136_v12 = vrot.slane %v6519_v4, 1  ;;  %2293 = vrot.lane.b32.xlu1 %v6519_v4, %s4909_s30  ;;  %v2139_v26 = vsel %vm483_vm1, %v2137_v11, %v6409_v44 }
 0x2e9   : > { %2388 = vrot.lane.b32.xlu0 %v2139_v26, %s4911_s12  ;;  %v2138_v3 = vsel %vm483_vm1, %v2136_v12, %v2137_v11 }
 0x2ea   : > { %v2188_v42 = vpop.permute.xlu0 %2187 }
 0x2eb   : > { %2386 = vrot.lane.b32.xlu1 %v2138_v3, %s4911_s12  ;;  %v2454_v30 = vsel %vm8712_vm6, %v6404_v38, %v2188_v42 }
 0x2ec   : > { %v2186_v28 = vpop.permute.xlu1 %2185 }
 0x2ed   : > { %2203 = vrot.lane.b32.xlu0 %v2139_v26, %s4907_s28  ;;  %v2453_v18 = vsel %vm8712_vm6, %v6418_v50, %v2186_v28 }
 0x2ef   : > { %2201 = vrot.lane.b32.xlu1 %v2138_v3, %s4907_s28 }
 0x2fc   : > { %v4713_v63 = vpop.f32.mrf.mxu0 }
 0x2fd   : > { %v1994_v15 = vadd.f32 %v4713_v63, %v6395_v37 }
 0x2fe   : > { %v1988_v39 = vpop.f32.mrf.mxu0 }
 0x2ff   : > { %v6534_v23 = vmax.f32 %v1994_v15, 0.0  ;;  %v1989_v22 = vadd.f32 %v6395_v37, %v1988_v39 }
 0x301   : > { %v2141_v48 = vrot.slane %v6534_v23, 1  ;;  %v6538_v14 = vmax.f32 %v1989_v22, 0.0  ;;  %2299 = vrot.lane.b32.xlu0 %v6534_v23, %s4909_s30 }
 0x303   : > { %v2140_v45 = vrot.slane %v6538_v14, 1  ;;  %2297 = vrot.lane.b32.xlu1 %v6538_v14, %s4909_s30  ;;  %v2143_v46 = vsel %vm483_vm1, %v2141_v48, %v6409_v44  ;;  %v2284_v33 = vpop.permute.xlu0 %2283 }
 0x304   : > { %v2486_v36 = vsel %vm1524_vm7, %v2454_v30, %v2284_v33 }
 0x305   : > { %2392 = vrot.lane.b32.xlu0 %v2143_v46, %s4911_s12  ;;  %v2142_v34 = vsel %vm483_vm1, %v2140_v45, %v2141_v48  ;;  %v2282_v35 = vpop.permute.xlu1 %2281 }
 0x306   : > { %v2485_v16 = vsel %vm1524_vm7, %v2453_v18, %v2282_v35 }
 0x307   : > { %2390 = vrot.lane.b32.xlu1 %v2142_v34, %s4911_s12  ;;  %v2377_v32 = vpop.permute.xlu0 %2376 }
 0x308   : > { %v6562_v58 = vsel %vm1590_vm9, %v2486_v36, %v2377_v32 }
 0x309   : > { %2207 = vrot.lane.b32.xlu0 %v2143_v46, %s4907_s28  ;;  %v2375_v52 = vpop.permute.xlu1 %2374 }
 0x30a   : > { %v6558_v60 = vsel %vm1590_vm9, %v2485_v16, %v2375_v52 }
 0x30b   : > { %2205 = vrot.lane.b32.xlu1 %v2142_v34, %s4907_s28  ;;  %4752 = vmatprep.mubr.msk.f32.mxu1 %vm1656_vm11, %v6558_v60  ;;  %v2192_v41 = vpop.permute.xlu0 %2191 }
 0x30c   : > { %4753 = vmatmul.mubr.msk.f32.vlgmr.msra.gmra.mxu1 %vm1656_vm11, %v6562_v58  ;;  %v2456_v22 = vsel %vm8712_vm6, %v6458_v47, %v2192_v41 }
 0x30d   : > { %v2190_v9 = vpop.permute.xlu1 %2189 }
 0x30e   : > { %v2455_v15 = vsel %vm8712_vm6, %v6462_v24, %v2190_v9 }
 0x318   : > { %v4716_v49 = vpop.f32.mrf.mxu0 }
 0x319   : > { %v2004_v43 = vadd.f32 %v4716_v49, %v6395_v37 }
 0x31a   : > { %v1998_v19 = vpop.f32.mrf.mxu0 }
 0x31b   : > { %v6569_v6 = vmax.f32 %v2004_v43, 0.0  ;;  %v1999_v10 = vadd.f32 %v6395_v37, %v1998_v19 }
 0x31d   : > { %v2145_v31 = vrot.slane %v6569_v6, 1  ;;  %v6573_v27 = vmax.f32 %v1999_v10, 0.0  ;;  %2303 = vrot.lane.b32.xlu0 %v6569_v6, %s4909_s30 }
 0x31f   : > { %v2144_v11 = vrot.slane %v6573_v27, 1  ;;  %2301 = vrot.lane.b32.xlu1 %v6573_v27, %s4909_s30  ;;  %v2147_v12 = vsel %vm483_vm1, %v2145_v31, %v6409_v44  ;;  %v2288_v26 = vpop.permute.xlu0 %2287 }
 0x320   : > { %v2488_v28 = vsel %vm1524_vm7, %v2456_v22, %v2288_v26 }
 0x321   : > { %2396 = vrot.lane.b32.xlu0 %v2147_v12, %s4911_s12  ;;  %v2146_v3 = vsel %vm483_vm1, %v2144_v11, %v2145_v31  ;;  %v2286_v63 = vpop.permute.xlu1 %2285 }
 0x322   : > { %v2487_v42 = vsel %vm1524_vm7, %v2455_v15, %v2286_v63 }
 0x323   : > { %2394 = vrot.lane.b32.xlu1 %v2146_v3, %s4911_s12  ;;  %v2381_v39 = vpop.permute.xlu0 %2380 }
 0x324   : > { %v6597_v46 = vsel %vm1590_vm9, %v2488_v28, %v2381_v39 }
 0x325   : > { %2211 = vrot.lane.b32.xlu0 %v2147_v12, %s4907_s28  ;;  %v2379_v48 = vpop.permute.xlu1 %2378 }
 0x326   : > { %v6593_v45 = vsel %vm1590_vm9, %v2487_v42, %v2379_v48 }
 0x327   : > { %2209 = vrot.lane.b32.xlu1 %v2146_v3, %s4907_s28  ;;  %4755 = vmatprep.mubr.msk.f32.mxu1 %vm1656_vm11, %v6593_v45  ;;  %v2196_v18 = vpop.permute.xlu0 %2195 }
 0x328   : > { %4756 = vmatmul.mubr.msk.f32.gmra.mxu1 %vm1656_vm11, %v6597_v46  ;;  %v2458_v11 = vsel %vm8712_vm6, %v6477_v13, %v2196_v18  ;;  %v2542_v18 = vld [vmem:[%s8605_s4 + $0x18] sm:$0xff] }
 0x329   : > { %v2194_v16 = vpop.permute.xlu1 %2193  ;;  %4779 = vmatprep.subr.mxu1 %v2542_v18 }
 0x32a   : > { %v2457_v41 = vsel %vm8712_vm6, %v6481_v59, %v2194_v16  ;;  %4780 = vmatpush3.msra.mxu1 %v2542_v18  ;;  %v1884_v16 = vadd.f32 %v6331_v40, %v6395_v37  ;;  %v2539_v40 = vld [vmem:[%s8605_s4] sm:$0xff] }
 0x334   : > { %v4719_v47 = vpop.f32.mrf.mxu0 }
 0x335   : > { %v2014_v24 = vadd.f32 %v4719_v47, %v6395_v37  ;;  %v6654_v47 = vadd.f32 %v6324_v51, %v6395_v37 }
 0x336   : > { %v2008_v33 = vpop.f32.mrf.mxu0 }
 0x337   : > { %v6604_v34 = vmax.f32 %v2014_v24, 0.0  ;;  %v2009_v35 = vadd.f32 %v6395_v37, %v2008_v33  ;;  %v6660_v33 = vadd.f32 %v6395_v37, %v6326_v0 }
 0x339   : > { %v2149_v32 = vrot.slane %v6604_v34, 1  ;;  %v6608_v30 = vmax.f32 %v2009_v35, 0.0  ;;  %2307 = vrot.lane.b32.xlu0 %v6604_v34, %s4909_s30  ;;  %v2028_v35 = vmax.f32 %v6654_v47, 0.0  ;;  %v2027_v51 = vmax.f32 %v6660_v33, 0.0 }
 0x33b   : > { %v2148_v52 = vrot.slane %v6608_v30, 1  ;;  %2305 = vrot.lane.b32.xlu1 %v6608_v30, %s4909_s30  ;;  %v2151_v36 = vsel %vm483_vm1, %v2149_v32, %v6409_v44  ;;  %v2292_v49 = vpop.permute.xlu0 %2291  ;;  %v2092_v0 = vrot.slane %v2028_v35, 1 }
 0x33c   : > { %v2490_v63 = vsel %vm1524_vm7, %v2458_v11, %v2292_v49  ;;  %v1879_v49 = vadd.f32 %v6395_v37, %v6340_v57 }
 0x33d   : > { %2400 = vrot.lane.b32.xlu0 %v2151_v36, %s4911_s12  ;;  %v2150_v43 = vsel %vm483_vm1, %v2148_v52, %v2149_v32  ;;  %v2290_v19 = vpop.permute.xlu1 %2289  ;;  %v2541_v32 = vld [vmem:[%s8605_s4 + $0x10] sm:$0xff]  ;;  %v2540_v52 = vld [vmem:[%s8605_s4 + $0x8] sm:$0xff] }
 0x33e   : > { %v2489_v12 = vsel %vm1524_vm7, %v2457_v41, %v2290_v19  ;;  %4781 = vmatprep.subr.mxu1 %v2541_v32  ;;  %v6691_v19 = vmax.f32 %v1884_v16, 0.0  ;;  %v6696_v57 = vmax.f32 %v1879_v49, 0.0  ;;  %v1899_v49 = vadd.f32 %v6395_v37, %v6360_v8 }
 0x33f   : > { %2398 = vrot.lane.b32.xlu1 %v2150_v43, %s4911_s12  ;;  %v4722_v10 = vpop.f32.mrf.mxu0  ;;  %v2385_v31 = vpop.permute.xlu0 %2384  ;;  %4782 = vmatpush3.msra.mxu1 %v2541_v32 }
 0x340   : > { %v2024_v9 = vadd.f32 %v4722_v10, %v6395_v37  ;;  %v6636_v22 = vsel %vm1590_vm9, %v2490_v63, %v2385_v31  ;;  %4783 = vmatprep.subr.mxu1 %v2540_v52  ;;  %v2095_v10 = vsel %vm483_vm1, %v2092_v0, %v6409_v44  ;;  %v2097_v11 = vrot.slane %v6691_v19, 1 }
 0x341   : > { %2215 = vrot.lane.b32.xlu0 %v2151_v36, %s4907_s28  ;;  %v2383_v26 = vpop.permute.xlu1 %2382  ;;  %v2018_v3 = vpop.f32.mrf.mxu0  ;;  %v2091_v36 = vrot.slane %v2027_v51, 1  ;;  %4784 = vmatpush3.msra.mxu1 %v2540_v52  ;;  %v1904_v52 = vadd.f32 %v6358_v62, %v6395_v37 }
 0x342   : > { %v6628_v15 = vmax.f32 %v2024_v9, 0.0  ;;  %v6631_v39 = vsel %vm1590_vm9, %v2489_v12, %v2383_v26  ;;  %v2019_v59 = vadd.f32 %v6395_v37, %v2018_v3  ;;  %4785 = vmatprep.subr.mxu1 %v2539_v40  ;;  %v2096_v12 = vrot.slane %v6696_v57, 1 }
 0x343   : > { %2213 = vrot.lane.b32.xlu1 %v2150_v43, %s4907_s28  ;;  %4758 = vmatprep.mubr.msk.f32.mxu1 %vm1656_vm11, %v6631_v39  ;;  %v2200_v43 = vpop.permute.xlu0 %2199  ;;  %v2093_v31 = vsel %vm483_vm1, %v2091_v36, %v2092_v0  ;;  %v1894_v26 = vadd.f32 %v6346_v21, %v6395_v37 }
 0x344   : > { %v2153_v13 = vrot.slane %v6628_v15, 1  ;;  %v6641_v42 = vmax.f32 %v2019_v59, 0.0  ;;  %4759 = vmatmul.mubr.msk.f32.gmra.mxu1 %vm1656_vm11, %v6636_v22  ;;  %v2099_v59 = vsel %vm483_vm1, %v2097_v11, %v6409_v44 }
 0x345   : > { %2311 = vrot.lane.b32.xlu0 %v6628_v15, %s4909_s30  ;;  %4786 = vmatpush3.msra.mxu1 %v2539_v40  ;;  %v2198_v41 = vpop.permute.xlu1 %2197 }
 0x346   : > { %v2152_v48 = vrot.slane %v6641_v42, 1  ;;  %v2155_v28 = vsel %vm483_vm1, %v2153_v13, %v6409_v44  ;;  %v2459_v3 = vsel %vm8712_vm6, %v6500_v29, %v2198_v41  ;;  %v2098_v29 = vsel %vm483_vm1, %v2096_v12, %v2097_v11 }
 0x347   : > { %2309 = vrot.lane.b32.xlu1 %v6641_v42, %s4909_s30  ;;  %v1914_v11 = vadd.f32 %v6362_v7, %v6395_v37 }
 0x348   : > { %v2154_v24 = vsel %vm483_vm1, %v2152_v48, %v2153_v13  ;;  %v2460_v13 = vsel %vm8712_vm6, %v6496_v54, %v2200_v43  ;;  %v6729_v54 = vmax.f32 %v1894_v26, 0.0  ;;  %v6752_v43 = vmax.f32 %v1904_v52, 0.0 }
 0x349   : > { %2404 = vrot.lane.b32.xlu0 %v2155_v28, %s4911_s12  ;;  %v1909_v26 = vadd.f32 %v6395_v37, %v6364_v20  ;;  %v1919_v52 = vadd.f32 %v6395_v37, %v6371_v1 }
 0x34a   : > { %v2101_v0 = vrot.slane %v6729_v54, 1  ;;  %v2105_v62 = vrot.slane %v6752_v43, 1 }
 0x34b   : > { %2402 = vrot.lane.b32.xlu1 %v2154_v24, %s4911_s12 }
 0x34c   : > { %v2103_v36 = vsel %vm483_vm1, %v2101_v0, %v6409_v44 }
 0x34d   : > { %2219 = vrot.lane.b32.xlu0 %v2155_v28, %s4907_s28 }
 0x34f   : > { %2217 = vrot.lane.b32.xlu1 %v2154_v24, %s4907_s28  ;;  %v1889_v24 = vadd.f32 %v6395_v37, %v6354_v25 }
 0x351   : > { %2406 = vrot.lane.b32.xlu0 %v6409_v44, %s4911_s12  ;;  %v6734_v25 = vmax.f32 %v1889_v24, 0.0  ;;  %v6781_v24 = vmax.f32 %v1909_v26, 0.0 }
 0x353   : > { %2313 = vrot.lane.b32.xlu1 %v8834_v55, %s4909_s30  ;;  %v2100_v16 = vrot.slane %v6734_v25, 1 }
 0x355   : > { %2159 = vrot.lane.b32.xlu0 %v2095_v10, %s4907_s28  ;;  %v2102_v40 = vsel %vm483_vm1, %v2100_v16, %v2101_v0  ;;  %v6755_v10 = vmax.f32 %v1899_v49, 0.0  ;;  %v1924_v0 = vadd.f32 %v6366_v17, %v6395_v37 }
 0x357   : > { %v2296_v9 = vpop.permute.xlu0 %2295  ;;  %2157 = vrot.lane.b32.xlu1 %v2093_v31, %s4907_s28  ;;  %v2104_v8 = vrot.slane %v6755_v10, 1  ;;  %v6810_v49 = vmax.f32 %v1924_v0, 0.0 }
 0x358   : > { %v2492_v21 = vsel %vm1524_vm7, %v2460_v13, %v2296_v9 }
 0x359   : > { %v2294_v55 = vpop.permute.xlu1 %2293  ;;  %2255 = vrot.lane.b32.xlu0 %v6691_v19, %s4909_s30  ;;  %v2113_v17 = vrot.slane %v6810_v49, 1 }
 0x35a   : > { %v2491_v48 = vsel %vm1524_vm7, %v2459_v3, %v2294_v55  ;;  %v2107_v55 = vsel %vm483_vm1, %v2105_v62, %v6409_v44  ;;  %v2106_v3 = vsel %vm483_vm1, %v2104_v8, %v2105_v62  ;;  %v1934_v62 = vadd.f32 %v6376_v56, %v6395_v37 }
 0x35b   : > { %2253 = vrot.lane.b32.xlu1 %v6696_v57, %s4909_s30  ;;  %v2389_v63 = vpop.permute.xlu0 %2388 }
 0x35c   : > { %v6724_v32 = vsel %vm1590_vm9, %v2492_v21, %v2389_v63  ;;  %v6773_v63 = vmax.f32 %v1914_v11, 0.0 }
 0x35d   : > { %v2387_v28 = vpop.permute.xlu1 %2386  ;;  %2348 = vrot.lane.b32.xlu0 %v2099_v59, %s4911_s12 }
 0x35e   : > { %v6720_v18 = vsel %vm1590_vm9, %v2491_v48, %v2387_v28 }
 0x35f   : > { %4761 = vmatprep.mubr.msk.f32.mxu1 %vm1656_vm11, %v6720_v18  ;;  %2346 = vrot.lane.b32.xlu1 %v2098_v29, %s4911_s12  ;;  %v2204_v41 = vpop.permute.xlu0 %2203 }
 0x360   : > { %4762 = vmatmul.mubr.msk.f32.gmra.mxu1 %vm1656_vm11, %v6724_v32  ;;  %v2462_v7 = vsel %vm8712_vm6, %v6515_v61, %v2204_v41  ;;  %v2109_v61 = vrot.slane %v6773_v63, 1 }
 0x361   : > { %2163 = vrot.lane.b32.xlu0 %v2099_v59, %s4907_s28  ;;  %v2202_v31 = vpop.permute.xlu1 %2201 }
 0x362   : > { %v2461_v59 = vsel %vm8712_vm6, %v6519_v4, %v2202_v31  ;;  %v2108_v4 = vrot.slane %v6781_v24, 1  ;;  %v2111_v16 = vsel %vm483_vm1, %v2109_v61, %v6409_v44  ;;  %v2115_v31 = vsel %vm483_vm1, %v2113_v17, %v6409_v44 }
 0x363   : > { %2161 = vrot.lane.b32.xlu1 %v2098_v29, %s4907_s28 }
 0x365   : > { %2259 = vrot.lane.b32.xlu0 %v6729_v54, %s4909_s30 }
 0x367   : > { %2257 = vrot.lane.b32.xlu1 %v6734_v25, %s4909_s30 }
 0x369   : > { %2352 = vrot.lane.b32.xlu0 %v2103_v36, %s4911_s12 }
 0x36b   : > { %2350 = vrot.lane.b32.xlu1 %v2102_v40, %s4911_s12 }
 0x36d   : > { %2167 = vrot.lane.b32.xlu0 %v2103_v36, %s4907_s28  ;;  %v2110_v36 = vsel %vm483_vm1, %v2108_v4, %v2109_v61 }
 0x36f   : > { %2165 = vrot.lane.b32.xlu1 %v2102_v40, %s4907_s28  ;;  %v6813_v40 = vmax.f32 %v1919_v52, 0.0 }
 0x371   : > { %2263 = vrot.lane.b32.xlu0 %v6752_v43, %s4909_s30  ;;  %v2112_v41 = vrot.slane %v6813_v40, 1 }
 0x373   : > { %v2300_v9 = vpop.permute.xlu0 %2299  ;;  %2261 = vrot.lane.b32.xlu1 %v6755_v10, %s4909_s30  ;;  %v2114_v11 = vsel %vm483_vm1, %v2112_v41, %v2113_v17 }
 0x374   : > { %v2494_v20 = vsel %vm1524_vm7, %v2462_v7, %v2300_v9  ;;  %v1929_v9 = vadd.f32 %v6395_v37, %v6387_v5 }
 0x375   : > { %v2298_v12 = vpop.permute.xlu1 %2297  ;;  %2356 = vrot.lane.b32.xlu0 %v2107_v55, %s4911_s12 }
 0x376   : > { %v2493_v48 = vsel %vm1524_vm7, %v2461_v59, %v2298_v12  ;;  %v6831_v12 = vmax.f32 %v1934_v62, 0.0  ;;  %v6834_v56 = vmax.f32 %v1929_v9, 0.0 }
 0x377   : > { %2354 = vrot.lane.b32.xlu1 %v2106_v3, %s4911_s12  ;;  %v2393_v13 = vpop.permute.xlu0 %2392 }
 0x378   : > { %v6788_v29 = vsel %vm1590_vm9, %v2494_v20, %v2393_v13 }
 0x379   : > { %v2391_v28 = vpop.permute.xlu1 %2390  ;;  %2171 = vrot.lane.b32.xlu0 %v2107_v55, %s4907_s28 }
 0x37a   : > { %v6785_v21 = vsel %vm1590_vm9, %v2493_v48, %v2391_v28  ;;  %v2116_v48 = vrot.slane %v6834_v56, 1 }
 0x37b   : > { %4764 = vmatprep.mubr.msk.f32.mxu1 %vm1656_vm11, %v6785_v21  ;;  %2169 = vrot.lane.b32.xlu1 %v2106_v3, %s4907_s28  ;;  %v2208_v1 = vpop.permute.xlu0 %2207  ;;  %v2117_v3 = vrot.slane %v6831_v12, 1 }
 0x37c   : > { %4765 = vmatmul.mubr.msk.f32.gmra.mxu1 %vm1656_vm11, %v6788_v29  ;;  %v2464_v37 = vsel %vm8712_vm6, %v6534_v23, %v2208_v1 }
 0x37d   : > { %2267 = vrot.lane.b32.xlu0 %v6773_v63, %s4909_s30  ;;  %v2206_v8 = vpop.permute.xlu1 %2205  ;;  %v2119_v23 = vsel %vm483_vm1, %v2117_v3, %v6409_v44 }
 0x37e   : > { %v2463_v59 = vsel %vm8712_vm6, %v6538_v14, %v2206_v8  ;;  %v2118_v14 = vsel %vm483_vm1, %v2116_v48, %v2117_v3  ;;  %vm8710_vm1 = vcmask 1045509  }
 0x37f   : > { %2265 = vrot.lane.b32.xlu1 %v6781_v24, %s4909_s30 }
 0x381   : > { %2360 = vrot.lane.b32.xlu0 %v2111_v16, %s4911_s12 }
 0x383   : > { %2358 = vrot.lane.b32.xlu1 %v2110_v36, %s4911_s12 }
 0x385   : > { %2175 = vrot.lane.b32.xlu0 %v2111_v16, %s4907_s28 }
 0x387   : > { %2173 = vrot.lane.b32.xlu1 %v2110_v36, %s4907_s28 }
 0x389   : > { %2271 = vrot.lane.b32.xlu0 %v6810_v49, %s4909_s30 }
 0x38b   : > { %2269 = vrot.lane.b32.xlu1 %v6813_v40, %s4909_s30 }
 0x38d   : > { %2364 = vrot.lane.b32.xlu0 %v2115_v31, %s4911_s12 }
 0x38f   : > { %v2304_v55 = vpop.permute.xlu0 %2303  ;;  %2362 = vrot.lane.b32.xlu1 %v2114_v11, %s4911_s12 }
 0x390   : > { %v2496_v28 = vsel %vm1524_vm7, %v2464_v37, %v2304_v55 }
 0x391   : > { %v2302_v26 = vpop.permute.xlu1 %2301  ;;  %2179 = vrot.lane.b32.xlu0 %v2115_v31, %s4907_s28 }
 0x392   : > { %v2495_v13 = vsel %vm1524_vm7, %v2463_v59, %v2302_v26 }
 0x393   : > { %2177 = vrot.lane.b32.xlu1 %v2114_v11, %s4907_s28  ;;  %v2397_v5 = vpop.permute.xlu0 %2396 }
 0x394   : > { %v6851_v61 = vsel %vm1590_vm9, %v2496_v28, %v2397_v5 }
 0x395   : > { %v2395_v7 = vpop.permute.xlu1 %2394  ;;  %2275 = vrot.lane.b32.xlu0 %v6831_v12, %s4909_s30 }
 0x396   : > { %v6848_v20 = vsel %vm1590_vm9, %v2495_v13, %v2395_v7 }
 0x397   : > { %4767 = vmatprep.mubr.msk.f32.mxu1 %vm1656_vm11, %v6848_v20  ;;  %2273 = vrot.lane.b32.xlu1 %v6834_v56, %s4909_s30  ;;  %v2212_v44 = vpop.permute.xlu0 %2211 }
 0x398   : > { %4768 = vmatmul.mubr.msk.f32.gmra.mxu1 %vm1656_vm11, %v6851_v61 }
 0x399   : > { %2368 = vrot.lane.b32.xlu0 %v2119_v23, %s4911_s12  ;;  %v2210_v4 = vpop.permute.xlu1 %2209 }
 0x39a   : > { %v2465_v36 = vsel %vm8712_vm6, %v6573_v27, %v2210_v4 }
 0x39b   : > { %2366 = vrot.lane.b32.xlu1 %v2118_v14, %s4911_s12 }
 0x39d   : > { %2183 = vrot.lane.b32.xlu0 %v2119_v23, %s4907_s28 }
 0x39f   : > { %2181 = vrot.lane.b32.xlu1 %v2118_v14, %s4907_s28 }
 0x3a1   : > { %2279 = vrot.lane.b32.xlu0 %v6404_v38, %s4909_s30  ;;  %v2466_v38 = vsel %vm8712_vm6, %v6569_v6, %v2212_v44 }
 0x3a3   : > { %2277 = vrot.lane.b32.xlu1 %v6418_v50, %s4909_s30 }
 0x3a5   : > { %2372 = vrot.lane.b32.xlu0 %v6425_v2, %s4911_s12 }
 0x3a7   : > { %2370 = vrot.lane.b32.xlu1 %v6433_v53, %s4911_s12 }
 0x3ab   : > { %v2308_v0 = vpop.permute.xlu0 %2307 }
 0x3ac   : > { %v2498_v41 = vsel %vm1524_vm7, %v2466_v38, %v2308_v0 }
 0x3ad   : > { %v2306_v16 = vpop.permute.xlu1 %2305 }
 0x3ae   : > { %v2497_v17 = vsel %vm1524_vm7, %v2465_v36, %v2306_v16 }
 0x3af   : > { %v2401_v52 = vpop.permute.xlu0 %2400 }
 0x3b0   : > { %v6884_v53 = vsel %vm1590_vm9, %v2498_v41, %v2401_v52 }
 0x3b1   : > { %v2399_v50 = vpop.permute.xlu1 %2398 }
 0x3b2   : > { %v6881_v2 = vsel %vm1590_vm9, %v2497_v17, %v2399_v50 }
 0x3b3   : > { %4770 = vmatprep.mubr.msk.f32.mxu1 %vm1656_vm11, %v6881_v2  ;;  %v2216_v1 = vpop.permute.xlu0 %2215 }
 0x3b4   : > { %4771 = vmatmul.mubr.msk.f32.gmra.mxu1 %vm1656_vm11, %v6884_v53  ;;  %v2468_v9 = vsel %vm8712_vm6, %v6604_v34, %v2216_v1 }
 0x3b5   : > { %v2214_v27 = vpop.permute.xlu1 %2213 }
 0x3b6   : > { %v2467_v8 = vsel %vm8712_vm6, %v6608_v30, %v2214_v27 }
 0x3b7   : > { %v2312_v6 = vpop.permute.xlu0 %2311 }
 0x3b8   : > { %v2500_v26 = vsel %vm1524_vm7, %v2468_v9, %v2312_v6 }
 0x3b9   : > { %v2310_v62 = vpop.permute.xlu1 %2309 }
 0x3ba   : > { %v2499_v11 = vsel %vm1524_vm7, %v2467_v8, %v2310_v62 }
 0x3bb   : > { %v2405_v31 = vpop.permute.xlu0 %2404 }
 0x3bc   : > { %v6900_v59 = vsel %vm1590_vm9, %v2500_v26, %v2405_v31 }
 0x3bd   : > { %v2403_v55 = vpop.permute.xlu1 %2402 }
 0x3be   : > { %v6897_v3 = vsel %vm1590_vm9, %v2499_v11, %v2403_v55 }
 0x3bf   : > { %v2220_v5 = vpop.permute.xlu0 %2219  ;;  %4773 = vmatprep.mubr.msk.f32.mxu1 %vm1656_vm11, %v6897_v3 }
 0x3c0   : > { %4774 = vmatmul.mubr.msk.f32.gmra.mxu1 %vm1656_vm11, %v6900_v59  ;;  %v2470_v37 = vsel %vm8712_vm6, %v6628_v15, %v2220_v5 }
 0x3c1   : > { %v2218_v30 = vpop.permute.xlu1 %2217 }
 0x3c2   : > { %v2469_v13 = vsel %vm8712_vm6, %v6641_v42, %v2218_v30 }
 0x3c3   : > { %v2407_v34 = vpop.permute.xlu0 %2406 }
 0x3c5   : > { %v2314_v7 = vpop.permute.xlu1 %2313 }
 0x3c6   : > { %v2501_v48 = vsel %vm1524_vm7, %v2469_v13, %v2314_v7  ;;  %v2502_v28 = vsel %vm1524_vm7, %v2470_v37, %v2314_v7 }
 0x3c7   : > { %v2160_v23 = vpop.permute.xlu0 %2159  ;;  %v6913_v14 = vsel %vm1590_vm9, %v2501_v48, %v2407_v34  ;;  %v6916_v44 = vsel %vm1590_vm9, %v2502_v28, %v2407_v34 }
 0x3c8   : > { %4776 = vmatprep.mubr.msk.f32.mxu1 %vm1656_vm11, %v6913_v14  ;;  %v2440_v52 = vsel %vm8712_vm6, %v2028_v35, %v2160_v23 }
 0x3c9   : > { %4777 = vmatmul.mubr.msk.f32.gmra.mxu1 %vm1656_vm11, %v6916_v44  ;;  %v2158_v15 = vpop.permute.xlu1 %2157 }
 0x3ca   : > { %v2439_v16 = vsel %vm8712_vm6, %v2027_v51, %v2158_v15 }
 0x3cb   : > { %v2256_v42 = vpop.permute.xlu0 %2255 }
 0x3cc   : > { %v2472_v17 = vsel %vm1524_vm7, %v2440_v52, %v2256_v42 }
 0x3cd   : > { %v2254_v4 = vpop.permute.xlu1 %2253 }
 0x3ce   : > { %v2471_v36 = vsel %vm1524_vm7, %v2439_v16, %v2254_v4 }
 0x3cf   : > { %v2349_v0 = vpop.permute.xlu0 %2348 }
 0x3d0   : > { %v2504_v41 = vsel %vm1590_vm9, %v2472_v17, %v2349_v0 }
 0x3d1   : > { %v2347_v38 = vpop.permute.xlu1 %2346 }
 0x3d2   : > { %v2503_v50 = vsel %vm1590_vm9, %v2471_v36, %v2347_v38 }
 0x3d3   : > { %v2164_v1 = vpop.permute.xlu0 %2163  ;;  %4731 = vmatprep.mubr.msk.f32.mxu0 %vm1656_vm11, %v2503_v50  ;;  %4787 = vmatprep.mubr.msk.f32.mxu1 %vm1656_vm11, %v2503_v50 }
 0x3d4   : > { %4732 = vmatmul.mubr.msk.f32.vlgmr.msra.gmra.mxu0 %vm1656_vm11, %v2504_v41  ;;  %4788 = vmatmul.mubr.msk.f32.vlgmr.msra.gmra.mxu1 %vm1656_vm11, %v2504_v41  ;;  %v2442_v6 = vsel %vm8712_vm6, %v6691_v19, %v2164_v1 }
 0x3d5   : > { %v2162_v47 = vpop.permute.xlu1 %2161 }
 0x3d6   : > { %v2441_v27 = vsel %vm8712_vm6, %v6696_v57, %v2162_v47 }
 0x3d7   : > { %v2260_v33 = vpop.permute.xlu0 %2259 }
 0x3d8   : > { %v2474_v8 = vsel %vm1524_vm7, %v2442_v6, %v2260_v33 }
 0x3d9   : > { %v2258_v35 = vpop.permute.xlu1 %2257 }
 0x3da   : > { %v2473_v62 = vsel %vm1524_vm7, %v2441_v27, %v2258_v35 }
 0x3db   : > { %v2353_v51 = vpop.permute.xlu0 %2352 }
 0x3dc   : > { %v2506_v11 = vsel %vm1590_vm9, %v2474_v8, %v2353_v51 }
 0x3dd   : > { %v2351_v31 = vpop.permute.xlu1 %2350 }
 0x3de   : > { %v2505_v9 = vsel %vm1590_vm9, %v2473_v62, %v2351_v31 }
 0x3df   : > { %v2168_v55 = vpop.permute.xlu0 %2167  ;;  %4734 = vmatprep.mubr.msk.f32.mxu0 %vm1656_vm11, %v2505_v9  ;;  %4790 = vmatprep.mubr.msk.f32.mxu1 %vm1656_vm11, %v2505_v9 }
 0x3e0   : > { %4735 = vmatmul.mubr.msk.f32.gmra.mxu0 %vm1656_vm11, %v2506_v11  ;;  %4791 = vmatmul.mubr.msk.f32.gmra.mxu1 %vm1656_vm11, %v2506_v11  ;;  %v2444_v34 = vsel %vm8712_vm6, %v6729_v54, %v2168_v55 }
 0x3e1   : > { %v2166_v57 = vpop.permute.xlu1 %2165 }
 0x3e2   : > { %v2443_v30 = vsel %vm8712_vm6, %v6734_v25, %v2166_v57 }
 0x3e3   : > { %v2264_v19 = vpop.permute.xlu0 %2263 }
 0x3e4   : > { %v2476_v7 = vsel %vm1524_vm7, %v2444_v34, %v2264_v19 }
 0x3e5   : > { %v2262_v26 = vpop.permute.xlu1 %2261 }
 0x3e6   : > { %v2475_v37 = vsel %vm1524_vm7, %v2443_v30, %v2262_v26 }
 0x3e7   : > { %v2357_v5 = vpop.permute.xlu0 %2356 }
 0x3e8   : > { %v2508_v28 = vsel %vm1590_vm9, %v2476_v7, %v2357_v5 }
 0x3e9   : > { %v2355_v13 = vpop.permute.xlu1 %2354 }
 0x3ea   : > { %v2507_v48 = vsel %vm1590_vm9, %v2475_v37, %v2355_v13 }
 0x3eb   : > { %v2172_v23 = vpop.permute.xlu0 %2171  ;;  %4737 = vmatprep.mubr.msk.f32.mxu0 %vm1656_vm11, %v2507_v48  ;;  %4793 = vmatprep.mubr.msk.f32.mxu1 %vm1656_vm11, %v2507_v48 }
 0x3ec   : > { %4738 = vmatmul.mubr.msk.f32.gmra.mxu0 %vm1656_vm11, %v2508_v28  ;;  %4794 = vmatmul.mubr.msk.f32.gmra.mxu1 %vm1656_vm11, %v2508_v28  ;;  %v2446_v0 = vsel %vm8712_vm6, %v6752_v43, %v2172_v23 }
 0x3ed   : > { %v2170_v25 = vpop.permute.xlu1 %2169 }
 0x3ee   : > { %v2445_v4 = vsel %vm8712_vm6, %v6755_v10, %v2170_v25  ;;  %v6972_v10 = vpop.f32.mrf.mxu1 }
 0x3ef   : > { %v2268_v54 = vpop.permute.xlu0 %2267 }
 0x3f0   : > { %v2478_v36 = vsel %vm1524_vm7, %v2446_v0, %v2268_v54  ;;  %v6974_v1 = vpop.f32.mrf.mxu1 }
 0x3f1   : > { %v2266_v15 = vpop.permute.xlu1 %2265 }
 0x3f2   : > { %v2477_v16 = vsel %vm1524_vm7, %v2445_v4, %v2266_v15  ;;  %v4757_v33 = vpop.f32.mrf.mxu1 }
 0x3f3   : > { %v2361_v42 = vpop.permute.xlu0 %2360 }
 0x3f4   : > { %v2510_v17 = vsel %vm1590_vm9, %v2478_v36, %v2361_v42  ;;  %v2792_v9 = vpop.f32.mrf.mxu1 }
 0x3f5   : > { %v2359_v52 = vpop.permute.xlu1 %2358 }
 0x3f6   : > { %v2509_v38 = vsel %vm1590_vm9, %v2477_v16, %v2359_v52 }
 0x3f7   : > { %v2176_v50 = vpop.permute.xlu0 %2175  ;;  %4740 = vmatprep.mubr.msk.f32.mxu0 %vm1656_vm11, %v2509_v38  ;;  %4796 = vmatprep.mubr.msk.f32.mxu1 %vm1656_vm11, %v2509_v38 }
 0x3f8   : > { %4741 = vmatmul.mubr.msk.f32.gmra.mxu0 %vm1656_vm11, %v2510_v17  ;;  %4797 = vmatmul.mubr.msk.f32.gmra.mxu1 %vm1656_vm11, %v2510_v17  ;;  %v2448_v27 = vsel %vm8712_vm6, %v6773_v63, %v2176_v50  ;;  %v6991_v63 = vld [vmem:[%s8606_s5] ss:$0 sm:$0xff] }
 0x3f9   : > { %v2174_v43 = vpop.permute.xlu1 %2173  ;;  %v2798_v30 = vadd.f32 %v4757_v33, %v6991_v63  ;;  %v2793_v7 = vadd.f32 %v6991_v63, %v2792_v9 }
 0x3fa   : > { %v2447_v51 = vsel %vm8712_vm6, %v6781_v24, %v2174_v43 }
 0x3fb   : > { %v2272_v41 = vpop.permute.xlu0 %2271  ;;  %v7001_v23 = vmax.f32 %v2798_v30, 0.0  ;;  %v7011_v52 = vmax.f32 %v2793_v7, 0.0 }
 0x3fc   : > { %v2480_v31 = vsel %vm1524_vm7, %v2448_v27, %v2272_v41 }
 0x3fd   : > { %v2270_v47 = vpop.permute.xlu1 %2269  ;;  %v3685_v17 = vrot.slane %v7001_v23, 6 }
 0x3fe   : > { %v2479_v6 = vsel %vm1524_vm7, %v2447_v51, %v2270_v47 }
 0x3ff   : > { %v2365_v35 = vpop.permute.xlu0 %2364 }
 0x400   : > { %v2512_v11 = vsel %vm1590_vm9, %v2480_v31, %v2365_v35 }
 0x401   : > { %v2363_v62 = vpop.permute.xlu1 %2362 }
 0x402   : > { %v2511_v8 = vsel %vm1590_vm9, %v2479_v6, %v2363_v62 }
 0x403   : > { %v2180_v55 = vpop.permute.xlu0 %2179  ;;  %4743 = vmatprep.mubr.msk.f32.mxu0 %vm1656_vm11, %v2511_v8  ;;  %4799 = vmatprep.mubr.msk.f32.mxu1 %vm1656_vm11, %v2511_v8 }
 0x404   : > { %4744 = vmatmul.mubr.msk.f32.gmra.mxu0 %vm1656_vm11, %v2512_v11  ;;  %4800 = vmatmul.mubr.msk.f32.gmra.mxu1 %vm1656_vm11, %v2512_v11  ;;  %v4760_v24 = vpop.f32.mrf.mxu1  ;;  %v2450_v54 = vsel %vm8712_vm6, %v6810_v49, %v2180_v55 }
 0x405   : > { %v2178_v57 = vpop.permute.xlu1 %2177  ;;  %v2808_v19 = vadd.f32 %v4760_v24, %v6991_v63  ;;  %v3719_v24 = vrot.slane %v7001_v23, 7 }
 0x406   : > { %v2802_v26 = vpop.f32.mrf.mxu1  ;;  %v2449_v25 = vsel %vm8712_vm6, %v6813_v40, %v2178_v57  ;;  %v3651_v40 = vrot.slane %v7001_v23, 5 }
 0x407   : > { %v2276_v5 = vpop.permute.xlu0 %2275  ;;  %v2803_v34 = vadd.f32 %v6991_v63, %v2802_v26  ;;  %v6996_v13 = vmax.f32 %v2808_v19, 0.0 }
 0x408   : > { %v2482_v4 = vsel %vm1524_vm7, %v2450_v54, %v2276_v5 }
 0x409   : > { %v2274_v37 = vpop.permute.xlu1 %2273  ;;  %v6999_v48 = vmax.f32 %v2803_v34, 0.0  ;;  %v3652_v16 = vrot.slane %v6996_v13, 4  ;;  %v3686_v50 = vrot.slane %v6996_v13, 5 }
 0x40a   : > { %v2481_v15 = vsel %vm1524_vm7, %v2449_v25, %v2274_v37 }
 0x40b   : > { %v2369_v28 = vpop.permute.xlu0 %2368  ;;  %v3197_v49 = vrot.slane %v6999_v48, 7  ;;  %v3653_v47 = vsel %vm3177_vm13, %v3652_v16, %v3651_v40  ;;  %v3687_v33 = vsel %vm3177_vm13, %v3686_v50, %v3685_v17  ;;  %v2788_v16 = vadd.f32 %v6972_v10, %v6991_v63 }
 0x40c   : > { %v2514_v36 = vsel %vm1590_vm9, %v2482_v4, %v2369_v28 }
 0x40d   : > { %v2367_v42 = vpop.permute.xlu1 %2366  ;;  %v3198_v41 = vsel %vm3177_vm13, %v3197_v49, %v7011_v52  ;;  %v2783_v49 = vadd.f32 %v6991_v63, %v6974_v1  ;;  %v7116_v40 = vmax.f32 %v2788_v16, 0.0 }
 0x40e   : > { %v2513_v0 = vsel %vm1590_vm9, %v2481_v15, %v2367_v42 }
 0x40f   : > { %v2184_v38 = vpop.permute.xlu0 %2183  ;;  %4746 = vmatprep.mubr.msk.f32.mxu0 %vm1656_vm11, %v2513_v0  ;;  %4802 = vmatprep.mubr.msk.f32.mxu1 %vm1656_vm11, %v2513_v0  ;;  %8836 = vst [vmem:[#allocation6_spill] sm:$0xff] %v7116_v40 }
 0x410   : > { %4747 = vmatmul.mubr.msk.f32.gmra.mxu0 %vm1656_vm11, %v2514_v36  ;;  %4803 = vmatmul.mubr.msk.f32.gmra.mxu1 %vm1656_vm11, %v2514_v36  ;;  %v2452_v62 = vsel %vm8712_vm6, %v6831_v12, %v2184_v38 }
 0x411   : > { %v2182_v43 = vpop.permute.xlu1 %2181 }
 0x412   : > { %v2451_v27 = vsel %vm8712_vm6, %v6834_v56, %v2182_v43  ;;  %v3720_v56 = vrot.slane %v6996_v13, 6 }
 0x413   : > { %v2280_v35 = vpop.permute.xlu0 %2279 }
 0x414   : > { %v2484_v9 = vsel %vm1524_vm7, %v2452_v62, %v2280_v35  ;;  %v3721_v12 = vsel %vm3177_vm13, %v3720_v56, %v3719_v24  ;;  %v3549_v24 = vrot.slane %v7001_v23, 2  ;;  %v3583_v56 = vrot.slane %v7001_v23, 3 }
 0x415   : > { %v2278_v51 = vpop.permute.xlu1 %2277 }
 0x416   : > { %v2483_v31 = vsel %vm1524_vm7, %v2451_v27, %v2278_v51 }
 0x417   : > { %v2373_v6 = vpop.permute.xlu0 %2372 }
 0x418   : > { %v2516_v55 = vsel %vm1590_vm9, %v2484_v9, %v2373_v6 }
 0x419   : > { %v2371_v8 = vpop.permute.xlu1 %2370 }
 0x41a   : > { %v2515_v11 = vsel %vm1590_vm9, %v2483_v31, %v2371_v8 }
 0x41b   : > { %4749 = vmatprep.mubr.msk.f32.mxu0 %vm1656_vm11, %v2515_v11  ;;  %4805 = vmatprep.mubr.msk.f32.mxu1 %vm1656_vm11, %v2515_v11 }
 0x41c   : > { %4750 = vmatmul.mubr.msk.f32.gmra.mxu0 %vm1656_vm11, %v2516_v55  ;;  %4806 = vmatmul.mubr.msk.f32.gmra.mxu1 %vm1656_vm11, %v2516_v55  ;;  %v3515_v55 = vrot.slane %v7001_v23, 1 }
 0x41d   : > { %4808 = vmatprep.mubr.msk.f32.mxu1 %vm1656_vm11, %v6558_v60 }
 0x420   : > { %v4763_v57 = vpop.f32.mrf.mxu1  ;;  %4809 = vmatmul.mubr.msk.f32.gmra.mxu1 %vm1656_vm11, %v6562_v58 }
 0x421   : > { %v2818_v19 = vadd.f32 %v4763_v57, %v6991_v63  ;;  %4811 = vmatprep.mubr.msk.f32.mxu1 %vm1656_vm11, %v6593_v45  ;;  %v3431_v57 = vrot.slane %v7011_v52, 7 }
 0x422   : > { %v2812_v26 = vpop.f32.mrf.mxu1 }
 0x423   : > { %v7048_v5 = vmax.f32 %v2818_v19, 0.0  ;;  %v2813_v30 = vadd.f32 %v6991_v63, %v2812_v26  ;;  %v3227_v19 = vrot.slane %v7011_v52, 1  ;;  %v3261_v26 = vrot.slane %v7011_v52, 2 }
 0x424   : > { %4812 = vmatmul.mubr.msk.f32.gmra.mxu1 %vm1656_vm11, %v6597_v46 }
 0x425   : > { %4814 = vmatprep.mubr.msk.f32.mxu1 %vm1656_vm11, %v6631_v39  ;;  %v7055_v60 = vmax.f32 %v2813_v30, 0.0  ;;  %v3654_v58 = vrot.slane %v7048_v5, 3  ;;  %v3688_v46 = vrot.slane %v7048_v5, 4  ;;  %v3617_v30 = vrot.slane %v7001_v23, 4 }
 0x427   : > { %v3199_v45 = vrot.slane %v7055_v60, 6  ;;  %v3655_v34 = vsel %vm3180_vm14, %v3654_v58, %v3653_v47  ;;  %v3432_v58 = vrot.slane %v6999_v48, 6  ;;  %v3229_v16 = vrot.slane %v7055_v60, 7 }
 0x428   : > { %4815 = vmatmul.mubr.msk.f32.gmra.mxu1 %vm1656_vm11, %v6636_v22  ;;  %v3689_v22 = vsel %vm3180_vm14, %v3688_v46, %v3687_v33  ;;  %v3296_v46 = vrot.slane %v6999_v48, 2 }
 0x429   : > { %4817 = vmatprep.mubr.msk.f32.mxu1 %vm1656_vm11, %v6720_v18  ;;  %v3200_v39 = vsel %vm3180_vm14, %v3199_v45, %v3198_v41  ;;  %v3722_v18 = vrot.slane %v7048_v5, 5  ;;  %v7123_v41 = vmax.f32 %v2783_v49, 0.0  ;;  %v3262_v45 = vrot.slane %v6999_v48, 1 }
 0x42a   : > { %v3298_v49 = vrot.slane %v7055_v60, 1 }
 0x42b   : > { %8837 = vst [vmem:[#allocation11_spill] sm:$0xff] %v7123_v41 }
 0x42c   : > { %4818 = vmatmul.mubr.msk.f32.gmra.mxu1 %vm1656_vm11, %v6724_v32  ;;  %v3723_v32 = vsel %vm3180_vm14, %v3722_v18, %v3721_v12  ;;  %v3364_v18 = vrot.slane %v6999_v48, 4 }
 0x42d   : > { %4820 = vmatprep.mubr.msk.f32.mxu1 %vm1656_vm11, %v6785_v21 }
 0x430   : > { %4821 = vmatmul.mubr.msk.f32.gmra.mxu1 %vm1656_vm11, %v6788_v29 }
 0x431   : > { %4823 = vmatprep.mubr.msk.f32.mxu1 %vm1656_vm11, %v6848_v20 }
 0x434   : > { %4824 = vmatmul.mubr.msk.f32.gmra.mxu1 %vm1656_vm11, %v6851_v61 }
 0x435   : > { %4826 = vmatprep.mubr.msk.f32.mxu1 %vm1656_vm11, %v6881_v2 }
 0x438   : > { %4827 = vmatmul.mubr.msk.f32.gmra.mxu1 %vm1656_vm11, %v6884_v53 }
 0x439   : > { %4829 = vmatprep.mubr.msk.f32.mxu1 %vm1656_vm11, %v6897_v3 }
 0x43c   : > { %v4766_v21 = vpop.f32.mrf.mxu1  ;;  %4830 = vmatmul.mubr.msk.f32.gmra.mxu1 %vm1656_vm11, %v6900_v59 }
 0x43d   : > { %v2828_v29 = vadd.f32 %v4766_v21, %v6991_v63  ;;  %4832 = vmatprep.mubr.msk.f32.mxu1 %vm1656_vm11, %v6913_v14  ;;  %v3363_v21 = vrot.slane %v7011_v52, 5 }
 0x43e   : > { %v2822_v20 = vpop.f32.mrf.mxu1 }
 0x43f   : > { %v7090_v61 = vmax.f32 %v2828_v29, 0.0  ;;  %v2823_v2 = vadd.f32 %v6991_v63, %v2822_v20  ;;  %v3397_v29 = vrot.slane %v7011_v52, 6  ;;  %v3481_v20 = vrot.slane %v6996_v13, 7 }
 0x440   : > { %4833 = vmatmul.mubr.msk.f32.gmra.mxu1 %vm1656_vm11, %v6916_v44 }
 0x441   : > { %v7095_v53 = vmax.f32 %v2823_v2, 0.0  ;;  %v3656_v3 = vrot.slane %v7090_v61, 2  ;;  %v3690_v7 = vrot.slane %v7090_v61, 3  ;;  %v3724_v25 = vrot.slane %v7090_v61, 4 }
 0x442   : > { %v3516_v2 = vsel %vm3177_vm13, %v6996_v13, %v3515_v55 }
 0x443   : > { %v3201_v59 = vrot.slane %v7095_v53, 5  ;;  %v3657_v37 = vsel %vm3183_vm15, %v3656_v3, %v3655_v34  ;;  %v3691_v28 = vsel %vm3183_vm15, %v3690_v7, %v3689_v22  ;;  %v3725_v54 = vsel %vm3183_vm15, %v3724_v25, %v3723_v32 }
 0x444   : > { %v3295_v34 = vrot.slane %v7011_v52, 3  ;;  %v3330_v22 = vrot.slane %v6999_v48, 3  ;;  %v3398_v32 = vrot.slane %v6999_v48, 5  ;;  %v3550_v3 = vrot.slane %v6996_v13, 1 }
 0x445   : > { %v3202_v14 = vsel %vm3183_vm15, %v3201_v59, %v3200_v39  ;;  %v3329_v39 = vrot.slane %v7011_v52, 4  ;;  %v3584_v59 = vrot.slane %v6996_v13, 2  ;;  %v3263_v52 = vsel %vm3177_vm13, %v3262_v45, %v3261_v26 }
 0x446   : > { %v3297_v25 = vsel %vm3177_vm13, %v3296_v46, %v3295_v34  ;;  %v3400_v26 = vrot.slane %v7055_v60, 4  ;;  %v3586_v34 = vrot.slane %v7048_v5, 1 }
 0x447   : > { %v3585_v55 = vsel %vm3177_vm13, %v3584_v59, %v3583_v56  ;;  %v3485_v59 = vrot.slane %v7090_v61, 5 }
 0x458   : > { %v4769_v44 = vpop.f32.mrf.mxu1 }
 0x459   : > { %v2838_v15 = vadd.f32 %v4769_v44, %v6991_v63  ;;  %v3331_v44 = vsel %vm3177_vm13, %v3330_v22, %v3329_v39  ;;  %v3264_v22 = vsel %vm3180_vm14, %v7055_v60, %v3263_v52  ;;  %v3402_v52 = vrot.slane %v7095_v53, 3 }
 0x45a   : > { %v2832_v42 = vpop.f32.mrf.mxu1 }
 0x45b   : > { %v7106_v4 = vmax.f32 %v2838_v15, 0.0  ;;  %v2833_v0 = vadd.f32 %v6991_v63, %v2832_v42  ;;  %v3365_v15 = vsel %vm3177_vm13, %v3364_v18, %v3363_v21  ;;  %v3399_v42 = vsel %vm3177_vm13, %v3398_v32, %v3397_v29 }
 0x45c   : > { %v3299_v21 = vsel %vm3180_vm14, %v3298_v49, %v3297_v25  ;;  %v3622_v49 = vrot.slane %v7090_v61, 1 }
 0x45d   : > { %v7111_v36 = vmax.f32 %v2833_v0, 0.0  ;;  %v3658_v38 = vrot.slane %v7106_v4, 1  ;;  %v3692_v43 = vrot.slane %v7106_v4, 2  ;;  %v3726_v7 = vrot.slane %v7106_v4, 3 }
 0x45f   : > { %v3203_v17 = vrot.slane %v7111_v36, 4  ;;  %v7120_v50 = vsel %vm3186_vm0, %v3658_v38, %v3657_v37  ;;  %v7129_v47 = vsel %vm3186_vm0, %v3692_v43, %v3691_v28  ;;  %v3618_v37 = vrot.slane %v6996_v13, 3 }
 0x460   : > { %v3228_v28 = vsel %vm3177_vm13, %v6999_v48, %v3227_v19  ;;  %v7176_v0 = vsel %vm3186_vm0, %v3726_v7, %v3725_v54  ;;  %v3434_v13 = vrot.slane %v7055_v60, 5  ;;  %v3482_v48 = vsel %vm3177_vm13, %v3481_v20, %v7001_v23 }
 0x461   : > { %v7126_v10 = vsel %vm3186_vm0, %v3203_v17, %v3202_v14  ;;  %v3433_v14 = vsel %vm3177_vm13, %v3432_v58, %v3431_v57  ;;  %v3483_v38 = vrot.slane %v7048_v5, 6  ;;  %v3517_v17 = vrot.slane %v7048_v5, 7 }
 0x462   : > { %v3551_v43 = vsel %vm3177_vm13, %v3550_v3, %v3549_v24  ;;  %v3332_v54 = vrot.slane %v7055_v60, 2  ;;  %v3366_v19 = vrot.slane %v7055_v60, 3  ;;  %v3619_v58 = vsel %vm3177_vm13, %v3618_v37, %v3617_v30 }
 0x463   : > { %v3552_v45 = vsel %vm3180_vm14, %v7048_v5, %v3551_v43  ;;  %v3620_v24 = vrot.slane %v7048_v5, 2  ;;  %v3435_v56 = vsel %vm3180_vm14, %v3434_v13, %v3433_v14  ;;  %v3230_v39 = vsel %vm3180_vm14, %v3229_v16, %v3228_v28 }
 0x464   : > { %v3484_v18 = vsel %vm3180_vm14, %v3483_v38, %v3482_v48  ;;  %v3518_v29 = vsel %vm3180_vm14, %v3517_v17, %v3516_v2  ;;  %v3333_v5 = vsel %vm3180_vm14, %v3332_v54, %v3331_v44  ;;  %v3367_v20 = vsel %vm3180_vm14, %v3366_v19, %v3365_v15 }
 0x465   : > { %v3401_v3 = vsel %vm3180_vm14, %v3400_v26, %v3399_v42  ;;  %v3436_v60 = vrot.slane %v7095_v53, 4  ;;  %v3231_v37 = vrot.slane %v7095_v53, 6  ;;  %v3265_v7 = vrot.slane %v7095_v53, 7 }
 0x466   : > { %v3519_v14 = vrot.slane %v7090_v61, 6  ;;  %v3334_v28 = vrot.slane %v7095_v53, 1  ;;  %v3368_v2 = vrot.slane %v7095_v53, 2  ;;  %v3553_v15 = vrot.slane %v7090_v61, 7 }
 0x467   : > { %v3587_v42 = vsel %vm3180_vm14, %v3586_v34, %v3585_v55  ;;  %v3621_v13 = vsel %vm3180_vm14, %v3620_v24, %v3619_v58  ;;  %v3300_v16 = vsel %vm3183_vm15, %v7095_v53, %v3299_v21  ;;  %v3486_v48 = vsel %vm3183_vm15, %v3485_v59, %v3484_v18 }
 0x468   : > { %v3588_v38 = vsel %vm3183_vm15, %v7090_v61, %v3587_v42  ;;  %v3232_v17 = vsel %vm3183_vm15, %v3231_v37, %v3230_v39  ;;  %v3266_v43 = vsel %vm3183_vm15, %v3265_v7, %v3264_v22  ;;  %v3520_v55 = vsel %vm3183_vm15, %v3519_v14, %v3518_v29 }
 0x469   : > { %v3369_v54 = vsel %vm3183_vm15, %v3368_v2, %v3367_v20  ;;  %v3403_v53 = vsel %vm3183_vm15, %v3402_v52, %v3401_v3  ;;  %v3487_v19 = vrot.slane %v7106_v4, 4  ;;  %v3438_v26 = vrot.slane %v7111_v36, 3 }
 0x46a   : > { %v3521_v61 = vrot.slane %v7106_v4, 5  ;;  %v3233_v24 = vrot.slane %v7111_v36, 5  ;;  %v3370_v39 = vrot.slane %v7111_v36, 1  ;;  %v3404_v18 = vrot.slane %v7111_v36, 2 }
 0x46b   : > { %v3555_v20 = vrot.slane %v7106_v4, 6  ;;  %v3589_v3 = vrot.slane %v7106_v4, 7  ;;  %v3623_v59 = vsel %vm3183_vm15, %v3622_v49, %v3621_v13  ;;  %v3488_v7 = vsel %vm3186_vm0, %v3487_v19, %v3486_v48 }
 0x46c   : > { %v3234_v14 = vsel %vm3186_vm0, %v3233_v24, %v3232_v17  ;;  %v3371_v52 = vsel %vm3186_vm0, %v3370_v39, %v3369_v54 }
 0x46d   : > { %v3590_v17 = vsel %vm3186_vm0, %v3589_v3, %v3588_v38 }
 0x474   : > { %v4772_v57 = vpop.f32.mrf.mxu1 }
 0x475   : > { %v2848_v23 = vadd.f32 %v4772_v57, %v6991_v63  ;;  %v3335_v57 = vsel %vm3183_vm15, %v3334_v28, %v3333_v5  ;;  %v3554_v5 = vsel %vm3183_vm15, %v3553_v15, %v3552_v45  ;;  %v3405_v15 = vsel %vm3186_vm0, %v3404_v18, %v3403_v53 }
 0x476   : > { %v2842_v46 = vpop.f32.mrf.mxu1  ;;  %v3336_v37 = vsel %vm3186_vm0, %v7111_v36, %v3335_v57  ;;  %v3556_v48 = vsel %vm3186_vm0, %v3555_v20, %v3554_v5 }
 0x477   : > { %v7201_v30 = vmax.f32 %v2848_v23, 0.0  ;;  %v2843_v32 = vadd.f32 %v6991_v63, %v2842_v46  ;;  %v3267_v46 = vrot.slane %v7111_v36, 6 }
 0x479   : > { %v7220_v25 = vsel %vm8710_vm1, %v7201_v30, %v7120_v50  ;;  %v7222_v44 = vmax.f32 %v2843_v32, 0.0  ;;  %v3437_v50 = vsel %vm3183_vm15, %v3436_v60, %v3435_v56  ;;  %v3694_v23 = vrot.slane %v7201_v30, 1 }
 0x47a   : > { %v3301_v56 = vrot.slane %v7111_v36, 7  ;;  %v3439_v45 = vsel %vm3186_vm0, %v3438_v26, %v3437_v50  ;;  %v3268_v28 = vsel %vm3186_vm0, %v3267_v46, %v3266_v43  ;;  %v3522_v36 = vsel %vm3186_vm0, %v3521_v61, %v3520_v55 }
 0x47b   : > { %v3205_v58 = vrot.slane %v7222_v44, 3  ;;  %v3695_v21 = vsel %vm8710_vm1, %v3694_v23, %v7129_v47  ;;  %v3440_v42 = vrot.slane %v7222_v44, 2  ;;  %v3489_v13 = vrot.slane %v7201_v30, 3 }
 0x47c   : > { %v3302_v2 = vsel %vm3186_vm0, %v3301_v56, %v3300_v16  ;;  %v3269_v50 = vrot.slane %v7222_v44, 5  ;;  %v3303_v16 = vrot.slane %v7222_v44, 6  ;;  %v3337_v43 = vrot.slane %v7222_v44, 7 }
 0x47d   : > { %v3206_v32 = vsel %vm8710_vm1, %v3205_v58, %v7126_v10  ;;  %v3624_v10 = vsel %vm3186_vm0, %v7106_v4, %v3623_v59  ;;  %v3235_v4 = vrot.slane %v7222_v44, 4  ;;  %v3523_v55 = vrot.slane %v7201_v30, 4 }
 0x47e   : > { %v3557_v57 = vrot.slane %v7201_v30, 5  ;;  %v3372_v19 = vsel %vm8710_vm1, %v7222_v44, %v3371_v52  ;;  %v3406_v26 = vrot.slane %v7222_v44, 1  ;;  %v3591_v61 = vrot.slane %v7201_v30, 6 }
 0x47f   : > { %v3625_v58 = vrot.slane %v7201_v30, 7  ;;  %v3441_v23 = vsel %vm8710_vm1, %v3440_v42, %v3439_v45  ;;  %v3490_v24 = vsel %vm8710_vm1, %v3489_v13, %v3488_v7  ;;  %v3270_v39 = vsel %vm8710_vm1, %v3269_v50, %v3268_v28 }
 0x480   : > { %v4775_v34 = vpop.f32.mrf.mxu1  ;;  %v3407_v59 = vsel %vm8710_vm1, %v3406_v26, %v3405_v15  ;;  %v3728_v7 = vrot.slane %v7201_v30, 2  ;;  %v3558_v28 = vsel %vm8710_vm1, %v3557_v57, %v3556_v48 }
 0x481   : > { %v2858_v22 = vadd.f32 %v4775_v34, %v6991_v63  ;;  %v3236_v34 = vsel %vm8710_vm1, %v3235_v4, %v3234_v14  ;;  %v3626_v13 = vsel %vm8710_vm1, %v3625_v58, %v3624_v10 }
 0x482   : > { %v2852_v29 = vpop.f32.mrf.mxu1  ;;  %v7321_v52 = vsel %vm8710_vm1, %v3728_v7, %v7176_v0 }
 0x483   : > { %v2853_v60 = vadd.f32 %v6991_v63, %v2852_v29  ;;  %v7265_v47 = vmax.f32 %v2858_v22, 0.0  ;;  %v3304_v22 = vsel %vm8710_vm1, %v3303_v16, %v3302_v2  ;;  %v3338_v29 = vsel %vm8710_vm1, %v3337_v43, %v3336_v37 }
 0x484   : > { %v3524_v37 = vsel %vm8710_vm1, %v3523_v55, %v3522_v36  ;;  %v3592_v36 = vsel %vm8710_vm1, %v3591_v61, %v3590_v17 }
 0x485   : > { %v7278_v49 = vmax.f32 %v2853_v60, 0.0  ;;  %v3661_v54 = vrot.slane %v7265_v47, 7  ;;  %v3696_v20 = vsel %vm8711_vm2, %v7265_v47, %v3695_v21  ;;  %v3491_v14 = vrot.slane %v7265_v47, 2 }
 0x486   : > { %v3525_v48 = vrot.slane %v7265_v47, 3  ;;  %v3559_v50 = vrot.slane %v7265_v47, 4  ;;  %v3593_v16 = vrot.slane %v7265_v47, 5  ;;  %v3627_v43 = vrot.slane %v7265_v47, 6 }
 0x487   : > { %v3442_v56 = vrot.slane %v7278_v49, 1  ;;  %v3207_v44 = vrot.slane %v7278_v49, 2  ;;  %v3662_v5 = vsel %vm8711_vm2, %v3661_v54, %v7220_v25  ;;  %v3237_v21 = vrot.slane %v7278_v49, 3 }
 0x488   : > { %v3271_v2 = vrot.slane %v7278_v49, 4  ;;  %v3305_v15 = vrot.slane %v7278_v49, 5  ;;  %v3339_v42 = vrot.slane %v7278_v49, 6  ;;  %v3373_v4 = vrot.slane %v7278_v49, 7 }
 0x489   : > { %v4778_v53 = vpop.f32.mrf.mxu1  ;;  %v3208_v60 = vsel %vm8711_vm2, %v3207_v44, %v3206_v32  ;;  %v3443_v25 = vsel %vm8711_vm2, %v3442_v56, %v3441_v23  ;;  %v3238_v17 = vsel %vm8711_vm2, %v3237_v21, %v3236_v34  ;;  %v3408_v57 = vsel %vm8711_vm2, %v7278_v49, %v3407_v59 }
 0x48a   : > { %v2868_v38 = vadd.f32 %v4778_v53, %v6991_v63  ;;  %v3272_v55 = vsel %vm8711_vm2, %v3271_v2, %v3270_v39  ;;  %v3492_v54 = vsel %vm8711_vm2, %v3491_v14, %v3490_v24  ;;  %v3306_v58 = vsel %vm8711_vm2, %v3305_v15, %v3304_v22 }
 0x48b   : > { %v2862_v46 = vpop.f32.mrf.mxu1  ;;  %v3340_v23 = vsel %vm8711_vm2, %v3339_v42, %v3338_v29  ;;  %v3374_v34 = vsel %vm8711_vm2, %v3373_v4, %v3372_v19  ;;  %v3526_v39 = vsel %vm8711_vm2, %v3525_v48, %v3524_v37  ;;  %v3560_v22 = vsel %vm8711_vm2, %v3559_v50, %v3558_v28 }
 0x48c   : > { %v2863_v18 = vadd.f32 %v6991_v63, %v2862_v46  ;;  %v7306_v3 = vmax.f32 %v2868_v38, 0.0  ;;  %v3594_v15 = vsel %vm8711_vm2, %v3593_v16, %v3592_v36 }
 0x48e   : > { %v7311_v45 = vmax.f32 %v2863_v18, 0.0  ;;  %v3663_v0 = vrot.slane %v7306_v3, 6  ;;  %v3697_v24 = vrot.slane %v7306_v3, 7  ;;  %v3527_v59 = vrot.slane %v7306_v3, 2 }
 0x48f   : > { %v3561_v21 = vrot.slane %v7306_v3, 3  ;;  %v3595_v2 = vrot.slane %v7306_v3, 4  ;;  %v3629_v42 = vrot.slane %v7306_v3, 5 }
 0x490   : > { %v3444_v30 = vsel %vm3195_vm3, %v7311_v45, %v3443_v25  ;;  %v3239_v32 = vrot.slane %v7311_v45, 2  ;;  %v3273_v61 = vrot.slane %v7311_v45, 3  ;;  %v3209_v38 = vrot.slane %v7311_v45, 1 }
 0x491   : > { %3447 = vrot.lane.b32.xlu0 %v3444_v30, %s4914_s25  ;;  %v7350_v49 = vsel %vm3195_vm3, %v3663_v0, %v3662_v5  ;;  %v3307_v19 = vrot.slane %v7311_v45, 4  ;;  %v3493_v5 = vrot.slane %v7306_v3, 1  ;;  %v3341_v37 = vrot.slane %v7311_v45, 5 }
 0x492   : > { %v3240_v26 = vsel %vm3195_vm3, %v3239_v32, %v3238_v17  ;;  %8838 = vst [vmem:[#allocation12_spill] sm:$0xff] %v7350_v49  ;;  %v7357_v44 = vsel %vm3195_vm3, %v3209_v38, %v3208_v60  ;;  %v3274_v14 = vsel %vm3195_vm3, %v3273_v61, %v3272_v55  ;;  %v7367_v28 = vsel %vm3195_vm3, %v3697_v24, %v3696_v20 }
 0x493   : > { %8839 = vst [vmem:[#allocation7_spill] sm:$0xff] %v7367_v28  ;;  %v3375_v60 = vrot.slane %v7311_v45, 6  ;;  %v3409_v25 = vrot.slane %v7311_v45, 7  ;;  %v7382_v4 = vsel %vm3195_vm3, %v3493_v5, %v3492_v54  ;;  %v3628_v0 = vsel %vm8711_vm2, %v3627_v43, %v3626_v13 }
 0x494   : > { %v4733_v10 = vpop.f32.mrf.mxu0  ;;  %v4789_v53 = vpop.f32.mrf.mxu1  ;;  %v3730_v45 = vrot.slane %v7265_v47, 1  ;;  %v3308_v50 = vsel %vm3195_vm3, %v3307_v19, %v3306_v58  ;;  %v3342_v17 = vsel %vm3195_vm3, %v3341_v37, %v3340_v23  ;;  %v7391_v55 = vsel %vm3195_vm3, %v3527_v59, %v3526_v39 }
 0x495   : > { %3243 = vrot.lane.b32.xlu0 %v3240_v26, %s4907_s28  ;;  %v2718_v46 = vadd.f32 %v4733_v10, %v6991_v63  ;;  %v2975_v18 = vadd.f32 %v4789_v53, %v6991_v63  ;;  %v3376_v36 = vsel %vm3195_vm3, %v3375_v60, %v3374_v34  ;;  %v3410_v16 = vsel %vm3195_vm3, %v3409_v25, %v3408_v57 }
 0x496   : > { %v2712_v56 = vpop.f32.mrf.mxu0  ;;  %v2969_v29 = vpop.f32.mrf.mxu1  ;;  %v7397_v54 = vsel %vm3195_vm3, %v3561_v21, %v3560_v22  ;;  %v7400_v47 = vsel %vm3195_vm3, %v3595_v2, %v3594_v15  ;;  %v7405_v43 = vsel %vm3195_vm3, %v3629_v42, %v3628_v0  ;;  %v3731_v58 = vsel %vm8711_vm2, %v3730_v45, %v7321_v52 }
 0x497   : > { %v2713_v7 = vadd.f32 %v6991_v63, %v2712_v56  ;;  %v7374_v30 = vmax.f32 %v2718_v46, 0.0  ;;  %v2970_v32 = vadd.f32 %v6991_v63, %v2969_v29  ;;  %v7379_v20 = vmax.f32 %v2975_v18, 0.0 }
 0x498   : > { %v7419_v56 = vsel %vm3195_vm3, %v7306_v3, %v3731_v58 }
 0x499   : > { %3277 = vrot.lane.b32.xlu0 %v3274_v14, %s4909_s30  ;;  %8840 = vst [vmem:[#allocation8_spill] sm:$0xff] %v7374_v30  ;;  %v7386_v48 = vmax.f32 %v2713_v7, 0.0  ;;  %v7402_v13 = vmax.f32 %v2970_v32, 0.0  ;;  %v3501_v10 = vrot.slane %v7374_v30, 1  ;;  %v3535_v53 = vrot.slane %v7374_v30, 2  ;;  %8843 = vst [vmem:[#allocation18_spill] sm:$0xff] %v7419_v56 }
 0x49a   : > { %v3569_v26 = vrot.slane %v7374_v30, 3  ;;  %v3603_v61 = vrot.slane %v7374_v30, 4  ;;  %v4114_v57 = vrot.slane %v7379_v20, 1  ;;  %v4148_v46 = vrot.slane %v7379_v20, 2 }
 0x49b   : > { %8841 = vst [vmem:[#allocation9_spill] sm:$0xff] %v7386_v48  ;;  %8842 = vst [vmem:[#allocation17_spill] sm:$0xff] %v7402_v13  ;;  %v3213_v34 = vrot.slane %v7386_v48, 1  ;;  %v3247_v24 = vrot.slane %v7386_v48, 2  ;;  %v3281_v52 = vrot.slane %v7386_v48, 3  ;;  %v3315_v18 = vrot.slane %v7386_v48, 4 }
 0x49c   : > { %v3349_v5 = vrot.slane %v7386_v48, 5  ;;  %v3383_v59 = vrot.slane %v7386_v48, 6  ;;  %v3417_v7 = vrot.slane %v7386_v48, 7  ;;  %v3826_v3 = vrot.slane %v7402_v13, 1 }
 0x49d   : > { %3311 = vrot.lane.b32.xlu0 %v3308_v50, %s4911_s12  ;;  %v3860_v25 = vrot.slane %v7402_v13, 2  ;;  %v3894_v21 = vrot.slane %v7402_v13, 3  ;;  %v3928_v2 = vrot.slane %v7402_v13, 4  ;;  %v3962_v32 = vrot.slane %v7402_v13, 5 }
 0x49e   : > { %v3996_v15 = vrot.slane %v7402_v13, 6  ;;  %v4030_v50 = vrot.slane %v7402_v13, 7 }
 0x4a0   : > { %v4736_v38 = vpop.f32.mrf.mxu0  ;;  %v4792_v23 = vpop.f32.mrf.mxu1 }
 0x4a1   : > { %v2728_v39 = vadd.f32 %v4736_v38, %v6991_v63  ;;  %v2985_v22 = vadd.f32 %v4792_v23, %v6991_v63  ;;  %3345 = vrot.lane.b32.xlu0 %v3342_v17, %s4913_s20 }
 0x4a2   : > { %v2722_v29 = vpop.f32.mrf.mxu0  ;;  %v2979_v19 = vpop.f32.mrf.mxu1 }
 0x4a3   : > { %v7430_v14 = vmax.f32 %v2728_v39, 0.0  ;;  %v2723_v37 = vadd.f32 %v6991_v63, %v2722_v29  ;;  %v2980_v60 = vadd.f32 %v6991_v63, %v2979_v19  ;;  %v7439_v42 = vmax.f32 %v2985_v22, 0.0 }
 0x4a5   : > { %8844 = vst [vmem:[#allocation10_spill] sm:$0xff] %v7430_v14  ;;  %v7441_v0 = vmax.f32 %v2723_v37, 0.0  ;;  %3379 = vrot.lane.b32.xlu0 %v3376_v36, %s4915_s26  ;;  %v3467_v45 = vrot.slane %v7430_v14, 7  ;;  %v7446_v17 = vmax.f32 %v2980_v60, 0.0  ;;  %v3536_v58 = vrot.slane %v7430_v14, 1 }
 0x4a6   : > { %v7456_v36 = vsel %vm3177_vm13, %v7430_v14, %v3501_v10  ;;  %v3570_v12 = vrot.slane %v7430_v14, 2  ;;  %v3604_v10 = vrot.slane %v7430_v14, 3  ;;  %v4080_v62 = vrot.slane %v7439_v42, 7 }
 0x4a7   : > { %8845 = vst [vmem:[#allocation13_spill] sm:$0xff] %v7441_v0  ;;  %8846 = vst [vmem:[#allocation14_spill] sm:$0xff] %v7446_v17  ;;  %v3248_v39 = vrot.slane %v7441_v0, 1  ;;  %v3282_v22 = vrot.slane %v7441_v0, 2  ;;  %v3316_v29 = vrot.slane %v7441_v0, 3  ;;  %v3350_v19 = vrot.slane %v7441_v0, 4 }
 0x4a8   : > { %v3384_v37 = vrot.slane %v7441_v0, 5  ;;  %v3418_v60 = vrot.slane %v7441_v0, 6  ;;  %v3214_v23 = vsel %vm3177_vm13, %v7441_v0, %v3213_v34  ;;  %v3468_v38 = vsel %vm3177_vm13, %v3467_v45, %v7374_v30 }
 0x4a9   : > { %3413 = vrot.lane.b32.xlu0 %v3410_v16, %s4916_s27  ;;  %v3249_v6 = vsel %vm3177_vm13, %v3248_v39, %v3247_v24  ;;  %v3283_v35 = vsel %vm3177_vm13, %v3282_v22, %v3281_v52  ;;  %v3317_v33 = vsel %vm3177_vm13, %v3316_v29, %v3315_v18  ;;  %v3537_v1 = vsel %vm3177_vm13, %v3536_v58, %v3535_v53 }
 0x4aa   : > { %v3351_v16 = vsel %vm3177_vm13, %v3350_v19, %v3349_v5  ;;  %v3385_v9 = vsel %vm3177_vm13, %v3384_v37, %v3383_v59  ;;  %v3861_v34 = vrot.slane %v7446_v17, 1  ;;  %v3895_v45 = vrot.slane %v7446_v17, 2 }
 0x4ab   : > { %v3419_v31 = vsel %vm3177_vm13, %v3418_v60, %v3417_v7  ;;  %v3929_v24 = vrot.slane %v7446_v17, 3  ;;  %v3963_v52 = vrot.slane %v7446_v17, 4  ;;  %v3997_v18 = vrot.slane %v7446_v17, 5 }
 0x4ac   : > { %v4739_v11 = vpop.f32.mrf.mxu0  ;;  %v4795_v8 = vpop.f32.mrf.mxu1  ;;  %v3571_v59 = vsel %vm3177_vm13, %v3570_v12, %v3569_v26  ;;  %v3605_v7 = vsel %vm3177_vm13, %v3604_v10, %v3603_v61  ;;  %v3827_v22 = vsel %vm3177_vm13, %v7446_v17, %v3826_v3  ;;  %v4031_v37 = vrot.slane %v7446_v17, 6 }
 0x4ad   : > { %v2738_v53 = vadd.f32 %v4739_v11, %v6991_v63  ;;  %v2995_v5 = vadd.f32 %v4795_v8, %v6991_v63  ;;  %3497 = vrot.lane.b32.xlu0 %v7382_v4, %s4917_s29  ;;  %v3862_v11 = vsel %vm3177_vm13, %v3861_v34, %v3860_v25  ;;  %v3896_v8 = vsel %vm3177_vm13, %v3895_v45, %v3894_v21 }
 0x4ae   : > { %v2732_v58 = vpop.f32.mrf.mxu0  ;;  %v2989_v39 = vpop.f32.mrf.mxu1  ;;  %v3930_v29 = vsel %vm3177_vm13, %v3929_v24, %v3928_v2  ;;  %v3964_v26 = vsel %vm3177_vm13, %v3963_v52, %v3962_v32  ;;  %v3998_v61 = vsel %vm3177_vm13, %v3997_v18, %v3996_v15  ;;  %v7505_v3 = vsel %vm3177_vm13, %v4080_v62, %v7379_v20 }
 0x4af   : > { %v7496_v4 = vmax.f32 %v2738_v53, 0.0  ;;  %v2733_v19 = vadd.f32 %v6991_v63, %v2732_v58  ;;  %v2990_v12 = vadd.f32 %v6991_v63, %v2989_v39  ;;  %v7511_v25 = vsel %vm3177_vm13, %v7439_v42, %v4114_v57 }
 0x4b0   : > { %v7513_v21 = vmax.f32 %v2995_v5, 0.0  ;;  %v4149_v15 = vrot.slane %v7439_v42, 1  ;;  %v8862_v0 = vrot.slane %v7123_v41, 2 }
 0x4b1   : > { %8847 = vst [vmem:[#allocation22_spill] sm:$0xff] %v7496_v4  ;;  %v7515_v2 = vmax.f32 %v2733_v19, 0.0  ;;  %3531 = vrot.lane.b32.xlu0 %v7391_v55, %s4918_s7  ;;  %v3469_v32 = vrot.slane %v7496_v4, 6  ;;  %v7521_v62 = vmax.f32 %v2990_v12, 0.0  ;;  %v3503_v60 = vrot.slane %v7496_v4, 7 }
 0x4b2   : > { %8848 = vst [vmem:[#allocation15_spill] sm:$0xff] %v7513_v21  ;;  %v7526_v57 = vsel %vm3180_vm14, %v7496_v4, %v3537_v1  ;;  %v3572_v10 = vrot.slane %v7496_v4, 1  ;;  %v3606_v24 = vrot.slane %v7496_v4, 2  ;;  %v4032_v1 = vsel %vm3177_vm13, %v4031_v37, %v4030_v50 }
 0x4b3   : > { %8849 = vst [vmem:[#allocation60_spill] sm:$0xff] %v7515_v2  ;;  %8850 = vst [vmem:[#allocation20_spill] sm:$0xff] %v7521_v62  ;;  %v3215_v34 = vrot.slane %v7515_v2, 7  ;;  %v3284_v45 = vrot.slane %v7515_v2, 1  ;;  %v3318_v55 = vrot.slane %v7515_v2, 2  ;;  %v3352_v52 = vrot.slane %v7515_v2, 3 }
 0x4b4   : > { %v3386_v18 = vrot.slane %v7515_v2, 4  ;;  %v3420_v53 = vrot.slane %v7515_v2, 5  ;;  %v3250_v58 = vsel %vm3180_vm14, %v7515_v2, %v3249_v6  ;;  %v3470_v19 = vsel %vm3180_vm14, %v3469_v32, %v3468_v38 }
 0x4b5   : > { %3565 = vrot.lane.b32.xlu0 %v7397_v54, %s4919_s8  ;;  %v3216_v5 = vsel %vm3180_vm14, %v3215_v34, %v3214_v23  ;;  %v3285_v39 = vsel %vm3180_vm14, %v3284_v45, %v3283_v35  ;;  %v3319_v12 = vsel %vm3180_vm14, %v3318_v55, %v3317_v33  ;;  %v3353_v27 = vsel %vm3180_vm14, %v3352_v52, %v3351_v16 }
 0x4b6   : > { %v3387_v51 = vsel %vm3180_vm14, %v3386_v18, %v3385_v9  ;;  %v3504_v50 = vsel %vm3180_vm14, %v3503_v60, %v7456_v36  ;;  %v3421_v54 = vsel %vm3180_vm14, %v3420_v53, %v3419_v31  ;;  %v3573_v23 = vsel %vm3180_vm14, %v3572_v10, %v3571_v59 }
 0x4b7   : > { %v3828_v37 = vrot.slane %v7521_v62, 7  ;;  %v3897_v6 = vrot.slane %v7521_v62, 1  ;;  %v3931_v38 = vrot.slane %v7521_v62, 2  ;;  %v3965_v33 = vrot.slane %v7521_v62, 3 }
 0x4b8   : > { %v4742_v35 = vpop.f32.mrf.mxu0  ;;  %v4798_v34 = vpop.f32.mrf.mxu1  ;;  %v3999_v16 = vrot.slane %v7521_v62, 4  ;;  %v4033_v9 = vrot.slane %v7521_v62, 5  ;;  %v3607_v59 = vsel %vm3180_vm14, %v3606_v24, %v3605_v7  ;;  %v3863_v32 = vsel %vm3180_vm14, %v7521_v62, %v3862_v11 }
 0x4b9   : > { %v2748_v36 = vadd.f32 %v4742_v35, %v6991_v63  ;;  %v3005_v31 = vadd.f32 %v4798_v34, %v6991_v63  ;;  %3599 = vrot.lane.b32.xlu0 %v7400_v47, %s4920_s9  ;;  %v3829_v45 = vsel %vm3180_vm14, %v3828_v37, %v3827_v22  ;;  %v3898_v55 = vsel %vm3180_vm14, %v3897_v6, %v3896_v8 }
 0x4ba   : > { %v2742_v60 = vpop.f32.mrf.mxu0  ;;  %v2999_v10 = vpop.f32.mrf.mxu1  ;;  %v3932_v52 = vsel %vm3180_vm14, %v3931_v38, %v3930_v29  ;;  %v3966_v18 = vsel %vm3180_vm14, %v3965_v33, %v3964_v26  ;;  %v4000_v7 = vsel %vm3180_vm14, %v3999_v16, %v3998_v61  ;;  %v4034_v11 = vsel %vm3180_vm14, %v4033_v9, %v4032_v1 }
 0x4bb   : > { %v7570_v53 = vmax.f32 %v2748_v36, 0.0  ;;  %v2743_v35 = vadd.f32 %v6991_v63, %v2742_v60  ;;  %v3000_v47 = vadd.f32 %v6991_v63, %v2999_v10  ;;  %v7575_v24 = vmax.f32 %v3005_v31, 0.0 }
 0x4bc   : > { %v4082_v22 = vrot.slane %v7513_v21, 6  ;;  %v4150_v8 = vsel %vm3177_vm13, %v4149_v15, %v4148_v46  ;;  %v4116_v26 = vrot.slane %v7513_v21, 7 }
 0x4bd   : > { %8851 = vst [vmem:[#allocation19_spill] sm:$0xff] %v7570_v53  ;;  %v7582_v29 = vmax.f32 %v2743_v35, 0.0  ;;  %3633 = vrot.lane.b32.xlu0 %v7405_v43, %s4921_s10  ;;  %v3471_v63 = vrot.slane %v7570_v53, 5  ;;  %v7589_v37 = vmax.f32 %v3000_v47, 0.0  ;;  %v3505_v1 = vrot.slane %v7570_v53, 6 }
 0x4be   : > { %v3539_v6 = vrot.slane %v7570_v53, 7  ;;  %v4083_v46 = vsel %vm3180_vm14, %v4082_v22, %v7505_v3  ;;  %v7600_v38 = vsel %vm3183_vm15, %v7570_v53, %v3573_v23  ;;  %v3608_v36 = vrot.slane %v7570_v53, 1 }
 0x4bf   : > { %8852 = vst [vmem:[#allocation26_spill] sm:$0xff] %v7582_v29  ;;  %8853 = vst [vmem:[#allocation40_spill] sm:$0xff] %v7589_v37  ;;  %v3217_v15 = vrot.slane %v7582_v29, 6  ;;  %v3251_v34 = vrot.slane %v7582_v29, 7  ;;  %v3320_v43 = vrot.slane %v7582_v29, 1  ;;  %v3354_v33 = vrot.slane %v7582_v29, 2 }
 0x4c0   : > { %v3388_v16 = vrot.slane %v7582_v29, 3  ;;  %v3422_v9 = vrot.slane %v7582_v29, 4  ;;  %v3286_v60 = vsel %vm3183_vm15, %v7582_v29, %v3285_v39  ;;  %v3472_v10 = vsel %vm3183_vm15, %v3471_v63, %v3470_v19 }
 0x4c1   : > { %v3218_v3 = vsel %vm3183_vm15, %v3217_v15, %v3216_v5  ;;  %v3252_v31 = vsel %vm3183_vm15, %v3251_v34, %v3250_v58  ;;  %v3321_v23 = vsel %vm3183_vm15, %v3320_v43, %v3319_v12  ;;  %v3355_v35 = vsel %vm3183_vm15, %v3354_v33, %v3353_v27 }
 0x4c2   : > { %v3389_v47 = vsel %vm3183_vm15, %v3388_v16, %v3387_v51  ;;  %v3506_v22 = vsel %vm3183_vm15, %v3505_v1, %v3504_v50  ;;  %v3423_v61 = vsel %vm3183_vm15, %v3422_v9, %v3421_v54  ;;  %v3540_v5 = vsel %vm3183_vm15, %v3539_v6, %v7526_v57  ;;  %v7627_v50 = vld [vmem:[%s8606_s5] ss:$0 sm:$0xff] }
 0x4c3   : > { %v3830_v58 = vrot.slane %v7589_v37, 6  ;;  %v3864_v15 = vrot.slane %v7589_v37, 7  ;;  %v3933_v19 = vrot.slane %v7589_v37, 1  ;;  %v3967_v12 = vrot.slane %v7589_v37, 2 }
 0x4c4   : > { %v4745_v39 = vpop.f32.mrf.mxu0  ;;  %v4801_v34 = vpop.f32.mrf.mxu1  ;;  %v4001_v27 = vrot.slane %v7589_v37, 3  ;;  %v4035_v51 = vrot.slane %v7589_v37, 4  ;;  %v3609_v63 = vsel %vm3183_vm15, %v3608_v36, %v3607_v59  ;;  %v3899_v1 = vsel %vm3183_vm15, %v7589_v37, %v3898_v55 }
 0x4c5   : > { %v2758_v57 = vadd.f32 %v7627_v50, %v4745_v39  ;;  %v3015_v54 = vadd.f32 %v7627_v50, %v4801_v34  ;;  %v3831_v33 = vsel %vm3183_vm15, %v3830_v58, %v3829_v45  ;;  %v3865_v16 = vsel %vm3183_vm15, %v3864_v15, %v3863_v32 }
 0x4c6   : > { %v2752_v6 = vpop.f32.mrf.mxu0  ;;  %v3009_v43 = vpop.f32.mrf.mxu1  ;;  %v3934_v9 = vsel %vm3183_vm15, %v3933_v19, %v3932_v52  ;;  %v3968_v13 = vsel %vm3183_vm15, %v3967_v12, %v3966_v18  ;;  %v4002_v59 = vsel %vm3183_vm15, %v4001_v27, %v4000_v7  ;;  %v4036_v55 = vsel %vm3183_vm15, %v4035_v51, %v4034_v11 }
 0x4c7   : > { %v7638_v62 = vmax.f32 %v2758_v57, 0.0  ;;  %v2753_v39 = vadd.f32 %v7627_v50, %v2752_v6  ;;  %v3010_v34 = vadd.f32 %v7627_v50, %v3009_v43  ;;  %v4084_v36 = vrot.slane %v7575_v24, 5 }
 0x4c8   : > { %v4117_v45 = vsel %vm3180_vm14, %v4116_v26, %v7511_v25  ;;  %v7649_v32 = vsel %vm3180_vm14, %v7513_v21, %v4150_v8  ;;  %v7651_v52 = vmax.f32 %v3015_v54, 0.0  ;;  %v4118_v15 = vrot.slane %v7575_v24, 6 }
 0x4c9   : > { %8854 = vst [vmem:[#allocation4_spill] sm:$0xff] %v7638_v62  ;;  %v7653_v18 = vmax.f32 %v2753_v39, 0.0  ;;  %v3473_v58 = vrot.slane %v7638_v62, 4  ;;  %v7657_v7 = vmax.f32 %v3010_v34, 0.0  ;;  %v3507_v11 = vrot.slane %v7638_v62, 5 }
 0x4ca   : > { %v3541_v19 = vrot.slane %v7638_v62, 6  ;;  %v4085_v25 = vsel %vm3183_vm15, %v4084_v36, %v4083_v46  ;;  %v3575_v27 = vrot.slane %v7638_v62, 7  ;;  %v7671_v6 = vsel %vm3186_vm0, %v7638_v62, %v3609_v63 }
 0x4cb   : > { %8855 = vst [vmem:[#allocation27_spill] sm:$0xff] %v7653_v18  ;;  %8856 = vst [vmem:[#allocation61_spill] sm:$0xff] %v7657_v7  ;;  %v3219_v26 = vrot.slane %v7653_v18, 5  ;;  %v3253_v8 = vrot.slane %v7653_v18, 6  ;;  %v3287_v12 = vrot.slane %v7653_v18, 7  ;;  %v3356_v51 = vrot.slane %v7653_v18, 1 }
 0x4cc   : > { %v3390_v57 = vrot.slane %v7653_v18, 2  ;;  %v3424_v54 = vrot.slane %v7653_v18, 3  ;;  %v3322_v39 = vsel %vm3186_vm0, %v7653_v18, %v3321_v23  ;;  %v3474_v34 = vsel %vm3186_vm0, %v3473_v58, %v3472_v10 }
 0x4cd   : > { %v3220_v46 = vsel %vm3186_vm0, %v3219_v26, %v3218_v3  ;;  %v3254_v43 = vsel %vm3186_vm0, %v3253_v8, %v3252_v31  ;;  %v3288_v36 = vsel %vm3186_vm0, %v3287_v12, %v3286_v60  ;;  %v3357_v37 = vsel %vm3186_vm0, %v3356_v51, %v3355_v35 }
 0x4ce   : > { %v3391_v17 = vsel %vm3186_vm0, %v3390_v57, %v3389_v47  ;;  %v3508_v48 = vsel %vm3186_vm0, %v3507_v11, %v3506_v22  ;;  %v3425_v63 = vsel %vm3186_vm0, %v3424_v54, %v3423_v61  ;;  %v3832_v29 = vrot.slane %v7657_v7, 5 }
 0x4cf   : > { %v3866_v3 = vrot.slane %v7657_v7, 6  ;;  %v3900_v31 = vrot.slane %v7657_v7, 7  ;;  %v3542_v10 = vsel %vm3186_vm0, %v3541_v19, %v3540_v5  ;;  %v3969_v60 = vrot.slane %v7657_v7, 1 }
 0x4d0   : > { %v4748_v26 = vpop.f32.mrf.mxu0  ;;  %v4804_v23 = vpop.f32.mrf.mxu1  ;;  %v4003_v35 = vrot.slane %v7657_v7, 2  ;;  %v4037_v47 = vrot.slane %v7657_v7, 3  ;;  %v3576_v58 = vsel %vm3186_vm0, %v3575_v27, %v7600_v38  ;;  %v7696_v11 = vsel %vm3186_vm0, %v7657_v7, %v3934_v9 }
 0x4d1   : > { %v2768_v22 = vadd.f32 %v7627_v50, %v4748_v26  ;;  %v3025_v61 = vadd.f32 %v7627_v50, %v4804_v23  ;;  %v3833_v5 = vsel %vm3186_vm0, %v3832_v29, %v3831_v33  ;;  %v3867_v19 = vsel %vm3186_vm0, %v3866_v3, %v3865_v16 }
 0x4d2   : > { %v2762_v8 = vpop.f32.mrf.mxu0  ;;  %v3019_v12 = vpop.f32.mrf.mxu1  ;;  %v3901_v51 = vsel %vm3186_vm0, %v3900_v31, %v3899_v1  ;;  %v3970_v57 = vsel %vm3186_vm0, %v3969_v60, %v3968_v13  ;;  %v4004_v27 = vsel %vm3186_vm0, %v4003_v35, %v4002_v59  ;;  %v4038_v23 = vsel %vm3186_vm0, %v4037_v47, %v4036_v55 }
 0x4d3   : > { %v7702_v54 = vmax.f32 %v2768_v22, 0.0  ;;  %v2763_v26 = vadd.f32 %v7627_v50, %v2762_v8  ;;  %v3020_v38 = vadd.f32 %v7627_v50, %v3019_v12  ;;  %v7707_v9 = vmax.f32 %v3025_v61, 0.0 }
 0x4d4   : > { %v4086_v29 = vrot.slane %v7651_v52, 4  ;;  %v4119_v33 = vsel %vm3183_vm15, %v4118_v15, %v4117_v45  ;;  %v4120_v1 = vrot.slane %v7651_v52, 5 }
 0x4d5   : > { %8857 = vst [vmem:[#allocation21_spill] sm:$0xff] %v7702_v54  ;;  %v7712_v16 = vmax.f32 %v2763_v26, 0.0  ;;  %v3475_v13 = vrot.slane %v7702_v54, 3  ;;  %v7717_v31 = vmax.f32 %v3020_v38, 0.0  ;;  %v3509_v59 = vrot.slane %v7702_v54, 4 }
 0x4d6   : > { %v3543_v60 = vrot.slane %v7702_v54, 5  ;;  %v7722_v55 = vsel %vm3186_vm0, %v4086_v29, %v4085_v25  ;;  %v3577_v8 = vrot.slane %v7702_v54, 6  ;;  %v3611_v12 = vrot.slane %v7702_v54, 7 }
 0x4d7   : > { %8858 = vst [vmem:[#allocation41_spill] sm:$0xff] %v7712_v16  ;;  %8859 = vst [vmem:[#allocation5_spill] sm:$0xff] %v7717_v31  ;;  %v3221_v35 = vrot.slane %v7712_v16, 4  ;;  %v3255_v45 = vrot.slane %v7712_v16, 5  ;;  %v3289_v15 = vrot.slane %v7712_v16, 6  ;;  %v3323_v47 = vrot.slane %v7712_v16, 7 }
 0x4d8   : > { %v3392_v22 = vrot.slane %v7712_v16, 1  ;;  %v3426_v61 = vrot.slane %v7712_v16, 2  ;;  %v7736_v38 = vsel %vm8710_vm1, %v7712_v16, %v3357_v37  ;;  %v7739_v29 = vsel %vm8710_vm1, %v3475_v13, %v3474_v34 }
 0x4d9   : > { %v3222_v26 = vsel %vm8710_vm1, %v3221_v35, %v3220_v46  ;;  %v3256_v25 = vsel %vm8710_vm1, %v3255_v45, %v3254_v43  ;;  %v3290_v3 = vsel %vm8710_vm1, %v3289_v15, %v3288_v36  ;;  %v3324_v7 = vsel %vm8710_vm1, %v3323_v47, %v3322_v39 }
 0x4da   : > { %v3393_v18 = vsel %vm8710_vm1, %v3392_v22, %v3391_v17  ;;  %v7745_v2 = vsel %vm8710_vm1, %v3426_v61, %v3425_v63  ;;  %v7748_v46 = vsel %vm8710_vm1, %v3509_v59, %v3508_v48  ;;  %v7751_v43 = vsel %vm8710_vm1, %v3543_v60, %v3542_v10 }
 0x4db   : > { %v3834_v37 = vrot.slane %v7717_v31, 4  ;;  %v3868_v34 = vrot.slane %v7717_v31, 5  ;;  %v7756_v36 = vsel %vm8710_vm1, %v3577_v8, %v3576_v58  ;;  %v3902_v17 = vrot.slane %v7717_v31, 6 }
 0x4dc   : > { %v4751_v13 = vpop.f32.mrf.mxu0  ;;  %v4807_v35 = vpop.f32.mrf.mxu1  ;;  %v3936_v39 = vrot.slane %v7717_v31, 7  ;;  %v4005_v63 = vrot.slane %v7717_v31, 1  ;;  %v7765_v59 = vsel %vm8710_vm1, %v3611_v12, %v7671_v6  ;;  %v7769_v60 = vsel %vm8710_vm1, %v7717_v31, %v3970_v57 }
 0x4dd   : > { %v2778_v48 = vadd.f32 %v7627_v50, %v4751_v13  ;;  %v3035_v10 = vadd.f32 %v7627_v50, %v4807_v35  ;;  %v7772_v15 = vsel %vm8710_vm1, %v3834_v37, %v3833_v5  ;;  %v7775_v47 = vsel %vm8710_vm1, %v3868_v34, %v3867_v19 }
 0x4de   : > { %v2772_v58 = vpop.f32.mrf.mxu0  ;;  %v3029_v45 = vpop.f32.mrf.mxu1  ;;  %v7778_v22 = vsel %vm8710_vm1, %v3902_v17, %v3901_v51  ;;  %v4039_v61 = vrot.slane %v7717_v31, 2  ;;  %v7787_v12 = vsel %vm8710_vm1, %v3936_v39, %v7696_v11  ;;  %v7792_v19 = vsel %vm8710_vm1, %v4005_v63, %v4004_v27 }
 0x4df   : > { %v7781_v8 = vmax.f32 %v2778_v48, 0.0  ;;  %v2773_v6 = vadd.f32 %v7627_v50, %v2772_v58  ;;  %v3030_v57 = vadd.f32 %v7627_v50, %v3029_v45  ;;  %v7789_v5 = vmax.f32 %v3035_v10, 0.0 }
 0x4e0   : > { %v4810_v37 = vpop.f32.mrf.mxu1  ;;  %v7795_v51 = vsel %vm8710_vm1, %v4039_v61, %v4038_v23  ;;  %v7798_v34 = vsel %vm3186_vm0, %v4120_v1, %v4119_v33 }
 0x4e1   : > { %8860 = vst [vmem:[#allocation23_spill] sm:$0xff] %v7781_v8  ;;  %v7800_v13 = vmax.f32 %v2773_v6, 0.0  ;;  %v3045_v35 = vadd.f32 %v7627_v50, %v4810_v37  ;;  %v7805_v39 = vmax.f32 %v3030_v57, 0.0  ;;  %v3477_v27 = vrot.slane %v7781_v8, 2 }
 0x4e2   : > { %v3039_v48 = vpop.f32.mrf.mxu1  ;;  %v3511_v63 = vrot.slane %v7781_v8, 3  ;;  %v3545_v23 = vrot.slane %v7781_v8, 4  ;;  %v3579_v58 = vrot.slane %v7781_v8, 5  ;;  %v3613_v37 = vrot.slane %v7781_v8, 6 }
 0x4e3   : > { %8861 = vst [vmem:[#allocation24_spill] sm:$0xff] %v7800_v13  ;;  %v3040_v33 = vadd.f32 %v7627_v50, %v3039_v48  ;;  %v3223_v1 = vrot.slane %v7800_v13, 3  ;;  %v3257_v10 = vrot.slane %v7800_v13, 4  ;;  %v3291_v61 = vrot.slane %v7800_v13, 5 }
 0x4e4   : > { %v4813_v45 = vpop.f32.mrf.mxu1  ;;  %v3325_v6 = vrot.slane %v7800_v13, 6  ;;  %v3359_v57 = vrot.slane %v7800_v13, 7  ;;  %v7818_v11 = vmax.f32 %v3045_v35, 0.0  ;;  %v3394_v8 = vsel %vm8711_vm2, %v7800_v13, %v3393_v18 }
 0x4e5   : > { %v3055_v17 = vadd.f32 %v7627_v50, %v4813_v45  ;;  %v3224_v48 = vsel %vm8711_vm2, %v3223_v1, %v3222_v26  ;;  %v3258_v31 = vsel %vm8711_vm2, %v3257_v10, %v3256_v25  ;;  %v3292_v28 = vsel %vm8711_vm2, %v3291_v61, %v3290_v3 }
 0x4e6   : > { %v3049_v16 = vpop.f32.mrf.mxu1  ;;  %v3226_v56 = vsel %vm3195_vm3, %v8862_v0, %v3224_v48  ;;  %v3326_v54 = vsel %vm8711_vm2, %v3325_v6, %v3324_v7  ;;  %v7830_v35 = vmax.f32 %v3040_v33, 0.0  ;;  %v8863_v25 = vrot.slane %v7123_v41, 3 }
 0x4e7   : > { %v7832_v62 = vmax.f32 %v3055_v17, 0.0  ;;  %v3050_v26 = vadd.f32 %v7627_v50, %v3049_v16  ;;  %3241 = vrot.lane.b32.xlu1 %v3226_v56, %s4907_s28  ;;  %v8864_v3 = vrot.slane %v7123_v41, 4  ;;  %v3360_v18 = vsel %vm8711_vm2, %v3359_v57, %v7736_v38 }
 0x4e8   : > { %v3260_v1 = vsel %vm3195_vm3, %v8863_v25, %v3258_v31  ;;  %v4816_v0 = vpop.f32.mrf.mxu1  ;;  %v3428_v33 = vrot.slane %v7800_v13, 1  ;;  %v3478_v17 = vsel %vm8711_vm2, %v3477_v27, %v7739_v29  ;;  %v8865_v10 = vrot.slane %v7123_v41, 5 }
 0x4e9   : > { %v3294_v7 = vsel %vm3195_vm3, %v8864_v3, %v3292_v28  ;;  %v7847_v16 = vmax.f32 %v3050_v26, 0.0  ;;  %v3065_v56 = vadd.f32 %v7627_v50, %v4816_v0  ;;  %v8866_v45 = vrot.slane %v7123_v41, 7 }
 0x4ea   : > { %v3328_v31 = vsel %vm3195_vm3, %v8865_v10, %v3326_v54  ;;  %v3059_v61 = vpop.f32.mrf.mxu1  ;;  %v8867_v38 = vrot.slane %v7123_v41, 6  ;;  %v3429_v29 = vsel %vm8711_vm2, %v3428_v33, %v7745_v2  ;;  %v8868_v27 = vrot.slane %v7116_v40, 1 }
 0x4eb   : > { %v7856_v28 = vsel %vm3195_vm3, %v8866_v45, %v3394_v8  ;;  %v3512_v54 = vsel %vm8711_vm2, %v3511_v63, %v7748_v46  ;;  %v7872_v48 = vmax.f32 %v3065_v56, 0.0  ;;  %v3060_v8 = vadd.f32 %v7627_v50, %v3059_v61  ;;  %3275 = vrot.lane.b32.xlu1 %v3260_v1, %s4909_s30 }
 0x4ec   : > { %v7861_v6 = vsel %vm3195_vm3, %v8867_v38, %v3360_v18  ;;  %v7868_v57 = vsel %vm3195_vm3, %v8868_v27, %v3478_v17  ;;  %v3546_v26 = vsel %vm8711_vm2, %v3545_v23, %v7751_v43  ;;  %v3580_v2 = vsel %vm8711_vm2, %v3579_v58, %v7756_v36  ;;  %v4819_v25 = vpop.f32.mrf.mxu1 }
 0x4ed   : > { %v7882_v0 = vsel %vm3195_vm3, %v7123_v41, %v3429_v29  ;;  %v8869_v3 = vrot.slane %v7116_v40, 2  ;;  %v4044_v63 = vrot.slane %v7847_v16, 7  ;;  %v4128_v1 = vrot.slane %v7832_v62, 1 }
 0x4ee   : > { %v7891_v18 = vmax.f32 %v3060_v8, 0.0  ;;  %v3075_v43 = vadd.f32 %v7627_v50, %v4819_v25  ;;  %v4094_v36 = vrot.slane %v7872_v48, 7  ;;  %v3614_v23 = vsel %vm8711_vm2, %v3613_v37, %v7765_v59  ;;  %v3069_v58 = vpop.f32.mrf.mxu1 }
 0x4ef   : > { %v7887_v46 = vsel %vm3195_vm3, %v8869_v3, %v3512_v54  ;;  %v8870_v33 = vrot.slane %v7116_v40, 3  ;;  %v8871_v56 = vrot.slane %v7116_v40, 4  ;;  %v4162_v45 = vrot.slane %v7832_v62, 2  ;;  %3309 = vrot.lane.b32.xlu1 %v3294_v7, %s4911_s12 }
 0x4f0   : > { %v4163_v61 = vrot.slane %v7872_v48, 1  ;;  %v7909_v38 = vmax.f32 %v3075_v43, 0.0  ;;  %v3070_v29 = vadd.f32 %v7627_v50, %v3069_v58  ;;  %v4045_v59 = vrot.slane %v7891_v18, 6  ;;  %v4822_v27 = vpop.f32.mrf.mxu1 }
 0x4f1   : > { %v7900_v17 = vsel %vm3195_vm3, %v8870_v33, %v3546_v26  ;;  %v7905_v10 = vsel %vm3195_vm3, %v8871_v56, %v3580_v2  ;;  %v4129_v37 = vsel %vm3177_vm13, %v7872_v48, %v4128_v1  ;;  %v4095_v54 = vsel %vm3177_vm13, %v4094_v36, %v7832_v62 }
 0x4f2   : > { %v8872_v8 = vrot.slane %v7116_v40, 5  ;;  %v4164_v2 = vsel %vm3177_vm13, %v4163_v61, %v4162_v45  ;;  %v3836_v25 = vrot.slane %v7805_v39, 3  ;;  %v7925_v3 = vmax.f32 %v3070_v29, 0.0  ;;  %v3079_v58 = vpop.f32.mrf.mxu1 }
 0x4f3   : > { %v3085_v7 = vadd.f32 %v7627_v50, %v4822_v27  ;;  %v4096_v43 = vrot.slane %v7909_v38, 6  ;;  %v3838_v1 = vrot.slane %v7830_v35, 2  ;;  %v4046_v36 = vsel %vm3177_vm13, %v4045_v59, %v4044_v63  ;;  %3343 = vrot.lane.b32.xlu1 %v3328_v31, %s4913_s20 }
 0x4f4   : > { %v7921_v26 = vsel %vm3195_vm3, %v8872_v8, %v3614_v23  ;;  %v4130_v33 = vrot.slane %v7909_v38, 7  ;;  %v4196_v23 = vrot.slane %v7832_v62, 3  ;;  %v4197_v56 = vrot.slane %v7872_v48, 2  ;;  %v4825_v8 = vpop.f32.mrf.mxu1 }
 0x4f5   : > { %v7934_v45 = vmax.f32 %v3085_v7, 0.0  ;;  %v3080_v61 = vadd.f32 %v7627_v50, %v3079_v58  ;;  %v4047_v29 = vrot.slane %v7925_v3, 5  ;;  %v4165_v27 = vsel %vm3180_vm14, %v7909_v38, %v4164_v2 }
 0x4f6   : > { %v4097_v63 = vsel %vm3180_vm14, %v4096_v43, %v4095_v54  ;;  %v4131_v59 = vsel %vm3180_vm14, %v4130_v33, %v4129_v37  ;;  %v3837_v41 = vsel %vm8711_vm2, %v3836_v25, %v7772_v15  ;;  %v4199_v7 = vrot.slane %v7909_v38, 1  ;;  %v3089_v53 = vpop.f32.mrf.mxu1 }
 0x4f7   : > { %v7946_v13 = vmax.f32 %v3080_v61, 0.0  ;;  %v3095_v58 = vadd.f32 %v7627_v50, %v4825_v8  ;;  %v4098_v31 = vrot.slane %v7934_v45, 5  ;;  %v4198_v40 = vsel %vm3177_vm13, %v4197_v56, %v4196_v23  ;;  %3377 = vrot.lane.b32.xlu1 %v7861_v6, %s4915_s26 }
 0x4f8   : > { %v4132_v2 = vrot.slane %v7934_v45, 6  ;;  %v4166_v54 = vrot.slane %v7934_v45, 7  ;;  %v7954_v37 = vsel %vm3195_vm3, %v3838_v1, %v3837_v41  ;;  %v4200_v15 = vsel %vm3180_vm14, %v4199_v7, %v4198_v40  ;;  %v4828_v56 = vpop.f32.mrf.mxu1 }
 0x4f9   : > { %v7957_v25 = vmax.f32 %v3095_v58, 0.0  ;;  %v3090_v43 = vadd.f32 %v7627_v50, %v3089_v53  ;;  %v4048_v33 = vsel %vm3180_vm14, %v4047_v29, %v4046_v36  ;;  %v3870_v23 = vrot.slane %v7805_v39, 4 }
 0x4fa   : > { %v4049_v61 = vrot.slane %v7946_v13, 4  ;;  %v4099_v8 = vsel %vm3183_vm15, %v4098_v31, %v4097_v63  ;;  %v4133_v41 = vsel %vm3183_vm15, %v4132_v2, %v4131_v59  ;;  %v4167_v40 = vsel %vm3183_vm15, %v4166_v54, %v4165_v27  ;;  %v3099_v36 = vpop.f32.mrf.mxu1 }
 0x4fb   : > { %v7968_v1 = vmax.f32 %v3090_v43, 0.0  ;;  %v3105_v53 = vadd.f32 %v7627_v50, %v4828_v56  ;;  %v4100_v7 = vrot.slane %v7957_v25, 4  ;;  %v4201_v6 = vsel %vm3183_vm15, %v7934_v45, %v4200_v15  ;;  %3411 = vrot.lane.b32.xlu1 %v7856_v28, %s4916_s27 }
 0x4fc   : > { %v4134_v29 = vrot.slane %v7957_v25, 5  ;;  %v4168_v58 = vrot.slane %v7957_v25, 6  ;;  %v4202_v63 = vrot.slane %v7957_v25, 7  ;;  %v3872_v59 = vrot.slane %v7830_v35, 3  ;;  %v4831_v15 = vpop.f32.mrf.mxu1 }
 0x4fd   : > { %v7978_v31 = vmax.f32 %v3105_v53, 0.0  ;;  %v3100_v27 = vadd.f32 %v7627_v50, %v3099_v36  ;;  %v4051_v2 = vrot.slane %v7968_v1, 3  ;;  %v3871_v54 = vsel %vm8711_vm2, %v3870_v23, %v7775_v47 }
 0x4fe   : > { %v4050_v43 = vsel %vm3183_vm15, %v4049_v61, %v4048_v33  ;;  %v4101_v56 = vsel %vm3186_vm0, %v4100_v7, %v4099_v8  ;;  %v4135_v30 = vsel %vm3186_vm0, %v4134_v29, %v4133_v41  ;;  %v4169_v53 = vsel %vm3186_vm0, %v4168_v58, %v4167_v40  ;;  %v3109_v14 = vpop.f32.mrf.mxu1 }
 0x4ff   : > { %v7990_v49 = vmax.f32 %v3100_v27, 0.0  ;;  %v3115_v36 = vadd.f32 %v7627_v50, %v4831_v15  ;;  %v4102_v28 = vrot.slane %v7978_v31, 3  ;;  %v4203_v4 = vsel %vm3186_vm0, %v4202_v63, %v4201_v6  ;;  %3445 = vrot.lane.b32.xlu1 %v7882_v0, %s4914_s25 }
 0x500   : > { %v4136_v47 = vrot.slane %v7978_v31, 4  ;;  %v4170_v23 = vrot.slane %v7978_v31, 5  ;;  %v4204_v33 = vrot.slane %v7978_v31, 6  ;;  %v7999_v61 = vsel %vm3195_vm3, %v3872_v59, %v3871_v54  ;;  %v4834_v6 = vpop.f32.mrf.mxu1 }
 0x501   : > { %v8001_v8 = vmax.f32 %v3115_v36, 0.0  ;;  %v3110_v41 = vadd.f32 %v7627_v50, %v3109_v14  ;;  %v4052_v40 = vsel %vm3186_vm0, %v4051_v2, %v4050_v43  ;;  %v3840_v7 = vrot.slane %v7847_v16, 1 }
 0x502   : > { %v4053_v29 = vrot.slane %v7990_v49, 2  ;;  %v4103_v58 = vsel %vm8710_vm1, %v4102_v28, %v4101_v56  ;;  %v4137_v63 = vsel %vm8710_vm1, %v4136_v47, %v4135_v30  ;;  %v4171_v59 = vsel %vm8710_vm1, %v4170_v23, %v4169_v53  ;;  %v3119_v2 = vpop.f32.mrf.mxu1 }
 0x503   : > { %v8012_v27 = vmax.f32 %v3110_v41, 0.0  ;;  %v3125_v14 = vadd.f32 %v7627_v50, %v4834_v6  ;;  %v4104_v54 = vrot.slane %v8001_v8, 2  ;;  %v4205_v0 = vsel %vm8710_vm1, %v4204_v33, %v4203_v4  ;;  %v8025_v28 = vpop.permute.xlu0 %3447  ;;  %3495 = vrot.lane.b32.xlu1 %v7868_v57, %s4917_s29 }
 0x504   : > { %v4138_v15 = vrot.slane %v8001_v8, 3  ;;  %v4172_v43 = vrot.slane %v8001_v8, 4  ;;  %v4206_v36 = vrot.slane %v8001_v8, 5  ;;  %v3841_v30 = vsel %vm3177_vm13, %v7891_v18, %v3840_v7 }
 0x505   : > { %v8022_v56 = vmax.f32 %v3125_v14, 0.0  ;;  %v3120_v53 = vadd.f32 %v7627_v50, %v3119_v2  ;;  %v4055_v4 = vrot.slane %v8012_v27, 1  ;;  %v3842_v47 = vrot.slane %v7925_v3, 7 }
 0x506   : > { %v4054_v23 = vsel %vm8710_vm1, %v4053_v29, %v4052_v40  ;;  %v4105_v33 = vsel %vm8711_vm2, %v4104_v54, %v4103_v58  ;;  %v4139_v41 = vsel %vm8711_vm2, %v4138_v15, %v4137_v63  ;;  %v4173_v7 = vsel %vm8711_vm2, %v4172_v43, %v4171_v59 }
 0x507   : > { %v8035_v6 = vmax.f32 %v3120_v53, 0.0  ;;  %v4056_v50 = vsel %vm8711_vm2, %v4055_v4, %v4054_v23  ;;  %v4106_v14 = vrot.slane %v8022_v56, 1  ;;  %v4140_v57 = vrot.slane %v8022_v56, 2  ;;  %v3244_v58 = vpop.permute.xlu0 %3243  ;;  %3529 = vrot.lane.b32.xlu1 %v7887_v46, %s4918_s7 }
 0x508   : > { %v4174_v2 = vrot.slane %v8022_v56, 3  ;;  %v4207_v21 = vsel %vm8711_vm2, %v4206_v36, %v4205_v0  ;;  %v3844_v40 = vrot.slane %v7946_v13, 6  ;;  %v3846_v29 = vrot.slane %v7968_v1, 5 }
 0x509   : > { %v4057_v63 = vsel %vm3195_vm3, %v8035_v6, %v4056_v50  ;;  %v4208_v59 = vrot.slane %v8022_v56, 4  ;;  %v3843_v54 = vsel %vm3180_vm14, %v3842_v47, %v3841_v30  ;;  %v3848_v15 = vrot.slane %v7990_v49, 4 }
 0x50a   : > { %v3740_v0 = vsel %vm8712_vm6, %v7357_v44, %v3244_v58  ;;  %4060 = vrot.lane.b32.xlu0 %v4057_v63, %s4914_s25  ;;  %v4107_v43 = vsel %vm3195_vm3, %v4106_v14, %v4105_v33  ;;  %v4141_v36 = vsel %vm3195_vm3, %v4140_v57, %v4139_v41  ;;  %v4175_v46 = vsel %vm3195_vm3, %v4174_v2, %v4173_v7 }
 0x50b   : > { %v3845_v53 = vsel %vm3183_vm15, %v3844_v40, %v3843_v54  ;;  %v3850_v4 = vrot.slane %v8012_v27, 3  ;;  %v3852_v23 = vrot.slane %v8035_v6, 2  ;;  %v3904_v30 = vrot.slane %v7805_v39, 5  ;;  %v3278_v14 = vpop.permute.xlu0 %3277  ;;  %3563 = vrot.lane.b32.xlu1 %v7900_v17, %s4919_s8 }
 0x50c   : > { %v3847_v47 = vsel %vm3186_vm0, %v3846_v29, %v3845_v53  ;;  %v3906_v44 = vrot.slane %v7830_v35, 4  ;;  %v3874_v50 = vrot.slane %v7847_v16, 2  ;;  %v3875_v33 = vrot.slane %v7891_v18, 1 }
 0x50d   : > { %v8068_v41 = vsel %vm3195_vm3, %v4208_v59, %v4207_v21  ;;  %v3849_v7 = vsel %vm8710_vm1, %v3848_v15, %v3847_v47  ;;  %v3878_v57 = vrot.slane %v7946_v13, 7  ;;  %v3880_v2 = vrot.slane %v7968_v1, 6 }
 0x50e   : > { %v3742_v40 = vsel %vm1524_vm7, %v3740_v0, %v3278_v14  ;;  %4110 = vrot.lane.b32.xlu0 %v4107_v43, %s4917_s29  ;;  %v3851_v29 = vsel %vm8711_vm2, %v3850_v4, %v3849_v7  ;;  %v3905_v58 = vsel %vm8711_vm2, %v3904_v30, %v7778_v22  ;;  %v3876_v17 = vsel %vm3177_vm13, %v3875_v33, %v3874_v50 }
 0x50f   : > { %v8080_v21 = vsel %vm3195_vm3, %v3852_v23, %v3851_v29  ;;  %v3877_v63 = vsel %vm3180_vm14, %v7925_v3, %v3876_v17  ;;  %v3882_v59 = vrot.slane %v7990_v49, 5  ;;  %v3884_v54 = vrot.slane %v8012_v27, 4  ;;  %v3312_v53 = vpop.permute.xlu0 %3311  ;;  %3597 = vrot.lane.b32.xlu1 %v7905_v10, %s4920_s9 }
 0x510   : > { %v8087_v15 = vsel %vm3195_vm3, %v3906_v44, %v3905_v58  ;;  %v3879_v0 = vsel %vm3183_vm15, %v3878_v57, %v3877_v63  ;;  %v3886_v22 = vrot.slane %v8035_v6, 3  ;;  %v3938_v43 = vrot.slane %v7805_v39, 6 }
 0x511   : > { %v3881_v4 = vsel %vm3186_vm0, %v3880_v2, %v3879_v0  ;;  %v3908_v23 = vrot.slane %v7847_v16, 3  ;;  %v3909_v30 = vrot.slane %v7891_v18, 2  ;;  %v3911_v47 = vrot.slane %v7925_v3, 1 }
 0x512   : > { %v3744_v44 = vsel %vm1590_vm9, %v3742_v40, %v3312_v53  ;;  %4144 = vrot.lane.b32.xlu0 %v4141_v36, %s4918_s7  ;;  %v3883_v50 = vsel %vm8710_vm1, %v3882_v59, %v3881_v4  ;;  %v3940_v33 = vrot.slane %v7830_v35, 5  ;;  %v3914_v14 = vrot.slane %v7968_v1, 7 }
 0x513   : > { %v3885_v10 = vsel %vm8711_vm2, %v3884_v54, %v3883_v50  ;;  %v3939_v7 = vsel %vm8711_vm2, %v3938_v43, %v7787_v12  ;;  %v3910_v57 = vsel %vm3177_vm13, %v3909_v30, %v3908_v23  ;;  %v3916_v2 = vrot.slane %v7990_v49, 6  ;;  %v3346_v17 = vpop.permute.xlu0 %3345  ;;  %3631 = vrot.lane.b32.xlu1 %v7921_v26, %s4921_s10 }
 0x514   : > { %v3912_v40 = vsel %vm3180_vm14, %v3911_v47, %v3910_v57  ;;  %v3918_v36 = vrot.slane %v8012_v27, 5  ;;  %v3920_v29 = vrot.slane %v8035_v6, 4  ;;  %v3972_v58 = vrot.slane %v7805_v39, 7 }
 0x515   : > { %v3913_v12 = vsel %vm3183_vm15, %v7946_v13, %v3912_v40  ;;  %v3974_v63 = vrot.slane %v7830_v35, 6  ;;  %v3942_v59 = vrot.slane %v7847_v16, 4  ;;  %v3943_v54 = vrot.slane %v7891_v18, 3 }
 0x516   : > { %v3746_v0 = vsel %vm1656_vm11, %v3744_v44, %v3346_v17  ;;  %4178 = vrot.lane.b32.xlu0 %v4175_v46, %s4919_s8  ;;  %v8122_v43 = vsel %vm3195_vm3, %v3940_v33, %v3939_v7  ;;  %v3915_v53 = vsel %vm3186_vm0, %v3914_v14, %v3913_v12  ;;  %v3945_v26 = vrot.slane %v7925_v3, 2 }
 0x517   : > { %v3917_v4 = vsel %vm8710_vm1, %v3916_v2, %v3915_v53  ;;  %v3973_v23 = vsel %vm8711_vm2, %v3972_v58, %v7769_v60  ;;  %v3944_v30 = vsel %vm3177_vm13, %v3943_v54, %v3942_v59  ;;  %v3947_v47 = vrot.slane %v7946_v13, 1  ;;  %v3380_v14 = vpop.permute.xlu0 %3379  ;;  %3854 = vrot.lane.b32.xlu1 %v7954_v37, %s4907_s28 }
 0x518   : > { %v3919_v44 = vsel %vm8711_vm2, %v3918_v36, %v3917_v4  ;;  %v3946_v46 = vsel %vm3180_vm14, %v3945_v26, %v3944_v30  ;;  %v3950_v50 = vrot.slane %v7990_v49, 7  ;;  %v3952_v33 = vrot.slane %v8012_v27, 6 }
 0x519   : > { %v3887_v7 = vsel %vm3195_vm3, %v3886_v22, %v3885_v10  ;;  %v8139_v60 = vsel %vm3195_vm3, %v3920_v29, %v3919_v44  ;;  %v8142_v57 = vsel %vm3195_vm3, %v3974_v63, %v3973_v23  ;;  %v3948_v2 = vsel %vm3183_vm15, %v3947_v47, %v3946_v46 }
 0x51a   : > { %v3749_v40 = vsel %vm8707_vm4, %v3746_v0, %v3380_v14  ;;  %4212 = vrot.lane.b32.xlu0 %v8068_v41, %s4920_s9  ;;  %v3949_v36 = vsel %vm3186_vm0, %v7968_v1, %v3948_v2  ;;  %v4008_v37 = vrot.slane %v7830_v35, 7  ;;  %v3976_v22 = vrot.slane %v7847_v16, 5 }
 0x51b   : > { %v3951_v10 = vsel %vm8710_vm1, %v3950_v50, %v3949_v36  ;;  %v3977_v29 = vrot.slane %v7891_v18, 4  ;;  %v3979_v58 = vrot.slane %v7925_v3, 3  ;;  %v3981_v17 = vrot.slane %v7946_v13, 2  ;;  %v3414_v54 = vpop.permute.xlu0 %3413  ;;  %3888 = vrot.lane.b32.xlu1 %v7999_v61, %s4909_s30 }
 0x51c   : > { %v3953_v12 = vsel %vm8711_vm2, %v3952_v33, %v3951_v10  ;;  %v3954_v41 = vrot.slane %v8035_v6, 5  ;;  %v4007_v63 = vsel %vm8711_vm2, %v7805_v39, %v7792_v19  ;;  %v3983_v59 = vrot.slane %v7968_v1, 1 }
 0x51d   : > { %v8165_v0 = vsel %vm3195_vm3, %v4008_v37, %v4007_v63  ;;  %v3978_v53 = vsel %vm3177_vm13, %v3977_v29, %v3976_v22  ;;  %v3986_v26 = vrot.slane %v8012_v27, 7  ;;  %v4041_v4 = vrot.slane %v7805_v39, 1 }
 0x51e   : > { %v3752_v23 = vsel %vm3750_vm5, %v3749_v40, %v3414_v54  ;;  %3856 = vrot.lane.b32.xlu0 %v8080_v21, %s4907_s28  ;;  %v3980_v19 = vsel %vm3180_vm14, %v3979_v58, %v3978_v53  ;;  %v4010_v30 = vrot.slane %v7847_v16, 6  ;;  %v4011_v61 = vrot.slane %v7891_v18, 5  ;;  %s4922_s28 = smov 104  }
 0x51f   : > { %v3755_v47 = vsel %vm8708_vm8, %v3752_v23, %v8025_v28  ;;  %vm3762_vm4 = vcmask 654336   ;;  %v3982_v44 = vsel %vm3183_vm15, %v3981_v17, %v3980_v19  ;;  %v4042_v46 = vsel %vm8711_vm2, %v4041_v4, %v7795_v51  ;;  %v3498_v40 = vpop.permute.xlu0 %3497  ;;  %3922 = vrot.lane.b32.xlu1 %v8087_v15, %s4911_s12 }
 0x520   : > { %v4013_v50 = vrot.slane %v7925_v3, 4  ;;  %v3955_v33 = vsel %vm3195_vm3, %v3954_v41, %v3953_v12  ;;  %v3984_v21 = vsel %vm3186_vm0, %v3983_v59, %v3982_v44  ;;  %v4012_v14 = vsel %vm3177_vm13, %v4011_v61, %v4010_v30 }
 0x521   : > { %v4015_v2 = vrot.slane %v7946_v13, 3  ;;  %v3988_v28 = vrot.slane %v8035_v6, 6  ;;  %v4017_v51 = vrot.slane %v7968_v1, 2  ;;  %v4019_v37 = vrot.slane %v7990_v49, 1 }
 0x522   : > { %v4014_v36 = vsel %vm3180_vm14, %v4013_v50, %v4012_v14  ;;  %v3758_v22 = vsel %vm8709_vm10, %v3755_v47, %v3498_v40  ;;  %3890 = vrot.lane.b32.xlu0 %v3887_v7, %s4909_s30  ;;  %v3985_v10 = vsel %vm8710_vm1, %v7990_v49, %v3984_v21  ;;  %v8198_v29 = vsel %vm3195_vm3, %v7830_v35, %v4042_v46  ;;  %s4923_s30 = smov 112  }
 0x523   : > { %v4016_v15 = vsel %vm3183_vm15, %v4015_v2, %v4014_v36  ;;  %vm3765_vm8 = vcmask 719872   ;;  %v4022_v17 = vrot.slane %v8035_v6, 7  ;;  %v8873_v12 = vrot.slane %v7707_v9, 3  ;;  %v3532_v4 = vpop.permute.xlu0 %3531  ;;  %3956 = vrot.lane.b32.xlu1 %v8122_v43, %s4913_s20 }
 0x524   : > { %v4018_v58 = vsel %vm3186_vm0, %v4017_v51, %v4016_v15  ;;  %v4090_v7 = vrot.slane %v7789_v5, 2  ;;  %v4092_v59 = vrot.slane %v7818_v11, 1  ;;  %v4230_v54 = vrot.slane %v7832_v62, 4 }
 0x525   : > { %v4089_v41 = vsel %vm8710_vm1, %v8873_v12, %v7722_v55  ;;  %v4020_v63 = vsel %vm8710_vm1, %v4019_v37, %v4018_v58  ;;  %v4231_v53 = vrot.slane %v7872_v48, 3  ;;  %v3987_v23 = vsel %vm8711_vm2, %v3986_v26, %v3985_v10 }
 0x526   : > { %v4091_v19 = vsel %vm8711_vm2, %v4090_v7, %v4089_v41  ;;  %v4233_v55 = vrot.slane %v7909_v38, 2  ;;  %v4235_v30 = vrot.slane %v7934_v45, 1  ;;  %v3761_v61 = vsel %vm3759_vm12, %v3758_v22, %v3532_v4  ;;  %3924 = vrot.lane.b32.xlu0 %v8139_v60, %s4911_s12  ;;  %s4924_s12 = smov 120  }
 0x527   : > { %v4021_v47 = vsel %vm8711_vm2, %v8012_v27, %v4020_v63  ;;  %v8224_v44 = vsel %vm3195_vm3, %v4092_v59, %v4091_v19  ;;  %v4232_v43 = vsel %vm3177_vm13, %v4231_v53, %v4230_v54  ;;  %v3989_v26 = vsel %vm3195_vm3, %v3988_v28, %v3987_v23  ;;  %v3566_v51 = vpop.permute.xlu0 %3565  ;;  %3990 = vrot.lane.b32.xlu1 %v8142_v57, %s4915_s26 }
 0x528   : > { %vm8713_vm10 = vcmask 785408   ;;  %v4023_v46 = vsel %vm3195_vm3, %v4022_v17, %v4021_v47  ;;  %v4234_v50 = vsel %vm3180_vm14, %v4233_v55, %v4232_v43  ;;  %v4238_v21 = vrot.slane %v7978_v31, 7 }
 0x529   : > { %v4236_v14 = vsel %vm3183_vm15, %v4235_v30, %v4234_v50  ;;  %v8874_v60 = vrot.slane %v7707_v9, 4  ;;  %v4124_v40 = vrot.slane %v7789_v5, 3  ;;  %v4126_v36 = vrot.slane %v7818_v11, 2 }
 0x52a   : > { %v4240_v28 = vrot.slane %v8001_v8, 6  ;;  %v8875_v37 = vrot.slane %v7575_v24, 7  ;;  %v4154_v10 = vrot.slane %v7651_v52, 6  ;;  %v4156_v15 = vrot.slane %v7707_v9, 5  ;;  %3958 = vrot.lane.b32.xlu0 %v3955_v33, %s4913_s20  ;;  %s4555_s20 = sshll.u32 %s8924_s22, 5 }
 0x52b   : > { %v4123_v2 = vsel %vm8710_vm1, %v8874_v60, %v7798_v34  ;;  %v3764_v34 = vsel %vm3762_vm4, %v3761_v61, %v3566_v51  ;;  %v4242_v58 = vrot.slane %v8022_v56, 5  ;;  %v4158_v57 = vrot.slane %v7789_v5, 4  ;;  %v3600_v53 = vpop.permute.xlu0 %3599  ;;  %4024 = vrot.lane.b32.xlu1 %v8165_v0, %s4916_s27  ;;  %s8552_s22 = scalar_lea.vmem %s8607_s6, %s4555_s20 }
 0x52c   : > { %v4153_v22 = vsel %vm3183_vm15, %v8875_v37, %v7649_v32  ;;  %v4125_v17 = vsel %vm8711_vm2, %v4124_v40, %v4123_v2  ;;  %v4237_v12 = vsel %vm3186_vm0, %v7957_v25, %v4236_v14  ;;  %v4160_v7 = vrot.slane %v7818_v11, 3  ;;  %v8878_v2 = vld [vmem:[#allocation15_spill] sm:$0xff] }
 0x52d   : > { %v8255_v41 = vsel %vm3195_vm3, %v4126_v36, %v4125_v17  ;;  %v4155_v32 = vsel %vm3186_vm0, %v4154_v10, %v4153_v22  ;;  %v4239_v63 = vsel %vm8710_vm1, %v4238_v21, %v4237_v12  ;;  %v4264_v59 = vrot.slane %v7832_v62, 5 }
 0x52e   : > { %v4157_v33 = vsel %vm8710_vm1, %v4156_v15, %v4155_v32  ;;  %v4265_v54 = vrot.slane %v7872_v48, 4  ;;  %v4267_v23 = vrot.slane %v7909_v38, 3  ;;  %v4269_v19 = vrot.slane %v7934_v45, 2  ;;  %3992 = vrot.lane.b32.xlu0 %v3989_v26, %s4915_s26 }
 0x52f   : > { %v4159_v4 = vsel %vm8711_vm2, %v4158_v57, %v4157_v33  ;;  %v4271_v55 = vrot.slane %v7957_v25, 1  ;;  %v3767_v30 = vsel %vm3765_vm8, %v3764_v34, %v3600_v53  ;;  %v4241_v61 = vsel %vm8711_vm2, %v4240_v28, %v4239_v63  ;;  %v3634_v37 = vpop.permute.xlu0 %3633  ;;  %4058 = vrot.lane.b32.xlu1 %v8198_v29, %s4914_s25 }
 0x530   : > { %v8273_v47 = vsel %vm3195_vm3, %v4160_v7, %v4159_v4  ;;  %v4266_v43 = vsel %vm3177_vm13, %v4265_v54, %v4264_v59  ;;  %v4243_v0 = vsel %vm3195_vm3, %v4242_v58, %v4241_v61  ;;  %v8876_v21 = vrot.slane %v7379_v20, 3 }
 0x531   : > { %v4268_v50 = vsel %vm3180_vm14, %v4267_v23, %v4266_v43  ;;  %v8877_v14 = vrot.slane %v7439_v42, 2  ;;  %v4185_v40 = vrot.slane %v8878_v2, 1  ;;  %v4274_v36 = vrot.slane %v8001_v8, 7 }
 0x532   : > { %v4270_v26 = vsel %vm3183_vm15, %v4269_v19, %v4268_v50  ;;  %v4188_v51 = vrot.slane %v7651_v52, 7  ;;  %v4190_v28 = vrot.slane %v7707_v9, 6  ;;  %v4192_v15 = vrot.slane %v7789_v5, 5  ;;  %4026 = vrot.lane.b32.xlu0 %v4023_v46, %s4916_s27 }
 0x533   : > { %v4184_v60 = vsel %vm3177_vm13, %v8877_v14, %v8876_v21  ;;  %v4272_v22 = vsel %vm3186_vm0, %v4271_v55, %v4270_v26  ;;  %v4217_v34 = vrot.slane %v7439_v42, 3  ;;  %v8295_v58 = vsel %vm8713_vm10, %v3767_v30, %v3634_v37  ;;  %4108 = vrot.lane.b32.xlu1 %v8224_v44, %s4917_s29 }
 0x534   : > { %v4186_v10 = vsel %vm3180_vm14, %v4185_v40, %v4184_v60  ;;  %v4194_v57 = vrot.slane %v7818_v11, 4  ;;  %v4219_v29 = vrot.slane %v8878_v2, 2  ;;  %v4276_v12 = vrot.slane %v8022_v56, 6 }
 0x535   : > { %v4187_v17 = vsel %vm3183_vm15, %v7575_v24, %v4186_v10  ;;  %v8879_v7 = vrot.slane %v7379_v20, 4  ;;  %v4221_v33 = vrot.slane %v7575_v24, 1  ;;  %v4273_v46 = vsel %vm8710_vm1, %v7978_v31, %v4272_v22  ;;  %v8880_v22 = vld [vmem:[#allocation10_spill] sm:$0xff] }
 0x536   : > { %v4189_v32 = vsel %vm3186_vm0, %v4188_v51, %v4187_v17  ;;  %v4224_v53 = vrot.slane %v7707_v9, 7  ;;  %v4226_v19 = vrot.slane %v7789_v5, 6  ;;  %v4228_v55 = vrot.slane %v7818_v11, 5  ;;  %4246 = vrot.lane.b32.xlu0 %v4243_v0, %s4921_s10 }
 0x537   : > { %v4218_v63 = vsel %vm3177_vm13, %v4217_v34, %v8879_v7  ;;  %v4191_v59 = vsel %vm8710_vm1, %v4190_v28, %v4189_v32  ;;  %v4298_v43 = vrot.slane %v7832_v62, 6  ;;  %v4299_v50 = vrot.slane %v7872_v48, 5  ;;  %4142 = vrot.lane.b32.xlu1 %v8255_v41, %s4918_s7  ;;  %v8884_v7 = vld [vmem:[#allocation19_spill] sm:$0xff] }
 0x538   : > { %v4220_v54 = vsel %vm3180_vm14, %v4219_v29, %v4218_v63  ;;  %v4193_v4 = vsel %vm8711_vm2, %v4192_v15, %v4191_v59  ;;  %v4301_v21 = vrot.slane %v7909_v38, 4  ;;  %v4303_v14 = vrot.slane %v7934_v45, 3  ;;  %v8881_v15 = vld [vmem:[#allocation22_spill] sm:$0xff]  ;;  %v8883_v29 = vld [vmem:[#allocation8_spill] sm:$0xff] }
 0x539   : > { %v4222_v23 = vsel %vm3183_vm15, %v4221_v33, %v4220_v54  ;;  %v4195_v30 = vsel %vm3195_vm3, %v4194_v57, %v4193_v4  ;;  %v4305_v60 = vrot.slane %v7957_v25, 2  ;;  %v4275_v40 = vsel %vm8711_vm2, %v4274_v36, %v4273_v46  ;;  %v8882_v36 = vld [vmem:[#allocation12_spill] sm:$0xff] }
 0x53a   : > { %v4223_v61 = vsel %vm3186_vm0, %v7651_v52, %v4222_v23  ;;  %v4300_v26 = vsel %vm3177_vm13, %v4299_v50, %v4298_v43  ;;  %v4307_v51 = vrot.slane %v7978_v31, 1  ;;  %v3638_v10 = vrot.slane %v8880_v22, 4  ;;  %3667 = vrot.lane.b32.xlu0 %v8882_v36, %s4922_s28  ;;  %v8885_v33 = vld [vmem:[#allocation4_spill] sm:$0xff]  ;;  %v8887_v36 = vld [vmem:[#allocation21_spill] sm:$0xff] }
 0x53b   : > { %v4225_v44 = vsel %vm8710_vm1, %v4224_v53, %v4223_v61  ;;  %v4302_v37 = vsel %vm3180_vm14, %v4301_v21, %v4300_v26  ;;  %v3640_v34 = vrot.slane %v8881_v15, 3  ;;  %v4277_v17 = vsel %vm3195_vm3, %v4276_v12, %v4275_v40  ;;  %4176 = vrot.lane.b32.xlu1 %v8273_v47, %s4919_s8 }
 0x53c   : > { %v4227_v0 = vsel %vm8711_vm2, %v4226_v19, %v4225_v44  ;;  %v4304_v57 = vsel %vm3183_vm15, %v4303_v14, %v4302_v37  ;;  %v3637_v32 = vrot.slane %v8883_v29, 5  ;;  %v3642_v41 = vrot.slane %v8884_v7, 2  ;;  %v8886_v44 = vld [vmem:[#allocation23_spill] sm:$0xff] }
 0x53d   : > { %v4229_v28 = vsel %vm3195_vm3, %v4228_v55, %v4227_v0  ;;  %v4306_v63 = vsel %vm3186_vm0, %v4305_v60, %v4304_v57  ;;  %v3644_v46 = vrot.slane %v8885_v33, 1  ;;  %v4250_v59 = vrot.slane %v7379_v20, 5 }
 0x53e   : > { %v4251_v54 = vrot.slane %v7439_v42, 4  ;;  %v4308_v53 = vsel %vm8710_vm1, %v4307_v51, %v4306_v63  ;;  %v3639_v4 = vsel %vm3177_vm13, %v3638_v10, %v3637_v32  ;;  %v4253_v12 = vrot.slane %v8878_v2, 3  ;;  %4280 = vrot.lane.b32.xlu0 %v4277_v17, %s4922_s28  ;;  %v8888_v63 = vld [vmem:[#allocation7_spill] sm:$0xff] }
 0x53f   : > { %v4255_v23 = vrot.slane %v7575_v24, 2  ;;  %v4310_v19 = vrot.slane %v8022_v56, 7  ;;  %v3641_v55 = vsel %vm3180_vm14, %v3640_v34, %v3639_v4  ;;  %v4257_v43 = vrot.slane %v7651_v52, 1  ;;  %4210 = vrot.lane.b32.xlu1 %v4195_v30, %s4920_s9 }
 0x540   : > { %v4252_v61 = vsel %vm3177_vm13, %v4251_v54, %v4250_v59  ;;  %v3643_v50 = vsel %vm3183_vm15, %v3642_v41, %v3641_v55  ;;  %v3647_v21 = vrot.slane %v8886_v44, 7  ;;  %v4260_v60 = vrot.slane %v7789_v5, 7 }
 0x541   : > { %v4254_v14 = vsel %vm3180_vm14, %v4253_v12, %v4252_v61  ;;  %v4309_v47 = vsel %vm8711_vm2, %v8001_v8, %v4308_v53  ;;  %v3645_v40 = vsel %vm3186_vm0, %v3644_v46, %v3643_v50  ;;  %v4262_v26 = vrot.slane %v7818_v11, 6 }
 0x542   : > { %v4256_v0 = vsel %vm3183_vm15, %v4255_v23, %v4254_v14  ;;  %v4332_v37 = vrot.slane %v7832_v62, 7  ;;  %v4333_v10 = vrot.slane %v7872_v48, 6  ;;  %v4335_v34 = vrot.slane %v7909_v38, 5  ;;  %3701 = vrot.lane.b32.xlu0 %v8888_v63, %s4923_s30 }
 0x543   : > { %v4258_v51 = vsel %vm3186_vm0, %v4257_v43, %v4256_v0  ;;  %v3646_v17 = vsel %vm8710_vm1, %v8887_v36, %v3645_v40  ;;  %v4337_v32 = vrot.slane %v7934_v45, 4  ;;  %v4339_v41 = vrot.slane %v7957_v25, 3  ;;  %4244 = vrot.lane.b32.xlu1 %v4229_v28, %s4921_s10 }
 0x544   : > { %v4259_v57 = vsel %vm8710_vm1, %v7707_v9, %v4258_v51  ;;  %v4334_v48 = vsel %vm3177_vm13, %v4333_v10, %v4332_v37  ;;  %v4341_v38 = vrot.slane %v7978_v31, 2  ;;  %v4343_v30 = vrot.slane %v8001_v8, 1 }
 0x545   : > { %v4261_v62 = vsel %vm8711_vm2, %v4260_v60, %v4259_v57  ;;  %v4336_v59 = vsel %vm3180_vm14, %v4335_v34, %v4334_v48  ;;  %v3671_v45 = vrot.slane %v8883_v29, 6  ;;  %v3672_v25 = vrot.slane %v8880_v22, 5 }
 0x546   : > { %v4263_v46 = vsel %vm3195_vm3, %v4262_v26, %v4261_v62  ;;  %v4311_v54 = vsel %vm3195_vm3, %v4310_v19, %v4309_v47  ;;  %v3648_v53 = vsel %vm8711_vm2, %v3647_v21, %v3646_v17  ;;  %v4338_v4 = vsel %vm3183_vm15, %v4337_v32, %v4336_v59  ;;  %v8889_v47 = vld [vmem:[#allocation6_spill] sm:$0xff] }
 0x547   : > { %v3674_v12 = vrot.slane %v8881_v15, 4  ;;  %v4340_v31 = vsel %vm3186_vm0, %v4339_v41, %v4338_v4  ;;  %v3673_v8 = vsel %vm3177_vm13, %v3672_v25, %v3671_v45  ;;  %v3676_v23 = vrot.slane %v8884_v7, 3  ;;  %4314 = vrot.lane.b32.xlu0 %v4311_v54, %s4923_s30  ;;  %v8891_v17 = vld [vmem:[#allocation18_spill] sm:$0xff] }
 0x548   : > { %v3678_v55 = vrot.slane %v8885_v33, 2  ;;  %v4342_v19 = vsel %vm8710_vm1, %v4341_v38, %v4340_v31  ;;  %v4284_v61 = vrot.slane %v7379_v20, 6  ;;  %v4285_v43 = vrot.slane %v7439_v42, 5 }
 0x549   : > { %v4287_v50 = vrot.slane %v8878_v2, 4  ;;  %v4344_v28 = vsel %vm8711_vm2, %v4343_v30, %v4342_v19  ;;  %v3680_v21 = vrot.slane %v8887_v36, 1  ;;  %v4289_v14 = vrot.slane %v7575_v24, 3 }
 0x54a   : > { %v4291_v60 = vrot.slane %v7651_v52, 2  ;;  %v8890_v40 = vrot.slane %v8889_v47, 6  ;;  %v3675_v26 = vsel %vm3180_vm14, %v3674_v12, %v3673_v8  ;;  %v4286_v51 = vsel %vm3177_vm13, %v4285_v43, %v4284_v61  ;;  %v8893_v43 = vld [vmem:[#allocation60_spill] sm:$0xff] }
 0x54b   : > { %v4293_v37 = vrot.slane %v7707_v9, 1  ;;  %v3677_v10 = vsel %vm3183_vm15, %v3676_v23, %v3675_v26  ;;  %v4288_v34 = vsel %vm3180_vm14, %v4287_v50, %v4286_v51  ;;  %3735 = vrot.lane.b32.xlu0 %v8891_v17, %s4924_s12  ;;  %v4296_v41 = vrot.slane %v7818_v11, 7  ;;  %v8896_v51 = vld [vmem:[#allocation9_spill] sm:$0xff]  ;;  %v8898_v17 = vld [vmem:[#allocation24_spill] sm:$0xff] }
 0x54c   : > { %v3650_v0 = vsel %vm3195_vm3, %v8890_v40, %v3648_v53  ;;  %v3679_v57 = vsel %vm3186_vm0, %v3678_v55, %v3677_v10  ;;  %v4290_v32 = vsel %vm3183_vm15, %v4289_v14, %v4288_v34  ;;  %v3706_v48 = vrot.slane %v8880_v22, 6  ;;  %v8892_v55 = vld [vmem:[#allocation13_spill] sm:$0xff]  ;;  %v8894_v14 = vld [vmem:[#allocation26_spill] sm:$0xff] }
 0x54d   : > { %3665 = vrot.lane.b32.xlu1 %v3650_v0, %s4922_s28  ;;  %v3681_v63 = vsel %vm8710_vm1, %v3680_v21, %v3679_v57  ;;  %v4292_v62 = vsel %vm3186_vm0, %v4291_v60, %v4290_v32  ;;  %v3683_v30 = vrot.slane %v8889_v47, 7  ;;  %v4345_v45 = vsel %vm3195_vm3, %v8022_v56, %v4344_v28  ;;  %v8895_v0 = vld [vmem:[#allocation27_spill] sm:$0xff] }
 0x54e   : > { %v3682_v38 = vsel %vm8711_vm2, %v8886_v44, %v3681_v63  ;;  %v4294_v59 = vsel %vm8710_vm1, %v4293_v37, %v4292_v62  ;;  %v3705_v54 = vrot.slane %v8883_v29, 7  ;;  %v3708_v53 = vrot.slane %v8881_v15, 5 }
 0x54f   : > { %v4295_v25 = vsel %vm8711_vm2, %v7789_v5, %v4294_v59  ;;  %4348 = vrot.lane.b32.xlu0 %v4345_v45, %s4924_s12  ;;  %v3710_v4 = vrot.slane %v8884_v7, 4  ;;  %v3684_v12 = vsel %vm3195_vm3, %v3683_v30, %v3682_v38  ;;  %v3712_v31 = vrot.slane %v8885_v33, 3  ;;  %v8899_v45 = vld [vmem:[#allocation11_spill] sm:$0xff] }
 0x550   : > { %v4297_v22 = vsel %vm3195_vm3, %v4296_v41, %v4295_v25  ;;  %v3714_v56 = vrot.slane %v8887_v36, 2  ;;  %v3716_v8 = vrot.slane %v8886_v44, 1  ;;  %v4318_v29 = vrot.slane %v7379_v20, 7 }
 0x551   : > { %4278 = vrot.lane.b32.xlu1 %v4263_v46, %s4922_s28  ;;  %v3707_v46 = vsel %vm3177_vm13, %v3706_v48, %v3705_v54  ;;  %v4319_v15 = vrot.slane %v7439_v42, 6  ;;  %v3176_v7 = vrot.slane %v8892_v55, 7  ;;  %v4321_v19 = vrot.slane %v8878_v2, 5 }
 0x552   : > { %v3709_v23 = vsel %vm3180_vm14, %v3708_v53, %v3707_v46  ;;  %v4323_v61 = vrot.slane %v7575_v24, 4  ;;  %v3179_v36 = vrot.slane %v8893_v43, 6  ;;  %v4325_v20 = vrot.slane %v7651_v52, 3 }
 0x553   : > { %v3711_v33 = vsel %vm3183_vm15, %v3710_v4, %v3709_v23  ;;  %v4320_v44 = vsel %vm3177_vm13, %v4319_v15, %v4318_v29  ;;  %v4327_v28 = vrot.slane %v7707_v9, 2  ;;  %v4329_v21 = vrot.slane %v7789_v5, 1  ;;  %v8897_v9 = vld [vmem:[#allocation41_spill] sm:$0xff] }
 0x554   : > { %v3713_v42 = vsel %vm3186_vm0, %v3712_v31, %v3711_v33  ;;  %v4322_v50 = vsel %vm3180_vm14, %v4321_v19, %v4320_v44  ;;  %v3182_v24 = vrot.slane %v8894_v14, 5  ;;  %v3185_v52 = vrot.slane %v8895_v0, 4 }
 0x555   : > { %3699 = vrot.lane.b32.xlu1 %v3684_v12, %s4923_s30  ;;  %v3715_v2 = vsel %vm8710_vm1, %v3714_v56, %v3713_v42  ;;  %v4324_v60 = vsel %vm3183_vm15, %v4323_v61, %v4322_v50  ;;  %v3178_v37 = vsel %vm3177_vm13, %v3176_v7, %v8896_v51  ;;  %v3188_v10 = vrot.slane %v8897_v9, 3 }
 0x556   : > { %v3717_v40 = vsel %vm8711_vm2, %v3716_v8, %v3715_v2  ;;  %v4326_v26 = vsel %vm3186_vm0, %v4325_v20, %v4324_v60  ;;  %v3181_v34 = vsel %vm3180_vm14, %v3179_v36, %v3178_v37  ;;  %v3191_v57 = vrot.slane %v8898_v17, 2 }
 0x557   : > { %v4328_v5 = vsel %vm8710_vm1, %v4327_v28, %v4326_v26  ;;  %v3718_v41 = vsel %vm3195_vm3, %v8889_v47, %v3717_v40  ;;  %v3184_v63 = vsel %vm3183_vm15, %v3182_v24, %v3181_v34  ;;  %v3194_v25 = vrot.slane %v8899_v45, 1 }
 0x558   : > { %v4330_v32 = vsel %vm8711_vm2, %v4329_v21, %v4328_v5  ;;  %v3187_v48 = vsel %vm3186_vm0, %v3185_v52, %v3184_v63  ;;  %v3810_v9 = vrot.slane %v7891_v18, 7  ;;  %v3812_v5 = vrot.slane %v7925_v3, 6 }
 0x559   : > { %4312 = vrot.lane.b32.xlu1 %v4297_v22, %s4923_s30  ;;  %v4331_v62 = vsel %vm3195_vm3, %v7818_v11, %v4330_v32  ;;  %v3190_v38 = vsel %vm8710_vm1, %v3188_v10, %v3187_v48  ;;  %v3242_v30 = vpop.permute.xlu1 %3241  ;;  %vm8900_vm1 = vcmask 326656   ;;  %v3814_v34 = vrot.slane %v7946_v13, 5 }
 0x55a   : > { %v3193_v59 = vsel %vm8711_vm2, %v3191_v57, %v3190_v38  ;;  %vm8901_vm2 = vcmask 457728   ;;  %v3816_v17 = vrot.slane %v7968_v1, 4  ;;  %v3818_v32 = vrot.slane %v7990_v49, 3 }
 0x55b   : > { %v3196_v47 = vsel %vm3195_vm3, %v3194_v25, %v3193_v59  ;;  %v3822_v18 = vrot.slane %v8035_v6, 1 }
 0x55c   : > { %v3739_v54 = vsel %vm8712_vm6, %v3196_v47, %v3242_v30  ;;  %vm8902_vm6 = vcmask 523264  }
 0x55d   : > { %3733 = vrot.lane.b32.xlu1 %v3718_v41, %s4924_s12  ;;  %v3276_v53 = vpop.permute.xlu1 %3275  ;;  %v3811_v41 = vsel %vm3177_vm13, %v3810_v9, %v7847_v16 }
 0x55e   : > { %v3741_v11 = vsel %vm1524_vm7, %v3739_v54, %v3276_v53  ;;  %v3813_v48 = vsel %vm3180_vm14, %v3812_v5, %v3811_v41 }
 0x55f   : > { %v3815_v3 = vsel %vm3183_vm15, %v3814_v34, %v3813_v48 }
 0x560   : > { %v3817_v13 = vsel %vm3186_vm0, %v3816_v17, %v3815_v3  ;;  %v3808_v17 = vrot.slane %v7830_v35, 1 }
 0x561   : > { %4346 = vrot.lane.b32.xlu1 %v4331_v62, %s4924_s12  ;;  %v3310_v22 = vpop.permute.xlu1 %3309  ;;  %v3820_v62 = vrot.slane %v8012_v27, 2 }
 0x562   : > { %v3743_v4 = vsel %vm1590_vm9, %v3741_v11, %v3310_v22 }
 0x565   : > { %v3344_v12 = vpop.permute.xlu1 %3343 }
 0x566   : > { %v3745_v46 = vsel %vm1656_vm11, %v3743_v4, %v3344_v12 }
 0x569   : > { %v3378_v31 = vpop.permute.xlu1 %3377 }
 0x56a   : > { %v3748_v56 = vsel %vm8900_vm1, %v3745_v46, %v3378_v31  ;;  %vm8904_vm1 = vcmask 1046534  }
 0x56d   : > { %v3412_v8 = vpop.permute.xlu1 %3411 }
 0x56e   : > { %v3751_v29 = vsel %vm3750_vm5, %v3748_v56, %v3412_v8 }
 0x571   : > { %v3446_v15 = vpop.permute.xlu1 %3445 }
 0x572   : > { %v3754_v23 = vsel %vm8901_vm2, %v3751_v29, %v3446_v15  ;;  %vm8905_vm2 = vcmask 64512   ;;  %v8909_v15 = vld [vmem:[#allocation14_spill] sm:$0xff] }
 0x575   : > { %v3496_v55 = vpop.permute.xlu1 %3495 }
 0x576   : > { %v3757_v7 = vsel %vm8902_vm6, %v3754_v23, %v3496_v55  ;;  %vm8903_vm6 = vcmask 1045509   ;;  %v3796_v23 = vrot.slane %v8909_v15, 7 }
 0x577   : > { %v3819_v1 = vsel %vm8903_vm6, %v3818_v32, %v3817_v13  ;;  %vm8907_vm6 = vcmask 457728  }
 0x578   : > { %v3821_v49 = vsel %vm8904_vm1, %v3820_v62, %v3819_v1  ;;  %vm8908_vm1 = vcmask 523264  }
 0x579   : > { %v3530_v19 = vpop.permute.xlu1 %3529  ;;  %v3823_v16 = vsel %vm3195_vm3, %v3822_v18, %v3821_v49 }
 0x57a   : > { %v3760_v61 = vsel %vm3759_vm12, %v3757_v7, %v3530_v19  ;;  %v8910_v7 = vld [vmem:[#allocation20_spill] sm:$0xff] }
 0x57b   : > { %v3798_v19 = vrot.slane %v8910_v7, 6 }
 0x57c   : > { %v4061_v33 = vpop.permute.xlu0 %4060 }
 0x57d   : > { %v3564_v43 = vpop.permute.xlu1 %3563 }
 0x57e   : > { %v3763_v36 = vsel %vm3762_vm4, %v3760_v61, %v3564_v43 }
 0x580   : > { %v4111_v44 = vpop.permute.xlu0 %4110 }
 0x581   : > { %v3598_v20 = vpop.permute.xlu1 %3597 }
 0x582   : > { %v3766_v42 = vsel %vm3765_vm8, %v3763_v36, %v3598_v20  ;;  %v8911_v36 = vld [vmem:[#allocation40_spill] sm:$0xff]  ;;  %v8912_v20 = vld [vmem:[#allocation61_spill] sm:$0xff] }
 0x584   : > { %v4145_v50 = vpop.permute.xlu0 %4144 }
 0x585   : > { %v3632_v28 = vpop.permute.xlu1 %3631 }
 0x586   : > { %v8497_v21 = vsel %vm8713_vm10, %v3766_v42, %v3632_v28  ;;  %vm8906_vm10 = vcmask 326656   ;;  %v3802_v42 = vrot.slane %v8912_v20, 4 }
 0x588   : > { %v4179_v2 = vpop.permute.xlu0 %4178 }
 0x589   : > { %v8499_v14 = vpop.permute.xlu1 %3854 }
 0x58c   : > { %v4213_v24 = vpop.permute.xlu0 %4212 }
 0x58d   : > { %v8501_v60 = vpop.permute.xlu1 %3888 }
 0x590   : > { %v3857_v40 = vpop.permute.xlu0 %3856 }
 0x591   : > { %v8503_v0 = vpop.permute.xlu1 %3922  ;;  %v4353_v59 = vsel %vm8905_vm2, %v3823_v16, %v3857_v40  ;;  %vm3774_vm2 = vcmask 916480  }
 0x594   : > { %v3891_v52 = vpop.permute.xlu0 %3890 }
 0x595   : > { %v8505_v26 = vpop.permute.xlu1 %3956  ;;  %v4355_v45 = vsel %vm1524_vm7, %v4353_v59, %v3891_v52 }
 0x598   : > { %v3925_v51 = vpop.permute.xlu0 %3924 }
 0x599   : > { %v8507_v37 = vpop.permute.xlu1 %3990  ;;  %v4357_v6 = vsel %vm1590_vm9, %v4355_v45, %v3925_v51 }
 0x59c   : > { %v3959_v10 = vpop.permute.xlu0 %3958 }
 0x59d   : > { %v8513_v57 = vpop.permute.xlu1 %4024  ;;  %v4359_v47 = vsel %vm1656_vm11, %v4357_v6, %v3959_v10  ;;  %v3806_v10 = vrot.slane %v7805_v39, 2 }
 0x5a0   : > { %v3993_v63 = vpop.permute.xlu0 %3992 }
 0x5a1   : > { %v8523_v38 = vpop.permute.xlu1 %4058  ;;  %v4361_v54 = vsel %vm8906_vm10, %v4359_v47, %v3993_v63  ;;  %vm3771_vm10 = vcmask 850944  }
 0x5a4   : > { %v4027_v30 = vpop.permute.xlu0 %4026 }
 0x5a5   : > { %v4109_v27 = vpop.permute.xlu1 %4108  ;;  %v4363_v11 = vsel %vm3750_vm5, %v4361_v54, %v4027_v30 }
 0x5a6   : > { %v4365_v4 = vsel %vm8907_vm6, %v4363_v11, %v4061_v33  ;;  %v3800_v33 = vrot.slane %v8911_v36, 5  ;;  %vm3777_vm6 = vcmask 982016  }
 0x5a7   : > { %v4367_v31 = vsel %vm8908_vm1, %v4365_v4, %v4111_v44  ;;  %v8913_v44 = vld [vmem:[#allocation17_spill] sm:$0xff]  ;;  %vm8916_vm1 = vcmask 1045509  }
 0x5a8   : > { %v4247_v25 = vpop.permute.xlu0 %4246  ;;  %v4369_v29 = vsel %vm3759_vm12, %v4367_v31, %v4145_v50  ;;  %v3797_v28 = vsel %vm3177_vm13, %v3796_v23, %v8913_v44  ;;  %v8914_v50 = vld [vmem:[#allocation5_spill] sm:$0xff]  ;;  %vm8915_vm13 = vcmask 785408  }
 0x5a9   : > { %v4143_v53 = vpop.permute.xlu1 %4142  ;;  %v4371_v61 = vsel %vm3762_vm4, %v4369_v29, %v4179_v2  ;;  %v3804_v40 = vrot.slane %v8914_v50, 3  ;;  %v3799_v9 = vsel %vm3180_vm14, %v3798_v19, %v3797_v28  ;;  %vm8917_vm14 = vcmask 1046534  }
 0x5aa   : > { %v4373_v52 = vsel %vm3765_vm8, %v4371_v61, %v4213_v24  ;;  %v3801_v24 = vsel %vm3183_vm15, %v3800_v33, %v3799_v9  ;;  %vm8918_vm15 = vcmask 64512  }
 0x5ab   : > { %v3803_v32 = vsel %vm3186_vm0, %v3802_v42, %v3801_v24  ;;  %v4375_v41 = vsel %vm8915_vm13, %v4373_v52, %v4247_v25  ;;  %vm8919_vm0 = vcmask 326656  }
 0x5ac   : > { %v3668_v22 = vpop.permute.xlu0 %3667  ;;  %v3805_v63 = vsel %vm8916_vm1, %v3804_v40, %v3803_v32 }
 0x5ad   : > { %v4177_v12 = vpop.permute.xlu1 %4176  ;;  %v3773_v51 = vsel %vm3771_vm10, %v8295_v58, %v3668_v22  ;;  %v3807_v48 = vsel %vm8917_vm14, %v3806_v10, %v3805_v63 }
 0x5ae   : > { %v3809_v13 = vsel %vm3195_vm3, %v3808_v17, %v3807_v48  ;;  %vm8920_vm3 = vcmask 457728  }
 0x5af   : > { %v4352_v1 = vsel %vm8918_vm15, %v3809_v13, %v8499_v14 }
 0x5b0   : > { %v4281_v46 = vpop.permute.xlu0 %4280  ;;  %v4354_v30 = vsel %vm1524_vm7, %v4352_v1, %v8501_v60  ;;  %vm8921_vm7 = vcmask 523264  }
 0x5b1   : > { %v4211_v56 = vpop.permute.xlu1 %4210  ;;  %v4377_v62 = vsel %vm3771_vm10, %v4375_v41, %v4281_v46  ;;  %v4356_v16 = vsel %vm1590_vm9, %v4354_v30, %v8503_v0  ;;  %vm8922_vm9 = vmmov %vm8915_vm13 }
 0x5b2   : > { %v4358_v59 = vsel %vm1656_vm11, %v4356_v16, %v8505_v26 }
 0x5b3   : > { %v4360_v45 = vsel %vm8919_vm0, %v4358_v59, %v8507_v37 }
 0x5b4   : > { %v3702_v8 = vpop.permute.xlu0 %3701  ;;  %v4362_v25 = vsel %vm3750_vm5, %v4360_v45, %v8513_v57 }
 0x5b5   : > { %v4245_v55 = vpop.permute.xlu1 %4244  ;;  %v3776_v5 = vsel %vm3774_vm2, %v3773_v51, %v3702_v8  ;;  %v4364_v14 = vsel %vm8920_vm3, %v4362_v25, %v8523_v38 }
 0x5b6   : > { %v4366_v60 = vsel %vm8921_vm7, %v4364_v14, %v4109_v27 }
 0x5b7   : > { %v4368_v47 = vsel %vm3759_vm12, %v4366_v60, %v4143_v53 }
 0x5b8   : > { %v4370_v26 = vsel %vm3762_vm4, %v4368_v47, %v4177_v12 }
 0x5b9   : > { %v4315_v43 = vpop.permute.xlu0 %4314  ;;  %v4372_v11 = vsel %vm3765_vm8, %v4370_v26, %v4211_v56 }
 0x5ba   : > { %v4379_v18 = vsel %vm3774_vm2, %v4377_v62, %v4315_v43  ;;  %v4374_v22 = vsel %vm8922_vm9, %v4372_v11, %v4245_v55 }
 0x5bd   : > { %v3736_v34 = vpop.permute.xlu0 %3735 }
 0x5be   : > { %v3779_v58 = vsel %vm3777_vm6, %v3776_v5, %v3736_v34 }
 0x5bf   : > { %v3666_v2 = vpop.permute.xlu1 %3665  ;;  %4383 = vst [vmem:[%s8552_s22 + $0x8] sm:$0xff] %v3779_v58 }
 0x5c0   : > { %v3772_v0 = vsel %vm3771_vm10, %v8497_v21, %v3666_v2 }
 0x5c1   : > { %v4349_v3 = vpop.permute.xlu0 %4348 }
 0x5c2   : > { %v4381_v35 = vsel %vm3777_vm6, %v4379_v18, %v4349_v3 }
 0x5c3   : > { %v4279_v39 = vpop.permute.xlu1 %4278  ;;  %4551 = vst [vmem:[%s8552_s22 + $0x18] sm:$0xff] %v4381_v35 }
 0x5c4   : > { %v4376_v38 = vsel %vm3771_vm10, %v4374_v22, %v4279_v39 }
 0x5c7   : > { %v3700_v49 = vpop.permute.xlu1 %3699 }
 0x5c8   : > { %v3775_v54 = vsel %vm3774_vm2, %v3772_v0, %v3700_v49 }
 0x5cb   : > { %v4313_v6 = vpop.permute.xlu1 %4312 }
 0x5cc   : > { %v4378_v27 = vsel %vm3774_vm2, %v4376_v38, %v4313_v6 }
 0x5cf   : > { %v3734_v37 = vpop.permute.xlu1 %3733 }
 0x5d0   : > { %v3778_v57 = vsel %vm3777_vm6, %v3775_v54, %v3734_v37 }
 0x5d1   : > { %4382 = vst [vmem:[%s8552_s22] sm:$0xff] %v3778_v57 }
 0x5d3   : > { %v4347_v53 = vpop.permute.xlu1 %4346 }
 0x5d4   : > { %v4380_v4 = vsel %vm3777_vm6, %v4378_v27, %v4347_v53 }
 0x5d5   : > { %4550 = vst [vmem:[%s8552_s22 + $0x10] sm:$0xff] %v4380_v4 }
 0x5d6 PF: > { %s16_s21 = sadd.s32 1, %s4903_s21  }
 0x5d7   : > { %p13_p4 = scmp.ge.s32.totalorder %s16_s21, 4  }
 0x5d9   :  { %15 = sbr.rel (!%p13_p4) target bundleno = 1 (0x1), region = 75 }

</bundles_post_ra>
